<compile_context>
chip_gen: v6e
topology: v6e:2x2x1
jax: 0.10.0
libtpu: 0.0.40
codegen_flags: <defaults>
</compile_context>

<pallas_src>
import functools

import jax
import jax.numpy as jnp
from jax.experimental import pallas as pl
from jax.experimental.pallas import tpu as pltpu


# ------------------------------ Pallas kernel -------------------------------

def _conv3x3_rows_kernel(x_ref, w_ref, b_ref, o_ref, *, apply_act, neg_slope):
    """3x3 / stride-1 conv over a pre-padded input; TH output rows per step.

    x_ref: (1, Cin, Hp, Wp)      whole padded image for one batch elem (bf16)
    w_ref: (1, Cout, 9*Cin)      flattened taps, K ordered (ky, kx, ci) (bf16)
    b_ref: (Cout, 1)             bias (f32)
    o_ref: (1, 1, Cout, TH, W)   output row block (f32)
    """
    KH = KW = 3
    TH = o_ref.shape[3]
    Wout = o_ref.shape[4]
    # Row-block start inside the padded image (TH is a multiple of 8 or the
    # whole image, so r0 is sublane aligned).
    r0 = pl.multiple_of(pl.program_id(2) * TH, 8)

    w = w_ref[0]                                       # (Cout, 9*Cin) bf16
    b = b_ref[...]                                     # (Cout, 1) f32
    xwin = x_ref[0, :, pl.ds(r0, TH + KH - 1), :]      # (Cin, TH+2, Wp) bf16

    # In-kernel im2col over the 3x3 taps -> (9*Cin, TH, Wout).  The concat is
    # along the leading (untiled) axis, so it is cheap.
    taps = []
    for ky in range(KH):
        for kx in range(KW):
            taps.append(xwin[:, ky:ky + TH, kx:kx + Wout])
    patches = jnp.concatenate(taps, axis=0)

    # One fused MXU matmul (K = 9*Cin) per output row; f32 accumulation,
    # bias + LeakyReLU fused in f32.
    for t in range(TH):
        patch = patches[:, t, :]                       # (9*Cin, Wout)
        acc = jnp.dot(w, patch, preferred_element_type=jnp.float32)
        acc = acc + b
        if apply_act:
            acc = jnp.where(acc >= 0.0, acc, neg_slope * acc)
        o_ref[0, 0, :, t, :] = acc.astype(o_ref.dtype)


# ------------------------------ host wrappers -------------------------------

def _pick_block_rows(h, target=8):
    """Largest TH <= target with h % TH == 0 and TH % 8 == 0 (or TH == h)."""
    if h <= target:
        return h
    for th in range(target, 0, -1):
        if h % th == 0 and th % 8 == 0:
            return th
    return h  # whole image in one block (block dim == full dim is legal)


def _conv3x3_phases_pallas(x, wm, b, *, apply_act, neg_slope=0.01,
                           block_rows=8):
    """P independent 3x3 / stride-1 / pad-1 convs (one per phase) over
    x (N, Cin, H, W) with weight matrices wm (P, Cout, 9*Cin).
    Returns (P, N, Cout, H, W) float32."""
    N, Cin, H, W = x.shape
    P, Cout, K = wm.shape
    assert K == 9 * Cin

    # bf16 MXU operands (f32 accumulation happens inside the kernel).
    xpad = jnp.pad(x, ((0, 0), (0, 0), (1, 1), (1, 1))).astype(jnp.bfloat16)
    wm = wm.astype(jnp.bfloat16)
    bias = b.reshape(Cout, 1).astype(jnp.float32)

    Hp, Wp = H + 2, W + 2
    TH = _pick_block_rows(H, block_rows)
    T = H // TH

    kernel = functools.partial(_conv3x3_rows_kernel,
                               apply_act=apply_act, neg_slope=neg_slope)
    return pl.pallas_call(
        kernel,
        out_shape=jax.ShapeDtypeStruct((P, N, Cout, H, W), jnp.float32),
        grid=(N, P, T),
        in_specs=[
            # Whole padded image per batch element; the index map ignores
            # (p, t) so Pallas only re-DMAs it when n changes.
            # TODO(synk): for very large images, switch to a manually
            # double-buffered (TH+2)-row window (memory_space=pl.ANY) or a
            # single-buffered spec to cut the VMEM footprint on v7x.
            pl.BlockSpec((1, Cin, Hp, Wp), lambda n, p, t: (n, 0, 0, 0)),
            pl.BlockSpec((1, Cout, K), lambda n, p, t: (p, 0, 0)),
            pl.BlockSpec((Cout, 1), lambda n, p, t: (0, 0)),
        ],
        out_specs=pl.BlockSpec((1, 1, Cout, TH, W),
                               lambda n, p, t: (p, n, 0, t, 0)),
        compiler_params=pltpu.CompilerParams(
            dimension_semantics=("parallel", "parallel", "parallel")),
    )(xpad, wm, bias)


def _phase_weight_matrices_s2(w_pt):
    """PyTorch ConvTranspose2d weight (Cin, Cout, 5, 5) with stride=2,
    padding=2, output_padding=1  ->  (4, Cout, 9*Cin) per-output-phase 3x3
    conv matrices (phase p = py*2 + px, K ordered (ky, kx, ci))."""
    Cin, Cout, KH, KW = w_pt.shape
    assert KH == 5 and KW == 5
    zeros = jnp.zeros((Cin, Cout), w_pt.dtype)
    phase_mats = []
    for py in range(2):
        for px in range(2):
            taps = []
            for ky in range(3):
                kyy = py + 4 - 2 * ky        # deconv kernel row for this tap
                for kx in range(3):
                    kxx = px + 4 - 2 * kx    # deconv kernel col for this tap
                    if 0 <= kyy < KH and 0 <= kxx < KW:
                        taps.append(w_pt[:, :, kyy, kxx])      # (Cin, Cout)
                    else:
                        taps.append(zeros)
            tap_stack = jnp.stack(taps, axis=0)                # (9, Cin, Cout)
            phase_mats.append(
                jnp.transpose(tap_stack, (2, 0, 1)).reshape(Cout, 9 * Cin))
    return jnp.stack(phase_mats, axis=0)                        # (4, Cout, 9Cin)


def _weight_matrix_s1(w_pt):
    """PyTorch ConvTranspose2d weight (Cin, Cout, 3, 3) with stride=1,
    padding=1 -> (1, Cout, 9*Cin) equivalent 3x3 conv matrix (flipped,
    channel-transposed)."""
    Cin, Cout, KH, KW = w_pt.shape
    assert KH == 3 and KW == 3
    taps = []
    for ky in range(3):
        for kx in range(3):
            taps.append(w_pt[:, :, KH - 1 - ky, KW - 1 - kx])   # (Cin, Cout)
    tap_stack = jnp.stack(taps, axis=0)                         # (9, Cin, Cout)
    return jnp.transpose(tap_stack, (2, 0, 1)).reshape(Cout, 9 * Cin)[None]


def conv_transpose2d_s2_pallas(x, w_pt, b, *, apply_act):
    """5x5 / stride-2 / pad-2 / output_padding-1 ConvTranspose2d (+ optional
    fused LeakyReLU) via sub-pixel phase decomposition."""
    out4 = _conv3x3_phases_pallas(x, _phase_weight_matrices_s2(w_pt), b,
                                  apply_act=apply_act)
    P, N, Cout, H, W = out4.shape
    # Interleave: out[n, c, 2*my+py, 2*mx+px] = out4[py*2+px, n, c, my, mx].
    y = out4.reshape(2, 2, N, Cout, H, W)
    y = jnp.transpose(y, (2, 3, 4, 0, 5, 1))      # (N, Cout, H, 2, W, 2)
    return y.reshape(N, Cout, 2 * H, 2 * W)


def conv_transpose2d_s1_pallas(x, w_pt, b, *, apply_act):
    """3x3 / stride-1 / pad-1 ConvTranspose2d (+ optional fused LeakyReLU)."""
    out = _conv3x3_phases_pallas(x, _weight_matrix_s1(w_pt), b,
                                 apply_act=apply_act)
    return out[0]


def hyper_decoder_forward(x_nchw, params):
    """Pallas HyperDecoder forward.  Input/output NCHW like the PyTorch module."""
    x = conv_transpose2d_s2_pallas(x_nchw, params["w1"], params["b1"],
                                   apply_act=True)
    x = conv_transpose2d_s2_pallas(x, params["w2"], params["b2"],
                                   apply_act=True)
    x = conv_transpose2d_s1_pallas(x, params["w3"], params["b3"],
                                   apply_act=False)
    return x


# ---------------- pure-JAX reference (for the correctness check) ------------
# Same precision policy as the kernel (bf16 MXU operands, f32 accumulation),
# so the comparison isolates the Pallas implementation.

def _conv_transpose2d_ref(x, w_pt, b, *, stride, padding, output_padding,
                          apply_act, neg_slope=0.01):
    kh, kw = w_pt.shape[2], w_pt.shape[3]
    w_conv = jnp.transpose(w_pt[:, :, ::-1, ::-1], (1, 0, 2, 3))  # OIHW flipped
    out = jax.lax.conv_general_dilated(
        x.astype(jnp.bfloat16), w_conv.astype(jnp.bfloat16),
        window_strides=(1, 1),
        padding=[(kh - 1 - padding, kh - 1 - padding + output_padding),
                 (kw - 1 - padding, kw - 1 - padding + output_padding)],
        lhs_dilation=(stride, stride),
        dimension_numbers=("NCHW", "OIHW", "NCHW"),
        preferred_element_type=jnp.float32,
        precision=jax.lax.Precision.HIGHEST)
    out = out + b.reshape(1, -1, 1, 1).astype(jnp.float32)
    if apply_act:
        out = jnp.where(out >= 0.0, out, neg_slope * out)
    return out


def hyper_decoder_ref(x_nchw, params):
    x = _conv_transpose2d_ref(x_nchw, params["w1"], params["b1"], stride=2,
                              padding=2, output_padding=1, apply_act=True)
    x = _conv_transpose2d_ref(x, params["w2"], params["b2"], stride=2,
                              padding=2, output_padding=1, apply_act=True)
    x = _conv_transpose2d_ref(x, params["w3"], params["b3"], stride=1,
                              padding=1, output_padding=0, apply_act=False)
    return x


if __name__ == "__main__":
    key = jax.random.PRNGKey(0)
    N, C, H, W = 2, 4, 16, 16                         # small test shape

    def uinit(k, shape, fan_in):
        bound = 1.0 / (fan_in ** 0.5)
        return jax.random.uniform(k, shape, jnp.float32, -bound, bound)

    k1, k2, k3, k4, k5, k6, kx = jax.random.split(key, 7)
    # PyTorch ConvTranspose2d weight layout: (in_channels, out_channels, kH, kW)
    params = {
        "w1": uinit(k1, (C, C, 5, 5), C * 25), "b1": uinit(k2, (C,), C * 25),
        "w2": uinit(k3, (C, C, 5, 5), C * 25), "b2": uinit(k4, (C,), C * 25),
        "w3": uinit(k5, (C, C, 3, 3), C * 9),  "b3": uinit(k6, (C,), C * 9),
    }
    x = jax.random.normal(kx, (N, C, H, W), jnp.float32)

    out = jax.block_until_ready(jax.jit(hyper_decoder_forward)(x, params))
    ref = jax.block_until_ready(hyper_decoder_ref(x, params))

    assert out.shape == (N, C, 4 * H, 4 * W), out.shape
    max_err = float(jnp.max(jnp.abs(out - ref)))
    assert max_err < 5e-3, f"max abs error {max_err}"
    print("KERNEL_OK")
</pallas_src>

<mosaic_0001>
module attributes {stable_mosaic.version = 11 : i64} {
  func.func @_conv3x3_rows_kernel(%arg0: i32, %arg1: i32, %arg2: i32, %arg3: memref<1x4x18x18xbf16, #tpu.memory_space<vmem>>, %arg4: memref<1x4x36xbf16, #tpu.memory_space<vmem>>, %arg5: memref<4x1xf32, #tpu.memory_space<vmem>>, %arg6: memref<1x1x4x8x16xf32, #tpu.memory_space<vmem>>) attributes {dimension_semantics = [#tpu.dimension_semantics<parallel>, #tpu.dimension_semantics<parallel>, #tpu.dimension_semantics<parallel>], iteration_bounds = array<i64: 2, 4, 2>, scalar_prefetch = 0 : i64, scratch_operands = 0 : i64, tpu.core_type = #tpu.core_type<tc>, window_params = [{transform_indices = @transform_0, window_bounds = array<i64: 1, 4, 18, 18>}, {transform_indices = @transform_1, window_bounds = array<i64: 1, 4, 36>}, {pipeline_mode = #tpu.pipeline_mode<synchronous>, transform_indices = @transform_2, window_bounds = array<i64: 4, 1>}, {transform_indices = @transform_3, window_bounds = array<i64: 1, 1, 4, 8, 16>}]} {
    %c8_i32 = arith.constant 8 : i32
    %0 = arith.muli %arg2, %c8_i32 : i32
    %1 = tpu.assume_multiple %0, 8 : i32
    %c0 = arith.constant 0 : index
    %c0_0 = arith.constant 0 : index
    %c0_1 = arith.constant 0 : index
    %2 = vector.load %arg4[%c0, %c0_0, %c0_1] : memref<1x4x36xbf16, #tpu.memory_space<vmem>>, vector<1x4x36xbf16>
    %3 = vector.shape_cast %2 : vector<1x4x36xbf16> to vector<4x36xbf16>
    %c0_2 = arith.constant 0 : index
    %c0_3 = arith.constant 0 : index
    %4 = vector.load %arg5[%c0_2, %c0_3] : memref<4x1xf32, #tpu.memory_space<vmem>>, vector<4x1xf32>
    %c0_4 = arith.constant 0 : index
    %c0_5 = arith.constant 0 : index
    %5 = arith.index_cast %1 : i32 to index
    %c0_6 = arith.constant 0 : index
    %6 = vector.load %arg3[%c0_4, %c0_5, %5, %c0_6] : memref<1x4x18x18xbf16, #tpu.memory_space<vmem>>, vector<1x4x10x18xbf16>
    %7 = vector.shape_cast %6 : vector<1x4x10x18xbf16> to vector<4x10x18xbf16>
    %8 = vector.extract_strided_slice %7 {offsets = [0, 0, 0], sizes = [4, 8, 16], strides = [1, 1, 1]} : vector<4x10x18xbf16> to vector<4x8x16xbf16>
    %9 = vector.extract_strided_slice %7 {offsets = [0, 0, 1], sizes = [4, 8, 16], strides = [1, 1, 1]} : vector<4x10x18xbf16> to vector<4x8x16xbf16>
    %10 = vector.extract_strided_slice %7 {offsets = [0, 0, 2], sizes = [4, 8, 16], strides = [1, 1, 1]} : vector<4x10x18xbf16> to vector<4x8x16xbf16>
    %11 = vector.extract_strided_slice %7 {offsets = [0, 1, 0], sizes = [4, 8, 16], strides = [1, 1, 1]} : vector<4x10x18xbf16> to vector<4x8x16xbf16>
    %12 = vector.extract_strided_slice %7 {offsets = [0, 1, 1], sizes = [4, 8, 16], strides = [1, 1, 1]} : vector<4x10x18xbf16> to vector<4x8x16xbf16>
    %13 = vector.extract_strided_slice %7 {offsets = [0, 1, 2], sizes = [4, 8, 16], strides = [1, 1, 1]} : vector<4x10x18xbf16> to vector<4x8x16xbf16>
    %14 = vector.extract_strided_slice %7 {offsets = [0, 2, 0], sizes = [4, 8, 16], strides = [1, 1, 1]} : vector<4x10x18xbf16> to vector<4x8x16xbf16>
    %15 = vector.extract_strided_slice %7 {offsets = [0, 2, 1], sizes = [4, 8, 16], strides = [1, 1, 1]} : vector<4x10x18xbf16> to vector<4x8x16xbf16>
    %16 = vector.extract_strided_slice %7 {offsets = [0, 2, 2], sizes = [4, 8, 16], strides = [1, 1, 1]} : vector<4x10x18xbf16> to vector<4x8x16xbf16>
    %17 = tpu.concatenate %8, %9, %10, %11, %12, %13, %14, %15, %16 in 0 : vector<4x8x16xbf16>, vector<4x8x16xbf16>, vector<4x8x16xbf16>, vector<4x8x16xbf16>, vector<4x8x16xbf16>, vector<4x8x16xbf16>, vector<4x8x16xbf16>, vector<4x8x16xbf16>, vector<4x8x16xbf16> -> vector<36x8x16xbf16>
    %18 = vector.extract_strided_slice %17 {offsets = [0, 0, 0], sizes = [36, 1, 16], strides = [1, 1, 1]} : vector<36x8x16xbf16> to vector<36x1x16xbf16>
    %19 = vector.shape_cast %18 : vector<36x1x16xbf16> to vector<36x16xbf16>
    %cst = arith.constant dense<0.000000e+00> : vector<4x16xf32>
    %20 = tpu.matmul %3, %19, %cst {dimension_numbers = #tpu.dot_dimension_numbers<[1], [0], [0], [1], [0, 0, 1, 1], [], []>} : vector<4x36xbf16>, vector<36x16xbf16>, vector<4x16xf32> -> vector<4x16xf32>
    %21 = vector.broadcast %4 : vector<4x1xf32> to vector<4x16xf32>
    %22 = arith.addf %20, %21 : vector<4x16xf32>
    %cst_7 = arith.constant 0.000000e+00 : f32
    %23 = vector.broadcast %cst_7 : f32 to vector<4x16xf32>
    %24 = arith.cmpf oge, %22, %23 : vector<4x16xf32>
    %cst_8 = arith.constant 0.00999999977 : f32
    %25 = vector.broadcast %cst_8 : f32 to vector<4x16xf32>
    %26 = arith.mulf %25, %22 : vector<4x16xf32>
    %27 = arith.select %24, %22, %26 : vector<4x16xi1>, vector<4x16xf32>
    %c0_9 = arith.constant 0 : index
    %c0_10 = arith.constant 0 : index
    %c0_11 = arith.constant 0 : index
    %c0_12 = arith.constant 0 : index
    %c0_13 = arith.constant 0 : index
    %28 = vector.load %arg6[%c0_9, %c0_10, %c0_11, %c0_12, %c0_13] : memref<1x1x4x8x16xf32, #tpu.memory_space<vmem>>, vector<1x1x4x1x16xf32>
    %29 = vector.shape_cast %28 : vector<1x1x4x1x16xf32> to vector<4x16xf32>
    %30 = vector.shape_cast %27 : vector<4x16xf32> to vector<1x1x4x1x16xf32>
    tpu.vector_store %arg6[%c0_9, %c0_10, %c0_11, %c0_12, %c0_13], %30 {strides = array<i32>} : memref<1x1x4x8x16xf32, #tpu.memory_space<vmem>>, vector<1x1x4x1x16xf32>,
    %31 = vector.extract_strided_slice %17 {offsets = [0, 1, 0], sizes = [36, 1, 16], strides = [1, 1, 1]} : vector<36x8x16xbf16> to vector<36x1x16xbf16>
    %32 = vector.shape_cast %31 : vector<36x1x16xbf16> to vector<36x16xbf16>
    %cst_14 = arith.constant dense<0.000000e+00> : vector<4x16xf32>
    %33 = tpu.matmul %3, %32, %cst_14 {dimension_numbers = #tpu.dot_dimension_numbers<[1], [0], [0], [1], [0, 0, 1, 1], [], []>} : vector<4x36xbf16>, vector<36x16xbf16>, vector<4x16xf32> -> vector<4x16xf32>
    %34 = vector.broadcast %4 : vector<4x1xf32> to vector<4x16xf32>
    %35 = arith.addf %33, %34 : vector<4x16xf32>
    %cst_15 = arith.constant 0.000000e+00 : f32
    %36 = vector.broadcast %cst_15 : f32 to vector<4x16xf32>
    %37 = arith.cmpf oge, %35, %36 : vector<4x16xf32>
    %cst_16 = arith.constant 0.00999999977 : f32
    %38 = vector.broadcast %cst_16 : f32 to vector<4x16xf32>
    %39 = arith.mulf %38, %35 : vector<4x16xf32>
    %40 = arith.select %37, %35, %39 : vector<4x16xi1>, vector<4x16xf32>
    %c0_17 = arith.constant 0 : index
    %c0_18 = arith.constant 0 : index
    %c0_19 = arith.constant 0 : index
    %c1 = arith.constant 1 : index
    %c0_20 = arith.constant 0 : index
    %41 = vector.load %arg6[%c0_17, %c0_18, %c0_19, %c1, %c0_20] : memref<1x1x4x8x16xf32, #tpu.memory_space<vmem>>, vector<1x1x4x1x16xf32>
    %42 = vector.shape_cast %41 : vector<1x1x4x1x16xf32> to vector<4x16xf32>
    %43 = vector.shape_cast %40 : vector<4x16xf32> to vector<1x1x4x1x16xf32>
    tpu.vector_store %arg6[%c0_17, %c0_18, %c0_19, %c1, %c0_20], %43 {strides = array<i32>} : memref<1x1x4x8x16xf32, #tpu.memory_space<vmem>>, vector<1x1x4x1x16xf32>,
    %44 = vector.extract_strided_slice %17 {offsets = [0, 2, 0], sizes = [36, 1, 16], strides = [1, 1, 1]} : vector<36x8x16xbf16> to vector<36x1x16xbf16>
    %45 = vector.shape_cast %44 : vector<36x1x16xbf16> to vector<36x16xbf16>
    %cst_21 = arith.constant dense<0.000000e+00> : vector<4x16xf32>
    %46 = tpu.matmul %3, %45, %cst_21 {dimension_numbers = #tpu.dot_dimension_numbers<[1], [0], [0], [1], [0, 0, 1, 1], [], []>} : vector<4x36xbf16>, vector<36x16xbf16>, vector<4x16xf32> -> vector<4x16xf32>
    %47 = vector.broadcast %4 : vector<4x1xf32> to vector<4x16xf32>
    %48 = arith.addf %46, %47 : vector<4x16xf32>
    %cst_22 = arith.constant 0.000000e+00 : f32
    %49 = vector.broadcast %cst_22 : f32 to vector<4x16xf32>
    %50 = arith.cmpf oge, %48, %49 : vector<4x16xf32>
    %cst_23 = arith.constant 0.00999999977 : f32
    %51 = vector.broadcast %cst_23 : f32 to vector<4x16xf32>
    %52 = arith.mulf %51, %48 : vector<4x16xf32>
    %53 = arith.select %50, %48, %52 : vector<4x16xi1>, vector<4x16xf32>
    %c0_24 = arith.constant 0 : index
    %c0_25 = arith.constant 0 : index
    %c0_26 = arith.constant 0 : index
    %c2 = arith.constant 2 : index
    %c0_27 = arith.constant 0 : index
    %54 = vector.load %arg6[%c0_24, %c0_25, %c0_26, %c2, %c0_27] : memref<1x1x4x8x16xf32, #tpu.memory_space<vmem>>, vector<1x1x4x1x16xf32>
    %55 = vector.shape_cast %54 : vector<1x1x4x1x16xf32> to vector<4x16xf32>
    %56 = vector.shape_cast %53 : vector<4x16xf32> to vector<1x1x4x1x16xf32>
    tpu.vector_store %arg6[%c0_24, %c0_25, %c0_26, %c2, %c0_27], %56 {strides = array<i32>} : memref<1x1x4x8x16xf32, #tpu.memory_space<vmem>>, vector<1x1x4x1x16xf32>,
    %57 = vector.extract_strided_slice %17 {offsets = [0, 3, 0], sizes = [36, 1, 16], strides = [1, 1, 1]} : vector<36x8x16xbf16> to vector<36x1x16xbf16>
    %58 = vector.shape_cast %57 : vector<36x1x16xbf16> to vector<36x16xbf16>
    %cst_28 = arith.constant dense<0.000000e+00> : vector<4x16xf32>
    %59 = tpu.matmul %3, %58, %cst_28 {dimension_numbers = #tpu.dot_dimension_numbers<[1], [0], [0], [1], [0, 0, 1, 1], [], []>} : vector<4x36xbf16>, vector<36x16xbf16>, vector<4x16xf32> -> vector<4x16xf32>
    %60 = vector.broadcast %4 : vector<4x1xf32> to vector<4x16xf32>
    %61 = arith.addf %59, %60 : vector<4x16xf32>
    %cst_29 = arith.constant 0.000000e+00 : f32
    %62 = vector.broadcast %cst_29 : f32 to vector<4x16xf32>
    %63 = arith.cmpf oge, %61, %62 : vector<4x16xf32>
    %cst_30 = arith.constant 0.00999999977 : f32
    %64 = vector.broadcast %cst_30 : f32 to vector<4x16xf32>
    %65 = arith.mulf %64, %61 : vector<4x16xf32>
    %66 = arith.select %63, %61, %65 : vector<4x16xi1>, vector<4x16xf32>
    %c0_31 = arith.constant 0 : index
    %c0_32 = arith.constant 0 : index
    %c0_33 = arith.constant 0 : index
    %c3 = arith.constant 3 : index
    %c0_34 = arith.constant 0 : index
    %67 = vector.load %arg6[%c0_31, %c0_32, %c0_33, %c3, %c0_34] : memref<1x1x4x8x16xf32, #tpu.memory_space<vmem>>, vector<1x1x4x1x16xf32>
    %68 = vector.shape_cast %67 : vector<1x1x4x1x16xf32> to vector<4x16xf32>
    %69 = vector.shape_cast %66 : vector<4x16xf32> to vector<1x1x4x1x16xf32>
    tpu.vector_store %arg6[%c0_31, %c0_32, %c0_33, %c3, %c0_34], %69 {strides = array<i32>} : memref<1x1x4x8x16xf32, #tpu.memory_space<vmem>>, vector<1x1x4x1x16xf32>,
    %70 = vector.extract_strided_slice %17 {offsets = [0, 4, 0], sizes = [36, 1, 16], strides = [1, 1, 1]} : vector<36x8x16xbf16> to vector<36x1x16xbf16>
    %71 = vector.shape_cast %70 : vector<36x1x16xbf16> to vector<36x16xbf16>
    %cst_35 = arith.constant dense<0.000000e+00> : vector<4x16xf32>
    %72 = tpu.matmul %3, %71, %cst_35 {dimension_numbers = #tpu.dot_dimension_numbers<[1], [0], [0], [1], [0, 0, 1, 1], [], []>} : vector<4x36xbf16>, vector<36x16xbf16>, vector<4x16xf32> -> vector<4x16xf32>
    %73 = vector.broadcast %4 : vector<4x1xf32> to vector<4x16xf32>
    %74 = arith.addf %72, %73 : vector<4x16xf32>
    %cst_36 = arith.constant 0.000000e+00 : f32
    %75 = vector.broadcast %cst_36 : f32 to vector<4x16xf32>
    %76 = arith.cmpf oge, %74, %75 : vector<4x16xf32>
    %cst_37 = arith.constant 0.00999999977 : f32
    %77 = vector.broadcast %cst_37 : f32 to vector<4x16xf32>
    %78 = arith.mulf %77, %74 : vector<4x16xf32>
    %79 = arith.select %76, %74, %78 : vector<4x16xi1>, vector<4x16xf32>
    %c0_38 = arith.constant 0 : index
    %c0_39 = arith.constant 0 : index
    %c0_40 = arith.constant 0 : index
    %c4 = arith.constant 4 : index
    %c0_41 = arith.constant 0 : index
    %80 = vector.load %arg6[%c0_38, %c0_39, %c0_40, %c4, %c0_41] : memref<1x1x4x8x16xf32, #tpu.memory_space<vmem>>, vector<1x1x4x1x16xf32>
    %81 = vector.shape_cast %80 : vector<1x1x4x1x16xf32> to vector<4x16xf32>
    %82 = vector.shape_cast %79 : vector<4x16xf32> to vector<1x1x4x1x16xf32>
    tpu.vector_store %arg6[%c0_38, %c0_39, %c0_40, %c4, %c0_41], %82 {strides = array<i32>} : memref<1x1x4x8x16xf32, #tpu.memory_space<vmem>>, vector<1x1x4x1x16xf32>,
    %83 = vector.extract_strided_slice %17 {offsets = [0, 5, 0], sizes = [36, 1, 16], strides = [1, 1, 1]} : vector<36x8x16xbf16> to vector<36x1x16xbf16>
    %84 = vector.shape_cast %83 : vector<36x1x16xbf16> to vector<36x16xbf16>
    %cst_42 = arith.constant dense<0.000000e+00> : vector<4x16xf32>
    %85 = tpu.matmul %3, %84, %cst_42 {dimension_numbers = #tpu.dot_dimension_numbers<[1], [0], [0], [1], [0, 0, 1, 1], [], []>} : vector<4x36xbf16>, vector<36x16xbf16>, vector<4x16xf32> -> vector<4x16xf32>
    %86 = vector.broadcast %4 : vector<4x1xf32> to vector<4x16xf32>
    %87 = arith.addf %85, %86 : vector<4x16xf32>
    %cst_43 = arith.constant 0.000000e+00 : f32
    %88 = vector.broadcast %cst_43 : f32 to vector<4x16xf32>
    %89 = arith.cmpf oge, %87, %88 : vector<4x16xf32>
    %cst_44 = arith.constant 0.00999999977 : f32
    %90 = vector.broadcast %cst_44 : f32 to vector<4x16xf32>
    %91 = arith.mulf %90, %87 : vector<4x16xf32>
    %92 = arith.select %89, %87, %91 : vector<4x16xi1>, vector<4x16xf32>
    %c0_45 = arith.constant 0 : index
    %c0_46 = arith.constant 0 : index
    %c0_47 = arith.constant 0 : index
    %c5 = arith.constant 5 : index
    %c0_48 = arith.constant 0 : index
    %93 = vector.load %arg6[%c0_45, %c0_46, %c0_47, %c5, %c0_48] : memref<1x1x4x8x16xf32, #tpu.memory_space<vmem>>, vector<1x1x4x1x16xf32>
    %94 = vector.shape_cast %93 : vector<1x1x4x1x16xf32> to vector<4x16xf32>
    %95 = vector.shape_cast %92 : vector<4x16xf32> to vector<1x1x4x1x16xf32>
    tpu.vector_store %arg6[%c0_45, %c0_46, %c0_47, %c5, %c0_48], %95 {strides = array<i32>} : memref<1x1x4x8x16xf32, #tpu.memory_space<vmem>>, vector<1x1x4x1x16xf32>,
    %96 = vector.extract_strided_slice %17 {offsets = [0, 6, 0], sizes = [36, 1, 16], strides = [1, 1, 1]} : vector<36x8x16xbf16> to vector<36x1x16xbf16>
    %97 = vector.shape_cast %96 : vector<36x1x16xbf16> to vector<36x16xbf16>
    %cst_49 = arith.constant dense<0.000000e+00> : vector<4x16xf32>
    %98 = tpu.matmul %3, %97, %cst_49 {dimension_numbers = #tpu.dot_dimension_numbers<[1], [0], [0], [1], [0, 0, 1, 1], [], []>} : vector<4x36xbf16>, vector<36x16xbf16>, vector<4x16xf32> -> vector<4x16xf32>
    %99 = vector.broadcast %4 : vector<4x1xf32> to vector<4x16xf32>
    %100 = arith.addf %98, %99 : vector<4x16xf32>
    %cst_50 = arith.constant 0.000000e+00 : f32
    %101 = vector.broadcast %cst_50 : f32 to vector<4x16xf32>
    %102 = arith.cmpf oge, %100, %101 : vector<4x16xf32>
    %cst_51 = arith.constant 0.00999999977 : f32
    %103 = vector.broadcast %cst_51 : f32 to vector<4x16xf32>
    %104 = arith.mulf %103, %100 : vector<4x16xf32>
    %105 = arith.select %102, %100, %104 : vector<4x16xi1>, vector<4x16xf32>
    %c0_52 = arith.constant 0 : index
    %c0_53 = arith.constant 0 : index
    %c0_54 = arith.constant 0 : index
    %c6 = arith.constant 6 : index
    %c0_55 = arith.constant 0 : index
    %106 = vector.load %arg6[%c0_52, %c0_53, %c0_54, %c6, %c0_55] : memref<1x1x4x8x16xf32, #tpu.memory_space<vmem>>, vector<1x1x4x1x16xf32>
    %107 = vector.shape_cast %106 : vector<1x1x4x1x16xf32> to vector<4x16xf32>
    %108 = vector.shape_cast %105 : vector<4x16xf32> to vector<1x1x4x1x16xf32>
    tpu.vector_store %arg6[%c0_52, %c0_53, %c0_54, %c6, %c0_55], %108 {strides = array<i32>} : memref<1x1x4x8x16xf32, #tpu.memory_space<vmem>>, vector<1x1x4x1x16xf32>,
    %109 = vector.extract_strided_slice %17 {offsets = [0, 7, 0], sizes = [36, 1, 16], strides = [1, 1, 1]} : vector<36x8x16xbf16> to vector<36x1x16xbf16>
    %110 = vector.shape_cast %109 : vector<36x1x16xbf16> to vector<36x16xbf16>
    %cst_56 = arith.constant dense<0.000000e+00> : vector<4x16xf32>
    %111 = tpu.matmul %3, %110, %cst_56 {dimension_numbers = #tpu.dot_dimension_numbers<[1], [0], [0], [1], [0, 0, 1, 1], [], []>} : vector<4x36xbf16>, vector<36x16xbf16>, vector<4x16xf32> -> vector<4x16xf32>
    %112 = vector.broadcast %4 : vector<4x1xf32> to vector<4x16xf32>
    %113 = arith.addf %111, %112 : vector<4x16xf32>
    %cst_57 = arith.constant 0.000000e+00 : f32
    %114 = vector.broadcast %cst_57 : f32 to vector<4x16xf32>
    %115 = arith.cmpf oge, %113, %114 : vector<4x16xf32>
    %cst_58 = arith.constant 0.00999999977 : f32
    %116 = vector.broadcast %cst_58 : f32 to vector<4x16xf32>
    %117 = arith.mulf %116, %113 : vector<4x16xf32>
    %118 = arith.select %115, %113, %117 : vector<4x16xi1>, vector<4x16xf32>
    %c0_59 = arith.constant 0 : index
    %c0_60 = arith.constant 0 : index
    %c0_61 = arith.constant 0 : index
    %c7 = arith.constant 7 : index
    %c0_62 = arith.constant 0 : index
    %119 = vector.load %arg6[%c0_59, %c0_60, %c0_61, %c7, %c0_62] : memref<1x1x4x8x16xf32, #tpu.memory_space<vmem>>, vector<1x1x4x1x16xf32>
    %120 = vector.shape_cast %119 : vector<1x1x4x1x16xf32> to vector<4x16xf32>
    %121 = vector.shape_cast %118 : vector<4x16xf32> to vector<1x1x4x1x16xf32>
    tpu.vector_store %arg6[%c0_59, %c0_60, %c0_61, %c7, %c0_62], %121 {strides = array<i32>} : memref<1x1x4x8x16xf32, #tpu.memory_space<vmem>>, vector<1x1x4x1x16xf32>,
    return
  }
  func.func @transform_0(%arg0: i32, %arg1: i32, %arg2: i32) -> (i32, i32, i32, i32) {
    %c0_i32 = arith.constant 0 : i32
    %c0_i32_0 = arith.constant 0 : i32
    %c0_i32_1 = arith.constant 0 : i32
    %c0_i32_2 = arith.constant 0 : i32
    return %arg0, %c0_i32, %c0_i32_0, %c0_i32_1 : i32, i32, i32, i32
  }
  func.func @transform_1(%arg0: i32, %arg1: i32, %arg2: i32) -> (i32, i32, i32) {
    %c0_i32 = arith.constant 0 : i32
    %c0_i32_0 = arith.constant 0 : i32
    %c0_i32_1 = arith.constant 0 : i32
    return %arg1, %c0_i32, %c0_i32_0 : i32, i32, i32
  }
  func.func @transform_2(%arg0: i32, %arg1: i32, %arg2: i32) -> (i32, i32) {
    %c0_i32 = arith.constant 0 : i32
    %c0_i32_0 = arith.constant 0 : i32
    %c0_i32_1 = arith.constant 0 : i32
    return %c0_i32, %c0_i32_0 : i32, i32
  }
  func.func @transform_3(%arg0: i32, %arg1: i32, %arg2: i32) -> (i32, i32, i32, i32, i32) {
    %c0_i32 = arith.constant 0 : i32
    %c0_i32_0 = arith.constant 0 : i32
    %c0_i32_1 = arith.constant 0 : i32
    return %arg1, %arg0, %c0_i32, %arg2, %c0_i32_0 : i32, i32, i32, i32, i32
  }
}

module attributes {stable_mosaic.version = 11 : i64} {
  func.func @_conv3x3_rows_kernel(%arg0: i32, %arg1: i32, %arg2: i32, %arg3: memref<1x4x34x34xbf16, #tpu.memory_space<vmem>>, %arg4: memref<1x4x36xbf16, #tpu.memory_space<vmem>>, %arg5: memref<4x1xf32, #tpu.memory_space<vmem>>, %arg6: memref<1x1x4x8x32xf32, #tpu.memory_space<vmem>>) attributes {dimension_semantics = [#tpu.dimension_semantics<parallel>, #tpu.dimension_semantics<parallel>, #tpu.dimension_semantics<parallel>], iteration_bounds = array<i64: 2, 4, 4>, scalar_prefetch = 0 : i64, scratch_operands = 0 : i64, tpu.core_type = #tpu.core_type<tc>, window_params = [{transform_indices = @transform_0, window_bounds = array<i64: 1, 4, 34, 34>}, {transform_indices = @transform_1, window_bounds = array<i64: 1, 4, 36>}, {pipeline_mode = #tpu.pipeline_mode<synchronous>, transform_indices = @transform_2, window_bounds = array<i64: 4, 1>}, {transform_indices = @transform_3, window_bounds = array<i64: 1, 1, 4, 8, 32>}]} {
    %c8_i32 = arith.constant 8 : i32
    %0 = arith.muli %arg2, %c8_i32 : i32
    %1 = tpu.assume_multiple %0, 8 : i32
    %c0 = arith.constant 0 : index
    %c0_0 = arith.constant 0 : index
    %c0_1 = arith.constant 0 : index
    %2 = vector.load %arg4[%c0, %c0_0, %c0_1] : memref<1x4x36xbf16, #tpu.memory_space<vmem>>, vector<1x4x36xbf16>
    %3 = vector.shape_cast %2 : vector<1x4x36xbf16> to vector<4x36xbf16>
    %c0_2 = arith.constant 0 : index
    %c0_3 = arith.constant 0 : index
    %4 = vector.load %arg5[%c0_2, %c0_3] : memref<4x1xf32, #tpu.memory_space<vmem>>, vector<4x1xf32>
    %c0_4 = arith.constant 0 : index
    %c0_5 = arith.constant 0 : index
    %5 = arith.index_cast %1 : i32 to index
    %c0_6 = arith.constant 0 : index
    %6 = vector.load %arg3[%c0_4, %c0_5, %5, %c0_6] : memref<1x4x34x34xbf16, #tpu.memory_space<vmem>>, vector<1x4x10x34xbf16>
    %7 = vector.shape_cast %6 : vector<1x4x10x34xbf16> to vector<4x10x34xbf16>
    %8 = vector.extract_strided_slice %7 {offsets = [0, 0, 0], sizes = [4, 8, 32], strides = [1, 1, 1]} : vector<4x10x34xbf16> to vector<4x8x32xbf16>
    %9 = vector.extract_strided_slice %7 {offsets = [0, 0, 1], sizes = [4, 8, 32], strides = [1, 1, 1]} : vector<4x10x34xbf16> to vector<4x8x32xbf16>
    %10 = vector.extract_strided_slice %7 {offsets = [0, 0, 2], sizes = [4, 8, 32], strides = [1, 1, 1]} : vector<4x10x34xbf16> to vector<4x8x32xbf16>
    %11 = vector.extract_strided_slice %7 {offsets = [0, 1, 0], sizes = [4, 8, 32], strides = [1, 1, 1]} : vector<4x10x34xbf16> to vector<4x8x32xbf16>
    %12 = vector.extract_strided_slice %7 {offsets = [0, 1, 1], sizes = [4, 8, 32], strides = [1, 1, 1]} : vector<4x10x34xbf16> to vector<4x8x32xbf16>
    %13 = vector.extract_strided_slice %7 {offsets = [0, 1, 2], sizes = [4, 8, 32], strides = [1, 1, 1]} : vector<4x10x34xbf16> to vector<4x8x32xbf16>
    %14 = vector.extract_strided_slice %7 {offsets = [0, 2, 0], sizes = [4, 8, 32], strides = [1, 1, 1]} : vector<4x10x34xbf16> to vector<4x8x32xbf16>
    %15 = vector.extract_strided_slice %7 {offsets = [0, 2, 1], sizes = [4, 8, 32], strides = [1, 1, 1]} : vector<4x10x34xbf16> to vector<4x8x32xbf16>
    %16 = vector.extract_strided_slice %7 {offsets = [0, 2, 2], sizes = [4, 8, 32], strides = [1, 1, 1]} : vector<4x10x34xbf16> to vector<4x8x32xbf16>
    %17 = tpu.concatenate %8, %9, %10, %11, %12, %13, %14, %15, %16 in 0 : vector<4x8x32xbf16>, vector<4x8x32xbf16>, vector<4x8x32xbf16>, vector<4x8x32xbf16>, vector<4x8x32xbf16>, vector<4x8x32xbf16>, vector<4x8x32xbf16>, vector<4x8x32xbf16>, vector<4x8x32xbf16> -> vector<36x8x32xbf16>
    %18 = vector.extract_strided_slice %17 {offsets = [0, 0, 0], sizes = [36, 1, 32], strides = [1, 1, 1]} : vector<36x8x32xbf16> to vector<36x1x32xbf16>
    %19 = vector.shape_cast %18 : vector<36x1x32xbf16> to vector<36x32xbf16>
    %cst = arith.constant dense<0.000000e+00> : vector<4x32xf32>
    %20 = tpu.matmul %3, %19, %cst {dimension_numbers = #tpu.dot_dimension_numbers<[1], [0], [0], [1], [0, 0, 1, 1], [], []>} : vector<4x36xbf16>, vector<36x32xbf16>, vector<4x32xf32> -> vector<4x32xf32>
    %21 = vector.broadcast %4 : vector<4x1xf32> to vector<4x32xf32>
    %22 = arith.addf %20, %21 : vector<4x32xf32>
    %cst_7 = arith.constant 0.000000e+00 : f32
    %23 = vector.broadcast %cst_7 : f32 to vector<4x32xf32>
    %24 = arith.cmpf oge, %22, %23 : vector<4x32xf32>
    %cst_8 = arith.constant 0.00999999977 : f32
    %25 = vector.broadcast %cst_8 : f32 to vector<4x32xf32>
    %26 = arith.mulf %25, %22 : vector<4x32xf32>
    %27 = arith.select %24, %22, %26 : vector<4x32xi1>, vector<4x32xf32>
    %c0_9 = arith.constant 0 : index
    %c0_10 = arith.constant 0 : index
    %c0_11 = arith.constant 0 : index
    %c0_12 = arith.constant 0 : index
    %c0_13 = arith.constant 0 : index
    %28 = vector.load %arg6[%c0_9, %c0_10, %c0_11, %c0_12, %c0_13] : memref<1x1x4x8x32xf32, #tpu.memory_space<vmem>>, vector<1x1x4x1x32xf32>
    %29 = vector.shape_cast %28 : vector<1x1x4x1x32xf32> to vector<4x32xf32>
    %30 = vector.shape_cast %27 : vector<4x32xf32> to vector<1x1x4x1x32xf32>
    tpu.vector_store %arg6[%c0_9, %c0_10, %c0_11, %c0_12, %c0_13], %30 {strides = array<i32>} : memref<1x1x4x8x32xf32, #tpu.memory_space<vmem>>, vector<1x1x4x1x32xf32>,
    %31 = vector.extract_strided_slice %17 {offsets = [0, 1, 0], sizes = [36, 1, 32], strides = [1, 1, 1]} : vector<36x8x32xbf16> to vector<36x1x32xbf16>
    %32 = vector.shape_cast %31 : vector<36x1x32xbf16> to vector<36x32xbf16>
    %cst_14 = arith.constant dense<0.000000e+00> : vector<4x32xf32>
    %33 = tpu.matmul %3, %32, %cst_14 {dimension_numbers = #tpu.dot_dimension_numbers<[1], [0], [0], [1], [0, 0, 1, 1], [], []>} : vector<4x36xbf16>, vector<36x32xbf16>, vector<4x32xf32> -> vector<4x32xf32>
    %34 = vector.broadcast %4 : vector<4x1xf32> to vector<4x32xf32>
    %35 = arith.addf %33, %34 : vector<4x32xf32>
    %cst_15 = arith.constant 0.000000e+00 : f32
    %36 = vector.broadcast %cst_15 : f32 to vector<4x32xf32>
    %37 = arith.cmpf oge, %35, %36 : vector<4x32xf32>
    %cst_16 = arith.constant 0.00999999977 : f32
    %38 = vector.broadcast %cst_16 : f32 to vector<4x32xf32>
    %39 = arith.mulf %38, %35 : vector<4x32xf32>
    %40 = arith.select %37, %35, %39 : vector<4x32xi1>, vector<4x32xf32>
    %c0_17 = arith.constant 0 : index
    %c0_18 = arith.constant 0 : index
    %c0_19 = arith.constant 0 : index
    %c1 = arith.constant 1 : index
    %c0_20 = arith.constant 0 : index
    %41 = vector.load %arg6[%c0_17, %c0_18, %c0_19, %c1, %c0_20] : memref<1x1x4x8x32xf32, #tpu.memory_space<vmem>>, vector<1x1x4x1x32xf32>
    %42 = vector.shape_cast %41 : vector<1x1x4x1x32xf32> to vector<4x32xf32>
    %43 = vector.shape_cast %40 : vector<4x32xf32> to vector<1x1x4x1x32xf32>
    tpu.vector_store %arg6[%c0_17, %c0_18, %c0_19, %c1, %c0_20], %43 {strides = array<i32>} : memref<1x1x4x8x32xf32, #tpu.memory_space<vmem>>, vector<1x1x4x1x32xf32>,
    %44 = vector.extract_strided_slice %17 {offsets = [0, 2, 0], sizes = [36, 1, 32], strides = [1, 1, 1]} : vector<36x8x32xbf16> to vector<36x1x32xbf16>
    %45 = vector.shape_cast %44 : vector<36x1x32xbf16> to vector<36x32xbf16>
    %cst_21 = arith.constant dense<0.000000e+00> : vector<4x32xf32>
    %46 = tpu.matmul %3, %45, %cst_21 {dimension_numbers = #tpu.dot_dimension_numbers<[1], [0], [0], [1], [0, 0, 1, 1], [], []>} : vector<4x36xbf16>, vector<36x32xbf16>, vector<4x32xf32> -> vector<4x32xf32>
    %47 = vector.broadcast %4 : vector<4x1xf32> to vector<4x32xf32>
    %48 = arith.addf %46, %47 : vector<4x32xf32>
    %cst_22 = arith.constant 0.000000e+00 : f32
    %49 = vector.broadcast %cst_22 : f32 to vector<4x32xf32>
    %50 = arith.cmpf oge, %48, %49 : vector<4x32xf32>
    %cst_23 = arith.constant 0.00999999977 : f32
    %51 = vector.broadcast %cst_23 : f32 to vector<4x32xf32>
    %52 = arith.mulf %51, %48 : vector<4x32xf32>
    %53 = arith.select %50, %48, %52 : vector<4x32xi1>, vector<4x32xf32>
    %c0_24 = arith.constant 0 : index
    %c0_25 = arith.constant 0 : index
    %c0_26 = arith.constant 0 : index
    %c2 = arith.constant 2 : index
    %c0_27 = arith.constant 0 : index
    %54 = vector.load %arg6[%c0_24, %c0_25, %c0_26, %c2, %c0_27] : memref<1x1x4x8x32xf32, #tpu.memory_space<vmem>>, vector<1x1x4x1x32xf32>
    %55 = vector.shape_cast %54 : vector<1x1x4x1x32xf32> to vector<4x32xf32>
    %56 = vector.shape_cast %53 : vector<4x32xf32> to vector<1x1x4x1x32xf32>
    tpu.vector_store %arg6[%c0_24, %c0_25, %c0_26, %c2, %c0_27], %56 {strides = array<i32>} : memref<1x1x4x8x32xf32, #tpu.memory_space<vmem>>, vector<1x1x4x1x32xf32>,
    %57 = vector.extract_strided_slice %17 {offsets = [0, 3, 0], sizes = [36, 1, 32], strides = [1, 1, 1]} : vector<36x8x32xbf16> to vector<36x1x32xbf16>
    %58 = vector.shape_cast %57 : vector<36x1x32xbf16> to vector<36x32xbf16>
    %cst_28 = arith.constant dense<0.000000e+00> : vector<4x32xf32>
    %59 = tpu.matmul %3, %58, %cst_28 {dimension_numbers = #tpu.dot_dimension_numbers<[1], [0], [0], [1], [0, 0, 1, 1], [], []>} : vector<4x36xbf16>, vector<36x32xbf16>, vector<4x32xf32> -> vector<4x32xf32>
    %60 = vector.broadcast %4 : vector<4x1xf32> to vector<4x32xf32>
    %61 = arith.addf %59, %60 : vector<4x32xf32>
    %cst_29 = arith.constant 0.000000e+00 : f32
    %62 = vector.broadcast %cst_29 : f32 to vector<4x32xf32>
    %63 = arith.cmpf oge, %61, %62 : vector<4x32xf32>
    %cst_30 = arith.constant 0.00999999977 : f32
    %64 = vector.broadcast %cst_30 : f32 to vector<4x32xf32>
    %65 = arith.mulf %64, %61 : vector<4x32xf32>
    %66 = arith.select %63, %61, %65 : vector<4x32xi1>, vector<4x32xf32>
    %c0_31 = arith.constant 0 : index
    %c0_32 = arith.constant 0 : index
    %c0_33 = arith.constant 0 : index
    %c3 = arith.constant 3 : index
    %c0_34 = arith.constant 0 : index
    %67 = vector.load %arg6[%c0_31, %c0_32, %c0_33, %c3, %c0_34] : memref<1x1x4x8x32xf32, #tpu.memory_space<vmem>>, vector<1x1x4x1x32xf32>
    %68 = vector.shape_cast %67 : vector<1x1x4x1x32xf32> to vector<4x32xf32>
    %69 = vector.shape_cast %66 : vector<4x32xf32> to vector<1x1x4x1x32xf32>
    tpu.vector_store %arg6[%c0_31, %c0_32, %c0_33, %c3, %c0_34], %69 {strides = array<i32>} : memref<1x1x4x8x32xf32, #tpu.memory_space<vmem>>, vector<1x1x4x1x32xf32>,
    %70 = vector.extract_strided_slice %17 {offsets = [0, 4, 0], sizes = [36, 1, 32], strides = [1, 1, 1]} : vector<36x8x32xbf16> to vector<36x1x32xbf16>
    %71 = vector.shape_cast %70 : vector<36x1x32xbf16> to vector<36x32xbf16>
    %cst_35 = arith.constant dense<0.000000e+00> : vector<4x32xf32>
    %72 = tpu.matmul %3, %71, %cst_35 {dimension_numbers = #tpu.dot_dimension_numbers<[1], [0], [0], [1], [0, 0, 1, 1], [], []>} : vector<4x36xbf16>, vector<36x32xbf16>, vector<4x32xf32> -> vector<4x32xf32>
    %73 = vector.broadcast %4 : vector<4x1xf32> to vector<4x32xf32>
    %74 = arith.addf %72, %73 : vector<4x32xf32>
    %cst_36 = arith.constant 0.000000e+00 : f32
    %75 = vector.broadcast %cst_36 : f32 to vector<4x32xf32>
    %76 = arith.cmpf oge, %74, %75 : vector<4x32xf32>
    %cst_37 = arith.constant 0.00999999977 : f32
    %77 = vector.broadcast %cst_37 : f32 to vector<4x32xf32>
    %78 = arith.mulf %77, %74 : vector<4x32xf32>
    %79 = arith.select %76, %74, %78 : vector<4x32xi1>, vector<4x32xf32>
    %c0_38 = arith.constant 0 : index
    %c0_39 = arith.constant 0 : index
    %c0_40 = arith.constant 0 : index
    %c4 = arith.constant 4 : index
    %c0_41 = arith.constant 0 : index
    %80 = vector.load %arg6[%c0_38, %c0_39, %c0_40, %c4, %c0_41] : memref<1x1x4x8x32xf32, #tpu.memory_space<vmem>>, vector<1x1x4x1x32xf32>
    %81 = vector.shape_cast %80 : vector<1x1x4x1x32xf32> to vector<4x32xf32>
    %82 = vector.shape_cast %79 : vector<4x32xf32> to vector<1x1x4x1x32xf32>
    tpu.vector_store %arg6[%c0_38, %c0_39, %c0_40, %c4, %c0_41], %82 {strides = array<i32>} : memref<1x1x4x8x32xf32, #tpu.memory_space<vmem>>, vector<1x1x4x1x32xf32>,
    %83 = vector.extract_strided_slice %17 {offsets = [0, 5, 0], sizes = [36, 1, 32], strides = [1, 1, 1]} : vector<36x8x32xbf16> to vector<36x1x32xbf16>
    %84 = vector.shape_cast %83 : vector<36x1x32xbf16> to vector<36x32xbf16>
    %cst_42 = arith.constant dense<0.000000e+00> : vector<4x32xf32>
    %85 = tpu.matmul %3, %84, %cst_42 {dimension_numbers = #tpu.dot_dimension_numbers<[1], [0], [0], [1], [0, 0, 1, 1], [], []>} : vector<4x36xbf16>, vector<36x32xbf16>, vector<4x32xf32> -> vector<4x32xf32>
    %86 = vector.broadcast %4 : vector<4x1xf32> to vector<4x32xf32>
    %87 = arith.addf %85, %86 : vector<4x32xf32>
    %cst_43 = arith.constant 0.000000e+00 : f32
    %88 = vector.broadcast %cst_43 : f32 to vector<4x32xf32>
    %89 = arith.cmpf oge, %87, %88 : vector<4x32xf32>
    %cst_44 = arith.constant 0.00999999977 : f32
    %90 = vector.broadcast %cst_44 : f32 to vector<4x32xf32>
    %91 = arith.mulf %90, %87 : vector<4x32xf32>
    %92 = arith.select %89, %87, %91 : vector<4x32xi1>, vector<4x32xf32>
    %c0_45 = arith.constant 0 : index
    %c0_46 = arith.constant 0 : index
    %c0_47 = arith.constant 0 : index
    %c5 = arith.constant 5 : index
    %c0_48 = arith.constant 0 : index
    %93 = vector.load %arg6[%c0_45, %c0_46, %c0_47, %c5, %c0_48] : memref<1x1x4x8x32xf32, #tpu.memory_space<vmem>>, vector<1x1x4x1x32xf32>
    %94 = vector.shape_cast %93 : vector<1x1x4x1x32xf32> to vector<4x32xf32>
    %95 = vector.shape_cast %92 : vector<4x32xf32> to vector<1x1x4x1x32xf32>
    tpu.vector_store %arg6[%c0_45, %c0_46, %c0_47, %c5, %c0_48], %95 {strides = array<i32>} : memref<1x1x4x8x32xf32, #tpu.memory_space<vmem>>, vector<1x1x4x1x32xf32>,
    %96 = vector.extract_strided_slice %17 {offsets = [0, 6, 0], sizes = [36, 1, 32], strides = [1, 1, 1]} : vector<36x8x32xbf16> to vector<36x1x32xbf16>
    %97 = vector.shape_cast %96 : vector<36x1x32xbf16> to vector<36x32xbf16>
    %cst_49 = arith.constant dense<0.000000e+00> : vector<4x32xf32>
    %98 = tpu.matmul %3, %97, %cst_49 {dimension_numbers = #tpu.dot_dimension_numbers<[1], [0], [0], [1], [0, 0, 1, 1], [], []>} : vector<4x36xbf16>, vector<36x32xbf16>, vector<4x32xf32> -> vector<4x32xf32>
    %99 = vector.broadcast %4 : vector<4x1xf32> to vector<4x32xf32>
    %100 = arith.addf %98, %99 : vector<4x32xf32>
    %cst_50 = arith.constant 0.000000e+00 : f32
    %101 = vector.broadcast %cst_50 : f32 to vector<4x32xf32>
    %102 = arith.cmpf oge, %100, %101 : vector<4x32xf32>
    %cst_51 = arith.constant 0.00999999977 : f32
    %103 = vector.broadcast %cst_51 : f32 to vector<4x32xf32>
    %104 = arith.mulf %103, %100 : vector<4x32xf32>
    %105 = arith.select %102, %100, %104 : vector<4x32xi1>, vector<4x32xf32>
    %c0_52 = arith.constant 0 : index
    %c0_53 = arith.constant 0 : index
    %c0_54 = arith.constant 0 : index
    %c6 = arith.constant 6 : index
    %c0_55 = arith.constant 0 : index
    %106 = vector.load %arg6[%c0_52, %c0_53, %c0_54, %c6, %c0_55] : memref<1x1x4x8x32xf32, #tpu.memory_space<vmem>>, vector<1x1x4x1x32xf32>
    %107 = vector.shape_cast %106 : vector<1x1x4x1x32xf32> to vector<4x32xf32>
    %108 = vector.shape_cast %105 : vector<4x32xf32> to vector<1x1x4x1x32xf32>
    tpu.vector_store %arg6[%c0_52, %c0_53, %c0_54, %c6, %c0_55], %108 {strides = array<i32>} : memref<1x1x4x8x32xf32, #tpu.memory_space<vmem>>, vector<1x1x4x1x32xf32>,
    %109 = vector.extract_strided_slice %17 {offsets = [0, 7, 0], sizes = [36, 1, 32], strides = [1, 1, 1]} : vector<36x8x32xbf16> to vector<36x1x32xbf16>
    %110 = vector.shape_cast %109 : vector<36x1x32xbf16> to vector<36x32xbf16>
    %cst_56 = arith.constant dense<0.000000e+00> : vector<4x32xf32>
    %111 = tpu.matmul %3, %110, %cst_56 {dimension_numbers = #tpu.dot_dimension_numbers<[1], [0], [0], [1], [0, 0, 1, 1], [], []>} : vector<4x36xbf16>, vector<36x32xbf16>, vector<4x32xf32> -> vector<4x32xf32>
    %112 = vector.broadcast %4 : vector<4x1xf32> to vector<4x32xf32>
    %113 = arith.addf %111, %112 : vector<4x32xf32>
    %cst_57 = arith.constant 0.000000e+00 : f32
    %114 = vector.broadcast %cst_57 : f32 to vector<4x32xf32>
    %115 = arith.cmpf oge, %113, %114 : vector<4x32xf32>
    %cst_58 = arith.constant 0.00999999977 : f32
    %116 = vector.broadcast %cst_58 : f32 to vector<4x32xf32>
    %117 = arith.mulf %116, %113 : vector<4x32xf32>
    %118 = arith.select %115, %113, %117 : vector<4x32xi1>, vector<4x32xf32>
    %c0_59 = arith.constant 0 : index
    %c0_60 = arith.constant 0 : index
    %c0_61 = arith.constant 0 : index
    %c7 = arith.constant 7 : index
    %c0_62 = arith.constant 0 : index
    %119 = vector.load %arg6[%c0_59, %c0_60, %c0_61, %c7, %c0_62] : memref<1x1x4x8x32xf32, #tpu.memory_space<vmem>>, vector<1x1x4x1x32xf32>
    %120 = vector.shape_cast %119 : vector<1x1x4x1x32xf32> to vector<4x32xf32>
    %121 = vector.shape_cast %118 : vector<4x32xf32> to vector<1x1x4x1x32xf32>
    tpu.vector_store %arg6[%c0_59, %c0_60, %c0_61, %c7, %c0_62], %121 {strides = array<i32>} : memref<1x1x4x8x32xf32, #tpu.memory_space<vmem>>, vector<1x1x4x1x32xf32>,
    return
  }
  func.func @transform_0(%arg0: i32, %arg1: i32, %arg2: i32) -> (i32, i32, i32, i32) {
    %c0_i32 = arith.constant 0 : i32
    %c0_i32_0 = arith.constant 0 : i32
    %c0_i32_1 = arith.constant 0 : i32
    %c0_i32_2 = arith.constant 0 : i32
    return %arg0, %c0_i32, %c0_i32_0, %c0_i32_1 : i32, i32, i32, i32
  }
  func.func @transform_1(%arg0: i32, %arg1: i32, %arg2: i32) -> (i32, i32, i32) {
    %c0_i32 = arith.constant 0 : i32
    %c0_i32_0 = arith.constant 0 : i32
    %c0_i32_1 = arith.constant 0 : i32
    return %arg1, %c0_i32, %c0_i32_0 : i32, i32, i32
  }
  func.func @transform_2(%arg0: i32, %arg1: i32, %arg2: i32) -> (i32, i32) {
    %c0_i32 = arith.constant 0 : i32
    %c0_i32_0 = arith.constant 0 : i32
    %c0_i32_1 = arith.constant 0 : i32
    return %c0_i32, %c0_i32_0 : i32, i32
  }
  func.func @transform_3(%arg0: i32, %arg1: i32, %arg2: i32) -> (i32, i32, i32, i32, i32) {
    %c0_i32 = arith.constant 0 : i32
    %c0_i32_0 = arith.constant 0 : i32
    %c0_i32_1 = arith.constant 0 : i32
    return %arg1, %arg0, %c0_i32, %arg2, %c0_i32_0 : i32, i32, i32, i32, i32
  }
}

module attributes {stable_mosaic.version = 11 : i64} {
  func.func @_conv3x3_rows_kernel(%arg0: i32, %arg1: i32, %arg2: i32, %arg3: memref<1x4x66x66xbf16, #tpu.memory_space<vmem>>, %arg4: memref<1x4x36xbf16, #tpu.memory_space<vmem>>, %arg5: memref<4x1xf32, #tpu.memory_space<vmem>>, %arg6: memref<1x1x4x8x64xf32, #tpu.memory_space<vmem>>) attributes {dimension_semantics = [#tpu.dimension_semantics<parallel>, #tpu.dimension_semantics<parallel>, #tpu.dimension_semantics<parallel>], iteration_bounds = array<i64: 2, 1, 8>, scalar_prefetch = 0 : i64, scratch_operands = 0 : i64, tpu.core_type = #tpu.core_type<tc>, window_params = [{transform_indices = @transform_0, window_bounds = array<i64: 1, 4, 66, 66>}, {transform_indices = @transform_1, window_bounds = array<i64: 1, 4, 36>}, {pipeline_mode = #tpu.pipeline_mode<synchronous>, transform_indices = @transform_2, window_bounds = array<i64: 4, 1>}, {transform_indices = @transform_3, window_bounds = array<i64: 1, 1, 4, 8, 64>}]} {
    %c8_i32 = arith.constant 8 : i32
    %0 = arith.muli %arg2, %c8_i32 : i32
    %1 = tpu.assume_multiple %0, 8 : i32
    %c0 = arith.constant 0 : index
    %c0_0 = arith.constant 0 : index
    %c0_1 = arith.constant 0 : index
    %2 = vector.load %arg4[%c0, %c0_0, %c0_1] : memref<1x4x36xbf16, #tpu.memory_space<vmem>>, vector<1x4x36xbf16>
    %3 = vector.shape_cast %2 : vector<1x4x36xbf16> to vector<4x36xbf16>
    %c0_2 = arith.constant 0 : index
    %c0_3 = arith.constant 0 : index
    %4 = vector.load %arg5[%c0_2, %c0_3] : memref<4x1xf32, #tpu.memory_space<vmem>>, vector<4x1xf32>
    %c0_4 = arith.constant 0 : index
    %c0_5 = arith.constant 0 : index
    %5 = arith.index_cast %1 : i32 to index
    %c0_6 = arith.constant 0 : index
    %6 = vector.load %arg3[%c0_4, %c0_5, %5, %c0_6] : memref<1x4x66x66xbf16, #tpu.memory_space<vmem>>, vector<1x4x10x66xbf16>
    %7 = vector.shape_cast %6 : vector<1x4x10x66xbf16> to vector<4x10x66xbf16>
    %8 = vector.extract_strided_slice %7 {offsets = [0, 0, 0], sizes = [4, 8, 64], strides = [1, 1, 1]} : vector<4x10x66xbf16> to vector<4x8x64xbf16>
    %9 = vector.extract_strided_slice %7 {offsets = [0, 0, 1], sizes = [4, 8, 64], strides = [1, 1, 1]} : vector<4x10x66xbf16> to vector<4x8x64xbf16>
    %10 = vector.extract_strided_slice %7 {offsets = [0, 0, 2], sizes = [4, 8, 64], strides = [1, 1, 1]} : vector<4x10x66xbf16> to vector<4x8x64xbf16>
    %11 = vector.extract_strided_slice %7 {offsets = [0, 1, 0], sizes = [4, 8, 64], strides = [1, 1, 1]} : vector<4x10x66xbf16> to vector<4x8x64xbf16>
    %12 = vector.extract_strided_slice %7 {offsets = [0, 1, 1], sizes = [4, 8, 64], strides = [1, 1, 1]} : vector<4x10x66xbf16> to vector<4x8x64xbf16>
    %13 = vector.extract_strided_slice %7 {offsets = [0, 1, 2], sizes = [4, 8, 64], strides = [1, 1, 1]} : vector<4x10x66xbf16> to vector<4x8x64xbf16>
    %14 = vector.extract_strided_slice %7 {offsets = [0, 2, 0], sizes = [4, 8, 64], strides = [1, 1, 1]} : vector<4x10x66xbf16> to vector<4x8x64xbf16>
    %15 = vector.extract_strided_slice %7 {offsets = [0, 2, 1], sizes = [4, 8, 64], strides = [1, 1, 1]} : vector<4x10x66xbf16> to vector<4x8x64xbf16>
    %16 = vector.extract_strided_slice %7 {offsets = [0, 2, 2], sizes = [4, 8, 64], strides = [1, 1, 1]} : vector<4x10x66xbf16> to vector<4x8x64xbf16>
    %17 = tpu.concatenate %8, %9, %10, %11, %12, %13, %14, %15, %16 in 0 : vector<4x8x64xbf16>, vector<4x8x64xbf16>, vector<4x8x64xbf16>, vector<4x8x64xbf16>, vector<4x8x64xbf16>, vector<4x8x64xbf16>, vector<4x8x64xbf16>, vector<4x8x64xbf16>, vector<4x8x64xbf16> -> vector<36x8x64xbf16>
    %18 = vector.extract_strided_slice %17 {offsets = [0, 0, 0], sizes = [36, 1, 64], strides = [1, 1, 1]} : vector<36x8x64xbf16> to vector<36x1x64xbf16>
    %19 = vector.shape_cast %18 : vector<36x1x64xbf16> to vector<36x64xbf16>
    %cst = arith.constant dense<0.000000e+00> : vector<4x64xf32>
    %20 = tpu.matmul %3, %19, %cst {dimension_numbers = #tpu.dot_dimension_numbers<[1], [0], [0], [1], [0, 0, 1, 1], [], []>} : vector<4x36xbf16>, vector<36x64xbf16>, vector<4x64xf32> -> vector<4x64xf32>
    %21 = vector.broadcast %4 : vector<4x1xf32> to vector<4x64xf32>
    %22 = arith.addf %20, %21 : vector<4x64xf32>
    %c0_7 = arith.constant 0 : index
    %c0_8 = arith.constant 0 : index
    %c0_9 = arith.constant 0 : index
    %c0_10 = arith.constant 0 : index
    %c0_11 = arith.constant 0 : index
    %23 = vector.load %arg6[%c0_7, %c0_8, %c0_9, %c0_10, %c0_11] : memref<1x1x4x8x64xf32, #tpu.memory_space<vmem>>, vector<1x1x4x1x64xf32>
    %24 = vector.shape_cast %23 : vector<1x1x4x1x64xf32> to vector<4x64xf32>
    %25 = vector.shape_cast %22 : vector<4x64xf32> to vector<1x1x4x1x64xf32>
    tpu.vector_store %arg6[%c0_7, %c0_8, %c0_9, %c0_10, %c0_11], %25 {strides = array<i32>} : memref<1x1x4x8x64xf32, #tpu.memory_space<vmem>>, vector<1x1x4x1x64xf32>,
    %26 = vector.extract_strided_slice %17 {offsets = [0, 1, 0], sizes = [36, 1, 64], strides = [1, 1, 1]} : vector<36x8x64xbf16> to vector<36x1x64xbf16>
    %27 = vector.shape_cast %26 : vector<36x1x64xbf16> to vector<36x64xbf16>
    %cst_12 = arith.constant dense<0.000000e+00> : vector<4x64xf32>
    %28 = tpu.matmul %3, %27, %cst_12 {dimension_numbers = #tpu.dot_dimension_numbers<[1], [0], [0], [1], [0, 0, 1, 1], [], []>} : vector<4x36xbf16>, vector<36x64xbf16>, vector<4x64xf32> -> vector<4x64xf32>
    %29 = vector.broadcast %4 : vector<4x1xf32> to vector<4x64xf32>
    %30 = arith.addf %28, %29 : vector<4x64xf32>
    %c0_13 = arith.constant 0 : index
    %c0_14 = arith.constant 0 : index
    %c0_15 = arith.constant 0 : index
    %c1 = arith.constant 1 : index
    %c0_16 = arith.constant 0 : index
    %31 = vector.load %arg6[%c0_13, %c0_14, %c0_15, %c1, %c0_16] : memref<1x1x4x8x64xf32, #tpu.memory_space<vmem>>, vector<1x1x4x1x64xf32>
    %32 = vector.shape_cast %31 : vector<1x1x4x1x64xf32> to vector<4x64xf32>
    %33 = vector.shape_cast %30 : vector<4x64xf32> to vector<1x1x4x1x64xf32>
    tpu.vector_store %arg6[%c0_13, %c0_14, %c0_15, %c1, %c0_16], %33 {strides = array<i32>} : memref<1x1x4x8x64xf32, #tpu.memory_space<vmem>>, vector<1x1x4x1x64xf32>,
    %34 = vector.extract_strided_slice %17 {offsets = [0, 2, 0], sizes = [36, 1, 64], strides = [1, 1, 1]} : vector<36x8x64xbf16> to vector<36x1x64xbf16>
    %35 = vector.shape_cast %34 : vector<36x1x64xbf16> to vector<36x64xbf16>
    %cst_17 = arith.constant dense<0.000000e+00> : vector<4x64xf32>
    %36 = tpu.matmul %3, %35, %cst_17 {dimension_numbers = #tpu.dot_dimension_numbers<[1], [0], [0], [1], [0, 0, 1, 1], [], []>} : vector<4x36xbf16>, vector<36x64xbf16>, vector<4x64xf32> -> vector<4x64xf32>
    %37 = vector.broadcast %4 : vector<4x1xf32> to vector<4x64xf32>
    %38 = arith.addf %36, %37 : vector<4x64xf32>
    %c0_18 = arith.constant 0 : index
    %c0_19 = arith.constant 0 : index
    %c0_20 = arith.constant 0 : index
    %c2 = arith.constant 2 : index
    %c0_21 = arith.constant 0 : index
    %39 = vector.load %arg6[%c0_18, %c0_19, %c0_20, %c2, %c0_21] : memref<1x1x4x8x64xf32, #tpu.memory_space<vmem>>, vector<1x1x4x1x64xf32>
    %40 = vector.shape_cast %39 : vector<1x1x4x1x64xf32> to vector<4x64xf32>
    %41 = vector.shape_cast %38 : vector<4x64xf32> to vector<1x1x4x1x64xf32>
    tpu.vector_store %arg6[%c0_18, %c0_19, %c0_20, %c2, %c0_21], %41 {strides = array<i32>} : memref<1x1x4x8x64xf32, #tpu.memory_space<vmem>>, vector<1x1x4x1x64xf32>,
    %42 = vector.extract_strided_slice %17 {offsets = [0, 3, 0], sizes = [36, 1, 64], strides = [1, 1, 1]} : vector<36x8x64xbf16> to vector<36x1x64xbf16>
    %43 = vector.shape_cast %42 : vector<36x1x64xbf16> to vector<36x64xbf16>
    %cst_22 = arith.constant dense<0.000000e+00> : vector<4x64xf32>
    %44 = tpu.matmul %3, %43, %cst_22 {dimension_numbers = #tpu.dot_dimension_numbers<[1], [0], [0], [1], [0, 0, 1, 1], [], []>} : vector<4x36xbf16>, vector<36x64xbf16>, vector<4x64xf32> -> vector<4x64xf32>
    %45 = vector.broadcast %4 : vector<4x1xf32> to vector<4x64xf32>
    %46 = arith.addf %44, %45 : vector<4x64xf32>
    %c0_23 = arith.constant 0 : index
    %c0_24 = arith.constant 0 : index
    %c0_25 = arith.constant 0 : index
    %c3 = arith.constant 3 : index
    %c0_26 = arith.constant 0 : index
    %47 = vector.load %arg6[%c0_23, %c0_24, %c0_25, %c3, %c0_26] : memref<1x1x4x8x64xf32, #tpu.memory_space<vmem>>, vector<1x1x4x1x64xf32>
    %48 = vector.shape_cast %47 : vector<1x1x4x1x64xf32> to vector<4x64xf32>
    %49 = vector.shape_cast %46 : vector<4x64xf32> to vector<1x1x4x1x64xf32>
    tpu.vector_store %arg6[%c0_23, %c0_24, %c0_25, %c3, %c0_26], %49 {strides = array<i32>} : memref<1x1x4x8x64xf32, #tpu.memory_space<vmem>>, vector<1x1x4x1x64xf32>,
    %50 = vector.extract_strided_slice %17 {offsets = [0, 4, 0], sizes = [36, 1, 64], strides = [1, 1, 1]} : vector<36x8x64xbf16> to vector<36x1x64xbf16>
    %51 = vector.shape_cast %50 : vector<36x1x64xbf16> to vector<36x64xbf16>
    %cst_27 = arith.constant dense<0.000000e+00> : vector<4x64xf32>
    %52 = tpu.matmul %3, %51, %cst_27 {dimension_numbers = #tpu.dot_dimension_numbers<[1], [0], [0], [1], [0, 0, 1, 1], [], []>} : vector<4x36xbf16>, vector<36x64xbf16>, vector<4x64xf32> -> vector<4x64xf32>
    %53 = vector.broadcast %4 : vector<4x1xf32> to vector<4x64xf32>
    %54 = arith.addf %52, %53 : vector<4x64xf32>
    %c0_28 = arith.constant 0 : index
    %c0_29 = arith.constant 0 : index
    %c0_30 = arith.constant 0 : index
    %c4 = arith.constant 4 : index
    %c0_31 = arith.constant 0 : index
    %55 = vector.load %arg6[%c0_28, %c0_29, %c0_30, %c4, %c0_31] : memref<1x1x4x8x64xf32, #tpu.memory_space<vmem>>, vector<1x1x4x1x64xf32>
    %56 = vector.shape_cast %55 : vector<1x1x4x1x64xf32> to vector<4x64xf32>
    %57 = vector.shape_cast %54 : vector<4x64xf32> to vector<1x1x4x1x64xf32>
    tpu.vector_store %arg6[%c0_28, %c0_29, %c0_30, %c4, %c0_31], %57 {strides = array<i32>} : memref<1x1x4x8x64xf32, #tpu.memory_space<vmem>>, vector<1x1x4x1x64xf32>,
    %58 = vector.extract_strided_slice %17 {offsets = [0, 5, 0], sizes = [36, 1, 64], strides = [1, 1, 1]} : vector<36x8x64xbf16> to vector<36x1x64xbf16>
    %59 = vector.shape_cast %58 : vector<36x1x64xbf16> to vector<36x64xbf16>
    %cst_32 = arith.constant dense<0.000000e+00> : vector<4x64xf32>
    %60 = tpu.matmul %3, %59, %cst_32 {dimension_numbers = #tpu.dot_dimension_numbers<[1], [0], [0], [1], [0, 0, 1, 1], [], []>} : vector<4x36xbf16>, vector<36x64xbf16>, vector<4x64xf32> -> vector<4x64xf32>
    %61 = vector.broadcast %4 : vector<4x1xf32> to vector<4x64xf32>
    %62 = arith.addf %60, %61 : vector<4x64xf32>
    %c0_33 = arith.constant 0 : index
    %c0_34 = arith.constant 0 : index
    %c0_35 = arith.constant 0 : index
    %c5 = arith.constant 5 : index
    %c0_36 = arith.constant 0 : index
    %63 = vector.load %arg6[%c0_33, %c0_34, %c0_35, %c5, %c0_36] : memref<1x1x4x8x64xf32, #tpu.memory_space<vmem>>, vector<1x1x4x1x64xf32>
    %64 = vector.shape_cast %63 : vector<1x1x4x1x64xf32> to vector<4x64xf32>
    %65 = vector.shape_cast %62 : vector<4x64xf32> to vector<1x1x4x1x64xf32>
    tpu.vector_store %arg6[%c0_33, %c0_34, %c0_35, %c5, %c0_36], %65 {strides = array<i32>} : memref<1x1x4x8x64xf32, #tpu.memory_space<vmem>>, vector<1x1x4x1x64xf32>,
    %66 = vector.extract_strided_slice %17 {offsets = [0, 6, 0], sizes = [36, 1, 64], strides = [1, 1, 1]} : vector<36x8x64xbf16> to vector<36x1x64xbf16>
    %67 = vector.shape_cast %66 : vector<36x1x64xbf16> to vector<36x64xbf16>
    %cst_37 = arith.constant dense<0.000000e+00> : vector<4x64xf32>
    %68 = tpu.matmul %3, %67, %cst_37 {dimension_numbers = #tpu.dot_dimension_numbers<[1], [0], [0], [1], [0, 0, 1, 1], [], []>} : vector<4x36xbf16>, vector<36x64xbf16>, vector<4x64xf32> -> vector<4x64xf32>
    %69 = vector.broadcast %4 : vector<4x1xf32> to vector<4x64xf32>
    %70 = arith.addf %68, %69 : vector<4x64xf32>
    %c0_38 = arith.constant 0 : index
    %c0_39 = arith.constant 0 : index
    %c0_40 = arith.constant 0 : index
    %c6 = arith.constant 6 : index
    %c0_41 = arith.constant 0 : index
    %71 = vector.load %arg6[%c0_38, %c0_39, %c0_40, %c6, %c0_41] : memref<1x1x4x8x64xf32, #tpu.memory_space<vmem>>, vector<1x1x4x1x64xf32>
    %72 = vector.shape_cast %71 : vector<1x1x4x1x64xf32> to vector<4x64xf32>
    %73 = vector.shape_cast %70 : vector<4x64xf32> to vector<1x1x4x1x64xf32>
    tpu.vector_store %arg6[%c0_38, %c0_39, %c0_40, %c6, %c0_41], %73 {strides = array<i32>} : memref<1x1x4x8x64xf32, #tpu.memory_space<vmem>>, vector<1x1x4x1x64xf32>,
    %74 = vector.extract_strided_slice %17 {offsets = [0, 7, 0], sizes = [36, 1, 64], strides = [1, 1, 1]} : vector<36x8x64xbf16> to vector<36x1x64xbf16>
    %75 = vector.shape_cast %74 : vector<36x1x64xbf16> to vector<36x64xbf16>
    %cst_42 = arith.constant dense<0.000000e+00> : vector<4x64xf32>
    %76 = tpu.matmul %3, %75, %cst_42 {dimension_numbers = #tpu.dot_dimension_numbers<[1], [0], [0], [1], [0, 0, 1, 1], [], []>} : vector<4x36xbf16>, vector<36x64xbf16>, vector<4x64xf32> -> vector<4x64xf32>
    %77 = vector.broadcast %4 : vector<4x1xf32> to vector<4x64xf32>
    %78 = arith.addf %76, %77 : vector<4x64xf32>
    %c0_43 = arith.constant 0 : index
    %c0_44 = arith.constant 0 : index
    %c0_45 = arith.constant 0 : index
    %c7 = arith.constant 7 : index
    %c0_46 = arith.constant 0 : index
    %79 = vector.load %arg6[%c0_43, %c0_44, %c0_45, %c7, %c0_46] : memref<1x1x4x8x64xf32, #tpu.memory_space<vmem>>, vector<1x1x4x1x64xf32>
    %80 = vector.shape_cast %79 : vector<1x1x4x1x64xf32> to vector<4x64xf32>
    %81 = vector.shape_cast %78 : vector<4x64xf32> to vector<1x1x4x1x64xf32>
    tpu.vector_store %arg6[%c0_43, %c0_44, %c0_45, %c7, %c0_46], %81 {strides = array<i32>} : memref<1x1x4x8x64xf32, #tpu.memory_space<vmem>>, vector<1x1x4x1x64xf32>,
    return
  }
  func.func @transform_0(%arg0: i32, %arg1: i32, %arg2: i32) -> (i32, i32, i32, i32) {
    %c0_i32 = arith.constant 0 : i32
    %c0_i32_0 = arith.constant 0 : i32
    %c0_i32_1 = arith.constant 0 : i32
    %c0_i32_2 = arith.constant 0 : i32
    return %arg0, %c0_i32, %c0_i32_0, %c0_i32_1 : i32, i32, i32, i32
  }
  func.func @transform_1(%arg0: i32, %arg1: i32, %arg2: i32) -> (i32, i32, i32) {
    %c0_i32 = arith.constant 0 : i32
    %c0_i32_0 = arith.constant 0 : i32
    %c0_i32_1 = arith.constant 0 : i32
    return %arg1, %c0_i32, %c0_i32_0 : i32, i32, i32
  }
  func.func @transform_2(%arg0: i32, %arg1: i32, %arg2: i32) -> (i32, i32) {
    %c0_i32 = arith.constant 0 : i32
    %c0_i32_0 = arith.constant 0 : i32
    %c0_i32_1 = arith.constant 0 : i32
    return %c0_i32, %c0_i32_0 : i32, i32
  }
  func.func @transform_3(%arg0: i32, %arg1: i32, %arg2: i32) -> (i32, i32, i32, i32, i32) {
    %c0_i32 = arith.constant 0 : i32
    %c0_i32_0 = arith.constant 0 : i32
    %c0_i32_1 = arith.constant 0 : i32
    return %arg1, %arg0, %c0_i32, %arg2, %c0_i32_0 : i32, i32, i32, i32, i32
  }
}

</mosaic_0001>

<bundles_post_ra>
// kernel: hyper_decoder_forward.3
= control target key start
LH: loop header
LB: loop body
LE: loop exit
PB: predicated region body
PF: predicated region fallthrough
CT: control target
= control target key end

     0   :  { %s2155_s12 = smov 0   ;;  %s2157_s13 = smov 0   ;;  %s3332_s0 = inlined_call_operand.vmem [shape: bf16[2,4,18,18], index: 0, kind: input, shape index: {}]   ;;  %s3333_s1 = inlined_call_operand.vmem [shape: bf16[4,4,36], index: 1, kind: input, shape index: {}]   ;;  %s3334_s2 = inlined_call_operand.vmem [shape: f32[4,1], index: 2, kind: input, shape index: {}]   ;;  %s3335_s3 = inlined_call_operand.vmem [shape: f32[4,2,4,16,16], index: 3, kind: output, shape index: {}]  }
   0x1   :  { %s2159_s14 = smov 0   ;;  %s2161_s15 = smov 0  }
   0x2   :  { %s2163_s16 = smov 0   ;;  %s2165_s17 = smov 0  }
   0x3   :  { %s2167_s18 = smov 0   ;;  %s2169_s19 = smov 0  }
   0x4   :  { %s2171_s20 = smov 0  }
   0x5 LB: > { %s25_s21 = sadd.s32 1, %s2115_s17  ;;  %s28_s22 = sadd.s32 1, %s2119_s18  ;;  %s2127_s20 = sphi %s2171_s20, %s13_s20   ;;  %s2123_s19 = sphi %s2169_s19, %s3391_s19   ;;  %s2119_s18 = sphi %s2167_s18, %s3390_s18   ;;  %s2115_s17 = sphi %s2165_s17, %s3389_s17   ;;  %s2111_s16 = sphi %s2163_s16, %s3388_s16   ;;  %s2107_s15 = sphi %s2161_s15, %s3387_s15   ;;  %s2103_s14 = sphi %s2159_s14, %s3386_s14   ;;  %s2099_s13 = sphi %s2157_s13, %s3385_s13   ;;  %s2095_s12 = sphi %s2155_s12, %s3384_s12  }
   0x6   : > { %p26_p0 = scmp.ge.s32.totalorder %s25_s21, 2  ;;  %s1797_s23 = sadd.s32 4294967295, %s2127_s20  }
   0x7   : > { %s32_s24 = sadd.s32 1, %s2123_s19  ;;  %p126_p1 = scmp.ne.s32.totalorder %s2099_s13, %s2095_s12 }
   0x8   : > { %s3393_s21 = smov (%p26_p0, %s25_s21), 0  ;;  %s3395_s22 = smov (!%p26_p0, %s28_s22), %s2119_s18 }
   0x9   : > { %p30_p2 = scmp.ge.s32.totalorder %s3395_s22, 4  ;;  %p127_p3 = scmp.eq.s32.totalorder %s1797_s23, 15 }
   0xa   : > { %p1801_p4 = scmp.ge.s32.totalorder %s2127_s20, 1  ;;  %p169_p5 = scmp.lt.s32.totalorder %s2127_s20, 17 }
   0xb   : > { %s3397_s22 = smov (%p30_p2, %s3395_s22), 0  ;;  %s3399_s24 = smov (!%p30_p2, %s32_s24), %s2123_s19 }
   0xc   : > { %p2214_p6 = por %p127_p3, %p126_p1  ;;  %p34_p7 = scmp.ge.s32.totalorder %s3399_s24, 2 }
   0xd   : > { %p170_p8 = pnand %p1801_p4, %p169_p5  ;;  %s109_s26 = ssub.s32 %s2119_s18, %s3397_s22 }
   0xe   : > { %s3401_s24 = smov (%p34_p7, %s3399_s24), 0  ;;  %s112_s27 = ssub.s32 %s2115_s17, %s3393_s21 }
   0xf   : > { %s110_s28 = ssub.s32 %s2123_s19, %s3401_s24  ;;  %s116_s4 = sadd.s32 1, %s2099_s13 }
  0x10   : > { %s111_s29 = sor.u32 %s110_s28, %s109_s26  ;;  %173 = sbr.rel (%p170_p8) target bundleno = 493 (0x1ed), region = 32 }
  0x11   : > { %s113_s30 = sor.u32 %s112_s27, %s111_s29 }
  0x12   : > { %p114_p9 = scmp.eq.s32.totalorder %s113_s30, 0 }
  0x14   : > { %s2228_s5 = scalar_select %p114_p9, %s2099_s13, %s116_s4  }
  0x15   : > { %p196_p10 = scmp.lt.s32.totalorder %s2111_s16, 1  ;;  %s1805_s6 = sshll.u32 %s2103_s14, 3  ;;  %vm320_vm0 = vcmask 1042432   ;;  %vm321_vm1 = vcmask 1046532   ;;  %vm241_vm3 = vsmask.f32 3328 }
  0x16   : > { %s209_s7 = sshra.s32 %s1805_s6, 3  ;;  %vm2236_vm2 = vmor %vm320_vm0, %vm321_vm1  ;;  %s2129_s28 = smov 126   ;;  %vm242_vm4 = vsmask.f32 7440  ;;  %vm469_vm6 = vcmask 1041409   ;;  %vm472_vm7 = vcmask 1042434  }
  0x17   : > { %s197_s8 = scalar_select %p196_p10, %s2111_s16, 1  ;;  %vm2269_vm5 = vmor %vm241_vm3, %vm242_vm4  ;;  %v3336_v63 = vmov 0.0   ;;  %vm475_vm8 = vcmask 1043459   ;;  %vm2132_vm9 = vmmov 0   ;;  %vm478_vm10 = vcmask 1044484  }
  0x18   : > { %s1806_s10 = sshll.u32 %s209_s7, 2  ;;  %s2130_s29 = smov 127   ;;  %1893 = vmatprep.subr.bf16.mxu0 %v3336_v63  ;;  %1903 = vmatprep.subr.bf16.mxu1 %v3336_v63  ;;  %vm546_vm11 = vcmask 1041408   ;;  %vm481_vm12 = vcmask 1045509   ;;  %vm484_vm13 = vcmask 1046534   ;;  %vm487_vm14 = vcmask 1047559  }
  0x19   : > { %s1973_s9 = smul.u32 48, %s197_s8  ;;  %1899 = vmatprep.mubr.msk.bf16.mxu0 %vm2132_vm9, %v3336_v63  ;;  %1909 = vmatprep.mubr.msk.bf16.mxu1 %vm2132_vm9, %v3336_v63  ;;  %p201_p11 = scmp.lt.s32.totalorder %s2107_s15, 3  ;;  %vm542_vm15 = vcmask 293888  }
  0x1a   : > { %s193_s11 = sand.u32 1, %s2095_s12  }
  0x1b   : > { %s200_s26 = scalar_lea.vmem %s3332_s0, %s1973_s9  ;;  %s1802_s23 = sshll.u32 %s193_s11, 5 }
  0x1c   : > { %s212_s27 = scalar_lea.vmem %s200_s26, %s1806_s10  ;;  %s3202_s12 = scalar_lea.vmem [#allocation2], %s1802_s23 }
  0x1d   : > { %v2240_v1 = vld [vmem:[%s212_s27] sm:$0xf]  ;;  %v214_v2 = vld [vmem:[%s212_s27 + $0x4] sm:$0x1]  ;;  %v2242_v3 = vld [vmem:[%s212_s27 + $0xc] sm:$0xf] }
  0x1e   : > { %v1807_v4 = vrot.slane %v2240_v1, 9  ;;  %v325_v5 = vrot.slane %v214_v2, 5  ;;  %v216_v6 = vld [vmem:[%s212_s27 + $0x10] sm:$0x1]  ;;  %v1808_v7 = vrot.slane %v2242_v3, 9  ;;  %v245_v9 = vshrl.u32 %v2240_v1, 16 }
  0x1f   : > { %v329_v8 = vrot.slane %v216_v6, 5  ;;  %v248_v10 = vshll.u32 %v2240_v1, 16  ;;  %v2248_v11 = vld [vmem:[%s212_s27 + $0x18] sm:$0xf]  ;;  %v254_v13 = vshll.u32 %v214_v2, 16  ;;  %v259_v20 = vshrl.u32 %v2242_v3, 16 }
  0x20   : > { %v326_v12 = vsel %vm2236_vm2, %v1807_v4, %v325_v5  ;;  %v218_v14 = vld [vmem:[%s212_s27 + $0x1c] sm:$0x1]  ;;  %v247_v15 = vrot.slane %v245_v9, 4  ;;  %v1809_v18 = vrot.slane %v2248_v11, 9  ;;  %v262_v21 = vshll.u32 %v2242_v3, 16  ;;  %s2796_s6 = scalar_select %p201_p11, %s2107_s15, 3 }
  0x21   : > { %347 = vrot.lane.b32.xlu0 %v326_v12, %s2129_s28  ;;  %339 = vrot.lane.b32.xlu1 %v326_v12, %s2130_s29  ;;  %v2256_v16 = vsel %vm2236_vm2, %v1808_v7, %v329_v8  ;;  %v250_v17 = vrot.slane %v248_v10, 5  ;;  %v333_v19 = vrot.slane %v218_v14, 5  ;;  %v2261_v22 = vld [vmem:[%s212_s27 + $0x24] sm:$0xf]  ;;  %v220_v23 = vld [vmem:[%s212_s27 + $0x28] sm:$0x1]  ;;  %v1835_v27 = vcombine.low %v326_v12, %v326_v12 }
  0x22   : > { %v256_v25 = vrot.slane %v254_v13, 5  ;;  %v268_v26 = vshll.u32 %v216_v6, 16  ;;  %v1836_v28 = vcombine.low %v2256_v16, %v2256_v16  ;;  %v261_v30 = vrot.slane %v259_v20, 4  ;;  %s1804_s7 = sshll.u32 %s2796_s6, 1  ;;  %s1856_s26 = sshll.u32 (%p2214_p6), %s2111_s16, 3 }
  0x23   : > { %v251_v24 = vor.u32 %v250_v17, %v247_v15  ;;  %v264_v31 = vrot.slane %v262_v21, 5  ;;  %v2275_v33 = vsel %vm2236_vm2, %v1809_v18, %v333_v19  ;;  %v1810_v34 = vrot.slane %v2261_v22, 9  ;;  %s204_s10 = scalar_lea.vmem %s3333_s1, %s1804_s7  ;;  %s1857_s27 = sshll.u32 (%p2214_p6), %s2107_s15, 4 }
  0x24   : > { %v337_v35 = vrot.slane %v220_v23, 5  ;;  %v1837_v36 = vcombine.low %v2275_v33, %v2275_v33  ;;  %v270_v38 = vrot.slane %v268_v26, 5  ;;  %v273_v39 = vshrl.u32 %v2248_v11, 16 }
  0x25   : > { %349 = vrot.lane.b32.xlu0 %v2256_v16, %s2129_s28  ;;  %v252_v32 = vrot.slane %v251_v24, 4  ;;  %v265_v37 = vor.u32 %v264_v31, %v261_v30  ;;  %v276_v42 = vshll.u32 %v2248_v11, 16  ;;  %v282_v43 = vshll.u32 %v218_v14, 16 }
  0x26   : > { %v2287_v41 = vsel %vm2236_vm2, %v1810_v34, %v337_v35  ;;  %v2296_v46 = vunpack.c.l.b16 %v1835_v27  ;;  %v275_v47 = vrot.slane %v273_v39, 4  ;;  %v287_v49 = vshrl.u32 %v2261_v22, 16 }
  0x27   : > { %v2283_v40 = vsel %vm2269_vm5, %v252_v32, %v256_v25  ;;  %v266_v44 = vrot.slane %v265_v37, 4  ;;  %v1838_v45 = vcombine.low %v2287_v41, %v2287_v41  ;;  %v278_v48 = vrot.slane %v276_v42, 5 }
  0x28   : > { %300 = vrot.lane.b32.xlu1 %v2283_v40, %s2130_s29  ;;  %v2299_v50 = vunpack.c.l.b16 %v1836_v28  ;;  %v2301_v51 = vunpack.c.l.b16 %v1837_v36  ;;  %v290_v53 = vshll.u32 %v2261_v22, 16  ;;  %v284_v55 = vrot.slane %v282_v43, 5 }
  0x29   : > { %351 = vrot.lane.b32.xlu0 %v2275_v33, %s2129_s28  ;;  %v2305_v52 = vsel %vm2269_vm5, %v266_v44, %v270_v38  ;;  %v279_v54 = vor.u32 %v278_v48, %v275_v47  ;;  %v289_v56 = vrot.slane %v287_v49, 4  ;;  %v296_v57 = vshll.u32 %v220_v23, 16 }
  0x2a   : > { %v2310_v58 = vunpack.c.l.b16 %v1838_v45  ;;  %v292_v59 = vrot.slane %v290_v53, 5  ;;  %v517_v60 = vrot.slane %v2299_v50, 7  ;;  %v519_v0 = vrot.slane %v2301_v51, 6 }
  0x2b   : > { %v280_v61 = vrot.slane %v279_v54, 4  ;;  %v298_v62 = vrot.slane %v296_v57, 5  ;;  %v669_v6 = vrot.slane %v2296_v46, 1  ;;  %v671_v9 = vrot.slane %v2301_v51, 7 }
  0x2c   : > { %302 = vrot.lane.b32.xlu1 %v2305_v52, %s2130_s29  ;;  %v293_v2 = vor.u32 %v292_v59, %v289_v56  ;;  %v518_v4 = vsel %vm469_vm6, %v517_v60, %v2296_v46  ;;  %v521_v5 = vrot.slane %v2310_v58, 5  ;;  %v673_v10 = vrot.slane %v2310_v58, 6 }
  0x2d   : > { %353 = vrot.lane.b32.xlu0 %v2287_v41, %s2129_s28  ;;  %v2324_v7 = vsel %vm2269_vm5, %v280_v61, %v284_v55  ;;  %v520_v8 = vsel %vm472_vm7, %v519_v0, %v518_v4  ;;  %v670_v14 = vsel %vm469_vm6, %v2299_v50, %v669_v6  ;;  %v815_v15 = vrot.slane %v2296_v46, 2 }
  0x2e   : > { %v294_v12 = vrot.slane %v293_v2, 4  ;;  %v2334_v13 = vsel %vm475_vm8, %v521_v5, %v520_v8  ;;  %v816_v17 = vrot.slane %v2299_v50, 1  ;;  %v819_v18 = vrot.slane %v2310_v58, 7 }
  0x2f   : > { %v672_v20 = vsel %vm472_vm7, %v671_v9, %v670_v14  ;;  %v961_v25 = vrot.slane %v2296_v46, 3  ;;  %v962_v26 = vrot.slane %v2299_v50, 2  ;;  %v964_v28 = vrot.slane %v2301_v51, 1 }
  0x30   : > { %304 = vrot.lane.b32.xlu1 %v2324_v7, %s2130_s29  ;;  %v2343_v19 = vsel %vm2269_vm5, %v294_v12, %v298_v62  ;;  %v2347_v21 = vsel %vm475_vm8, %v673_v10, %v672_v20  ;;  %v817_v23 = vsel %vm469_vm6, %v816_v17, %v815_v15  ;;  %v1812_v32 = vcombine.low %v2242_v3, %v2242_v3 }
  0x31   : > { %308 = vrot.lane.b32.xlu0 %v2283_v40, %s2129_s28  ;;  %v818_v24 = vsel %vm472_vm7, %v2301_v51, %v817_v23  ;;  %v963_v29 = vsel %vm469_vm6, %v962_v26, %v961_v25  ;;  %v1813_v34 = vcombine.low %v2248_v11, %v2248_v11  ;;  %v1811_v35 = vcombine.low %v2240_v1, %v2240_v1 }
  0x32   : > { %v2359_v27 = vsel %vm475_vm8, %v819_v18, %v818_v24  ;;  %v965_v30 = vsel %vm472_vm7, %v964_v28, %v963_v29  ;;  %v1814_v36 = vcombine.low %v2261_v22, %v2261_v22  ;;  %v2384_v37 = vunpack.c.l.b16 %v1812_v32 }
  0x33   : > { %v2370_v31 = vsel %vm475_vm8, %v2310_v58, %v965_v30  ;;  %v2386_v38 = vunpack.c.l.b16 %v1813_v34  ;;  %v2388_v39 = vunpack.c.l.b16 %v1811_v35  ;;  %v1107_v57 = vrot.slane %v2296_v46, 4 }
  0x34   : > { %306 = vrot.lane.b32.xlu1 %v2343_v19, %s2130_s29  ;;  %v2390_v42 = vunpack.c.l.b16 %v1814_v36  ;;  %v468_v43 = vrot.slane %v2384_v37, 7  ;;  %v1108_v59 = vrot.slane %v2299_v50, 3  ;;  %v774_v62 = vrot.slane %v2384_v37, 1 }
  0x35   : > { %233 = vrot.lane.b32.xlu0 %v2240_v1, %s2129_s28  ;;  %v627_v47 = vrot.slane %v2388_v39, 1  ;;  %v629_v49 = vrot.slane %v2386_v38, 7  ;;  %v773_v61 = vrot.slane %v2388_v39, 2  ;;  %v1254_v4 = vrot.slane %v2296_v46, 5 }
  0x36   : > { %v470_v44 = vsel %vm469_vm6, %v468_v43, %v2388_v39  ;;  %v474_v45 = vrot.slane %v2390_v42, 5  ;;  %v631_v54 = vrot.slane %v2390_v42, 6  ;;  %v777_v0 = vrot.slane %v2390_v42, 7 }
  0x37   : > { %v628_v53 = vsel %vm469_vm6, %v2384_v37, %v627_v47  ;;  %v775_v2 = vsel %vm469_vm6, %v774_v62, %v773_v61  ;;  %v1255_v5 = vrot.slane %v2299_v50, 4  ;;  %v1259_v8 = vrot.slane %v2310_v58, 2 }
  0x38   : > { %235 = vrot.lane.b32.xlu1 %v2242_v3, %s2129_s28  ;;  %v630_v55 = vsel %vm472_vm7, %v629_v49, %v628_v53  ;;  %v776_v6 = vsel %vm472_vm7, %v2386_v38, %v775_v2  ;;  %v919_v10 = vrot.slane %v2388_v39, 3  ;;  %v920_v12 = vrot.slane %v2384_v37, 2 }
  0x39   : > { %310 = vrot.lane.b32.xlu0 %v2305_v52, %s2129_s28  ;;  %v2416_v56 = vsel %vm475_vm8, %v631_v54, %v630_v55  ;;  %v2452_v9 = vsel %vm475_vm8, %v777_v0, %v776_v6  ;;  %v922_v14 = vrot.slane %v2386_v38, 1  ;;  %v1256_v17 = vsel %vm469_vm6, %v1255_v5, %v1254_v4 }
  0x3a   : > { %v921_v15 = vsel %vm469_vm6, %v920_v12, %v919_v10  ;;  %v1065_v25 = vrot.slane %v2388_v39, 4  ;;  %v1066_v26 = vrot.slane %v2384_v37, 3  ;;  %v1068_v28 = vrot.slane %v2386_v38, 2 }
  0x3b   : > { %v923_v18 = vsel %vm472_vm7, %v922_v14, %v921_v15  ;;  %v1070_v29 = vrot.slane %v2390_v42, 1  ;;  %v1401_v34 = vrot.slane %v2296_v46, 6  ;;  %v1402_v35 = vrot.slane %v2299_v50, 5 }
  0x3c   : > { %341 = vrot.lane.b32.xlu1 %v2256_v16, %s2130_s29  ;;  %v471_v16 = vrot.slane %v2386_v38, 6  ;;  %v2463_v23 = vsel %vm475_vm8, %v2390_v42, %v923_v18  ;;  %v1067_v30 = vsel %vm469_vm6, %v1066_v26, %v1065_v25  ;;  %v1404_v43 = vrot.slane %v2301_v51, 4 }
  0x3d   : > { %237 = vrot.lane.b32.xlu0 %v2248_v11, %s2129_s28  ;;  %v1069_v32 = vsel %vm472_vm7, %v1068_v28, %v1067_v30  ;;  %v1212_v47 = vrot.slane %v2388_v39, 5  ;;  %v1215_v49 = vrot.slane %v2386_v38, 3  ;;  %v1217_v53 = vrot.slane %v2390_v42, 2 }
  0x3e   : > { %v473_v48 = vsel %vm472_vm7, %v471_v16, %v470_v44  ;;  %v2477_v36 = vsel %vm475_vm8, %v1070_v29, %v1069_v32  ;;  %v1403_v16 = vsel %vm469_vm6, %v1402_v35, %v1401_v34  ;;  %v1406_v44 = vrot.slane %v2310_v58, 3 }
  0x3f   : > { %v1364_v2 = vrot.slane %v2390_v42, 3  ;;  %v1506_v6 = vrot.slane %v2388_v39, 7  ;;  %v1511_v10 = vrot.slane %v2390_v42, 4  ;;  %v1823_v12 = vcombine.low %v2283_v40, %v2283_v40 }
  0x40   : > { %312 = vrot.lane.b32.xlu1 %v2324_v7, %s2129_s28  ;;  %v1824_v14 = vcombine.low %v2305_v52, %v2305_v52  ;;  %v1825_v15 = vcombine.low %v2324_v7, %v2324_v7  ;;  %v2133_v29 = vmov 0   ;;  %vm622_vm2 = vcmask 122880  }
  0x41   : > { %343 = vrot.lane.b32.xlu0 %v2275_v33, %s2130_s29  ;;  %v2409_v33 = vsel %vm475_vm8, %v474_v45, %v473_v48  ;;  %v1405_v45 = vsel %vm472_vm7, %v1404_v43, %v1403_v16  ;;  %v1213_v48 = vrot.slane %v2384_v37, 4  ;;  %v2530_v42 = vunpack.c.l.b16 %v1823_v12 }
  0x42   : > { %v2488_v54 = vsel %vm475_vm8, %v1406_v44, %v1405_v45  ;;  %v2532_v18 = vunpack.c.l.b16 %v1824_v14  ;;  %v2534_v40 = vunpack.c.l.b16 %v1825_v15  ;;  %2052 = vset.pattern.permute.xlu0 %v2133_v29 }
  0x43   : > { %3345 = vst [vmem:[#allocation3_spill] sm:$0xff] %v2488_v54  ;;  %v1214_v55 = vsel %vm469_vm6, %v1213_v48, %v1212_v47 }
  0x44   : > { %239 = vrot.lane.b32.xlu1 %v2261_v22, %s2129_s28 }
  0x45   : > { %314 = vrot.lane.b32.xlu0 %v2343_v19, %s2129_s28  ;;  %s1661_s28 = sadd.s32 (%p2214_p6), %s2103_s14, %s1856_s26 }
  0x48   : > { %345 = vrot.lane.b32.xlu1 %v2287_v41, %s2130_s29  ;;  %v1110_v41 = vrot.slane %v2301_v51, 2 }
  0x49   : > { %225 = vrot.lane.b32.xlu0 %v2240_v1, %s2130_s29  ;;  %v1109_v1 = vsel %vm469_vm6, %v1108_v59, %v1107_v57  ;;  %v1548_v57 = vrot.slane %v2296_v46, 7  ;;  %v1549_v59 = vrot.slane %v2299_v50, 6  ;;  %v1359_v46 = vrot.slane %v2388_v39, 6 }
  0x4a   : > { %v1111_v60 = vsel %vm472_vm7, %v1110_v41, %v1109_v1  ;;  %v1551_v41 = vrot.slane %v2301_v51, 5  ;;  %v1216_v1 = vsel %vm472_vm7, %v1215_v49, %v1214_v55  ;;  %v1360_v50 = vrot.slane %v2384_v37, 5 }
  0x4b   : > { %v1550_v61 = vsel %vm469_vm6, %v1549_v59, %v1548_v57  ;;  %v1826_v39 = vcombine.low %v2343_v19, %v2343_v19  ;;  %v208_v19 = vld [vmem:[%s3334_s2] sm:$0xf] }
  0x4c   : > { %227 = vrot.lane.b32.xlu1 %v2242_v3, %s2130_s29  ;;  %v1112_v3 = vrot.slane %v2310_v58, 1  ;;  %v1552_v62 = vsel %vm472_vm7, %v1551_v41, %v1550_v61 }
  0x4d   : > { %229 = vrot.lane.b32.xlu0 %v2248_v11, %s2130_s29  ;;  %v2536_v52 = vunpack.c.l.b16 %v1826_v39 }
  0x4e   : > { %v2439_v11 = vsel %vm475_vm8, %v1112_v3, %v1111_v60  ;;  %v1553_v3 = vrot.slane %v2310_v58, 4  ;;  %v2497_v60 = vsel %vm475_vm8, %v1217_v53, %v1216_v1  ;;  %v1361_v58 = vsel %vm469_vm6, %v1360_v50, %v1359_v46 }
  0x50   : > { %231 = vrot.lane.b32.xlu1 %v2261_v22, %s2130_s29  ;;  %v1257_v22 = vrot.slane %v2301_v51, 3  ;;  %v2502_v0 = vsel %vm475_vm8, %v1553_v3, %v1552_v62  ;;  %v1362_v51 = vrot.slane %v2386_v38, 4  ;;  %s1663_s29 = sadd.s32 (%p2214_p6), %s1857_s27, %s1661_s28 }
  0x51   : > { %3346 = vst [vmem:[#allocation4_spill] sm:$0xff] %v2502_v0  ;;  %357 = vperm.xlu0 %2052, %v208_v19   ;;  %s1858_s30 = sshll.u32 (%p2214_p6), %s1663_s29, 3 }
  0x52   : > { %v1258_v20 = vsel %vm472_vm7, %v1257_v22, %v1256_v17  ;;  %v1363_v4 = vsel %vm472_vm7, %v1362_v51, %v1361_v58  ;;  %v1507_v22 = vrot.slane %v2384_v37, 6  ;;  %s1665_s25 = scalar_lea.vmem (%p2214_p6), %s3335_s3, %s1858_s30 }
  0x53   : > { %v2466_v24 = vsel %vm475_vm8, %v1259_v8, %v1258_v20  ;;  %v2511_v5 = vsel %vm475_vm8, %v1364_v2, %v1363_v4  ;;  %v1509_v8 = vrot.slane %v2386_v38, 5 }
  0x54   : > { %3347 = vst [vmem:[#allocation5_spill] sm:$0xff] %v2511_v5  ;;  %v1508_v17 = vsel %vm469_vm6, %v1507_v22, %v1506_v6 }
  0x55   : > { %v1510_v37 = vsel %vm472_vm7, %v1509_v8, %v1508_v17 }
  0x56   : > { %v2528_v38 = vsel %vm475_vm8, %v1511_v10, %v1510_v37 }
  0x57   : > { %3348 = vst [vmem:[#allocation6_spill] sm:$0xff] %v2528_v38 }
  0x93   : > { %v348_v43 = vpop.permute.xlu0 %347  ;;  %v340_v16 = vpop.permute.xlu1 %339 }
  0x94   : > { %v1843_v49 = vcombine.low %v348_v43, %v348_v43  ;;  %v1839_v53 = vcombine.low %v340_v16, %v340_v16 }
  0x96   : > { %v2560_v61 = vunpack.c.l.b16 %v1843_v49  ;;  %v2562_v62 = vunpack.c.l.b16 %v1839_v53 }
  0x97   : > { %v350_v51 = vpop.permute.xlu0 %349 }
  0x98   : > { %v1844_v22 = vcombine.low %v350_v51, %v350_v51  ;;  %v683_v8 = vrot.slane %v2560_v61, 1  ;;  %v523_v10 = vrot.slane %v2562_v62, 4  ;;  %v675_v12 = vrot.slane %v2562_v62, 5 }
  0x99   : > { %v829_v14 = vrot.slane %v2560_v61, 2  ;;  %v975_v15 = vrot.slane %v2560_v61, 3  ;;  %v821_v17 = vrot.slane %v2562_v62, 6  ;;  %v967_v39 = vrot.slane %v2562_v62, 7 }
  0x9a   : > { %v2577_v37 = vunpack.c.l.b16 %v1844_v22  ;;  %v2581_v19 = vsel %vm478_vm10, %v523_v10, %v2334_v13  ;;  %v2585_v29 = vsel %vm478_vm10, %v675_v12, %v2347_v21  ;;  %v1121_v43 = vrot.slane %v2560_v61, 4  ;;  %v301_v16 = vpop.permute.xlu1 %300 }
  0x9b   : > { %v352_v49 = vpop.permute.xlu0 %351  ;;  %v2590_v53 = vsel %vm478_vm10, %v821_v17, %v2359_v27  ;;  %v2594_v51 = vsel %vm478_vm10, %v967_v39, %v2370_v31  ;;  %v1268_v22 = vrot.slane %v2560_v61, 5  ;;  %v2600_v13 = vsel %vm478_vm10, %v2562_v62, %v2439_v11 }
  0x9c   : > { %3349 = vst [vmem:[#allocation7_spill] sm:$0xff] %v2577_v37  ;;  %v1827_v21 = vcombine.low %v301_v16, %v301_v16  ;;  %v1845_v10 = vcombine.low %v352_v49, %v352_v49  ;;  %v531_v12 = vrot.slane %v2577_v37, 7  ;;  %v684_v6 = vsel %vm469_vm6, %v2577_v37, %v683_v8 }
  0x9d   : > { %v830_v27 = vrot.slane %v2577_v37, 1  ;;  %v976_v17 = vrot.slane %v2577_v37, 2  ;;  %v1122_v31 = vrot.slane %v2577_v37, 3  ;;  %v1269_v39 = vrot.slane %v2577_v37, 4 }
  0x9e   : > { %v2609_v4 = vunpack.c.l.b16 %v1827_v21  ;;  %v2611_v58 = vunpack.c.l.b16 %v1845_v10  ;;  %v532_v11 = vsel %vm469_vm6, %v531_v12, %v2560_v61  ;;  %v303_v49 = vpop.permute.xlu1 %302 }
  0x9f   : > { %v354_v2 = vpop.permute.xlu0 %353  ;;  %v831_v8 = vsel %vm469_vm6, %v830_v27, %v829_v14  ;;  %v977_v50 = vsel %vm469_vm6, %v976_v17, %v975_v15  ;;  %v2619_v46 = vsel %vm469_vm6, %v1122_v31, %v1121_v43  ;;  %v2622_v3 = vsel %vm469_vm6, %v1269_v39, %v1268_v22 }
  0xa0   : > { %v1828_v21 = vcombine.low %v303_v49, %v303_v49  ;;  %v1846_v10 = vcombine.low %v354_v2, %v354_v2  ;;  %v533_v1 = vrot.slane %v2611_v58, 6  ;;  %v685_v12 = vrot.slane %v2611_v58, 7 }
  0xa1   : > { %v655_v41 = vrot.slane %v2609_v4, 1  ;;  %v832_v14 = vsel %vm472_vm7, %v2611_v58, %v831_v8  ;;  %v978_v15 = vrot.slane %v2611_v58, 1  ;;  %v801_v43 = vrot.slane %v2609_v4, 2 }
  0xa2   : > { %v2631_v27 = vunpack.c.l.b16 %v1828_v21  ;;  %v2633_v22 = vunpack.c.l.b16 %v1846_v10  ;;  %v534_v2 = vsel %vm472_vm7, %v533_v1, %v532_v11  ;;  %v686_v17 = vsel %vm472_vm7, %v685_v12, %v684_v6  ;;  %v305_v31 = vpop.permute.xlu1 %304 }
  0xa3   : > { %v309_v39 = vpop.permute.xlu0 %308  ;;  %v979_v49 = vsel %vm472_vm7, %v978_v15, %v977_v50  ;;  %v947_v16 = vrot.slane %v2609_v4, 3  ;;  %v1829_v57 = vcombine.low %v305_v31, %v305_v31 }
  0xa4   : > { %v1831_v55 = vcombine.low %v309_v39, %v309_v39  ;;  %v535_v21 = vrot.slane %v2633_v22, 5  ;;  %v687_v10 = vrot.slane %v2633_v22, 6  ;;  %v503_v1 = vrot.slane %v2631_v27, 7 }
  0xa5   : > { %v656_v6 = vsel %vm469_vm6, %v2631_v27, %v655_v41  ;;  %v833_v11 = vrot.slane %v2633_v22, 7  ;;  %v980_v50 = vsel %vm475_vm8, %v2633_v22, %v979_v49  ;;  %v2649_v12 = vunpack.c.l.b16 %v1829_v57 }
  0xa6   : > { %v2651_v15 = vunpack.c.l.b16 %v1831_v55  ;;  %v536_v31 = vsel %vm475_vm8, %v535_v21, %v534_v2  ;;  %v688_v39 = vsel %vm475_vm8, %v687_v10, %v686_v17  ;;  %v307_v59 = vpop.permute.xlu1 %306  ;;  %v504_v41 = vsel %vm469_vm6, %v503_v1, %v2609_v4 }
  0xa7   : > { %v234_v48 = vpop.permute.xlu0 %233  ;;  %v539_v47 = vpack.c.b16 %v536_v31, %v536_v31  ;;  %v691_v45 = vpack.c.b16 %v688_v39, %v688_v39  ;;  %v834_v44 = vsel %vm475_vm8, %v833_v11, %v832_v14  ;;  %v1830_v35 = vcombine.low %v307_v59, %v307_v59 }
  0xa8   : > { %v1819_v8 = vcombine.low %v234_v48, %v234_v48  ;;  %v505_v57 = vrot.slane %v2649_v12, 6  ;;  %v509_v55 = vrot.slane %v2651_v15, 4  ;;  %v657_v17 = vrot.slane %v2649_v12, 7 }
  0xa9   : > { %v548_v49 = vsel %vm546_vm11, %v539_v47, 0  ;;  %v695_v2 = vsel %vm546_vm11, %v691_v45, 0  ;;  %v661_v21 = vrot.slane %v2651_v15, 5  ;;  %v2664_v10 = vunpack.c.l.b16 %v1830_v35 }
  0xaa   : > { %v2666_v1 = vunpack.c.l.b16 %v1819_v8  ;;  %1894 = vmatpush3.bf16.msra.mxu0 %v548_v49  ;;  %1904 = vmatpush3.bf16.msra.mxu1 %v695_v2  ;;  %v506_v48 = vsel %vm472_vm7, %v505_v57, %v504_v41  ;;  %v837_v59 = vpack.c.b16 %v834_v44, %v834_v44  ;;  %v236_v14 = vpop.permute.xlu1 %235  ;;  %v658_v45 = vsel %vm472_vm7, %v657_v17, %v656_v6 }
  0xab   : > { %v311_v11 = vpop.permute.xlu0 %310  ;;  %1895 = vmatprep.subr.bf16.mxu0 %v3336_v63  ;;  %1905 = vmatprep.subr.bf16.mxu1 %v3336_v63  ;;  %v983_v47 = vpack.c.b16 %v980_v50, %v980_v50  ;;  %v802_v31 = vrot.slane %v2631_v27, 1  ;;  %v807_v35 = vrot.slane %v2651_v15, 6  ;;  %v1820_v8 = vcombine.low %v236_v14, %v236_v14 }
  0xac   : > { %v1832_v39 = vcombine.low %v311_v11, %v311_v11  ;;  %v507_v49 = vrot.slane %v2664_v10, 5  ;;  %v659_v41 = vrot.slane %v2664_v10, 6  ;;  %v641_v44 = vrot.slane %v2666_v1, 1 }
  0xad   : > { %v2678_v57 = vsel %vm546_vm11, %v837_v59, 0  ;;  %v2681_v2 = vsel %vm546_vm11, %v983_v47, 0  ;;  %v803_v6 = vsel %vm469_vm6, %v802_v31, %v801_v43  ;;  %v2684_v50 = vunpack.c.l.b16 %v1820_v8 }
  0xae   : > { %v2686_v17 = vunpack.c.l.b16 %v1832_v39  ;;  %v508_v14 = vsel %vm475_vm8, %v507_v49, %v506_v48  ;;  %v660_v11 = vsel %vm475_vm8, %v659_v41, %v658_v45  ;;  %v342_v34 = vpop.permute.xlu1 %341  ;;  %v804_v47 = vsel %vm472_vm7, %v2649_v12, %v803_v6 }
  0xaf   : > { %v238_v32 = vpop.permute.xlu0 %237  ;;  %v510_v28 = vsel %vm478_vm10, %v509_v55, %v508_v14  ;;  %v662_v59 = vsel %vm478_vm10, %v661_v21, %v660_v11  ;;  %v805_v63 = vrot.slane %v2664_v10, 7  ;;  %v1840_v43 = vcombine.low %v342_v34, %v342_v34 }
  0xb0   : > { %v1821_v31 = vcombine.low %v238_v32, %v238_v32  ;;  %v511_v8 = vrot.slane %v2686_v17, 3  ;;  %v663_v39 = vrot.slane %v2686_v17, 4  ;;  %v489_v48 = vrot.slane %v2684_v50, 7 }
  0xb1   : > { %v642_v45 = vsel %vm469_vm6, %v2684_v50, %v641_v44  ;;  %v806_v55 = vsel %vm475_vm8, %v805_v63, %v804_v47  ;;  %v809_v21 = vrot.slane %v2686_v17, 5  ;;  %v2702_v49 = vunpack.c.l.b16 %v1840_v43 }
  0xb2   : > { %v2704_v41 = vunpack.c.l.b16 %v1821_v31  ;;  %v512_v32 = vsel %vm481_vm12, %v511_v8, %v510_v28  ;;  %v664_v34 = vsel %vm481_vm12, %v663_v39, %v662_v59  ;;  %v313_v6 = vpop.permute.xlu1 %312  ;;  %v490_v11 = vsel %vm469_vm6, %v489_v48, %v2666_v1 }
  0xb3   : > { %v344_v14 = vpop.permute.xlu0 %343  ;;  %v808_v30 = vsel %vm478_vm10, %v807_v35, %v806_v55  ;;  %v948_v44 = vrot.slane %v2631_v27, 2  ;;  %v950_v63 = vrot.slane %v2649_v12, 1  ;;  %v1833_v47 = vcombine.low %v313_v6, %v313_v6 }
  0xb4   : > { %v1841_v43 = vcombine.low %v344_v14, %v344_v14  ;;  %v525_v31 = vrot.slane %v2702_v49, 3  ;;  %v677_v25 = vrot.slane %v2702_v49, 4  ;;  %v491_v28 = vrot.slane %v2704_v41, 6 }
  0xb5   : > { %v643_v59 = vrot.slane %v2704_v41, 7  ;;  %v810_v8 = vsel %vm481_vm12, %v809_v21, %v808_v30  ;;  %v823_v39 = vrot.slane %v2702_v49, 5  ;;  %v2719_v35 = vunpack.c.l.b16 %v1833_v47 }
  0xb6   : > { %v2721_v48 = vunpack.c.l.b16 %v1841_v43  ;;  %v526_v55 = vsel %vm481_vm12, %v525_v31, %v2581_v19  ;;  %v678_v6 = vsel %vm481_vm12, %v677_v25, %v2585_v29  ;;  %v240_v14 = vpop.permute.xlu1 %239  ;;  %v492_v26 = vsel %vm472_vm7, %v491_v28, %v490_v11 }
  0xb7   : > { %v315_v20 = vpop.permute.xlu0 %314  ;;  %v644_v7 = vsel %vm472_vm7, %v643_v59, %v642_v45  ;;  %v824_v30 = vsel %vm481_vm12, %v823_v39, %v2590_v53  ;;  %v949_v21 = vsel %vm469_vm6, %v948_v44, %v947_v16  ;;  %v1822_v47 = vcombine.low %v240_v14, %v240_v14 }
  0xb8   : > { %v1834_v43 = vcombine.low %v315_v20, %v315_v20  ;;  %v513_v19 = vrot.slane %v2719_v35, 2  ;;  %v527_v31 = vrot.slane %v2721_v48, 2  ;;  %v665_v25 = vrot.slane %v2719_v35, 3 }
  0xb9   : > { %v679_v29 = vrot.slane %v2721_v48, 3  ;;  %v811_v11 = vrot.slane %v2719_v35, 4  ;;  %v825_v45 = vrot.slane %v2721_v48, 4  ;;  %v2740_v28 = vunpack.c.l.b16 %v1822_v47 }
  0xba   : > { %v2742_v53 = vunpack.c.l.b16 %v1834_v43  ;;  %v514_v16 = vsel %vm484_vm13, %v513_v19, %v512_v32  ;;  %v528_v20 = vsel %vm484_vm13, %v527_v31, %v526_v55  ;;  %v346_v44 = vpop.permute.xlu1 %345  ;;  %v666_v39 = vsel %vm484_vm13, %v665_v25, %v664_v34 }
  0xbb   : > { %v226_v59 = vpop.permute.xlu0 %225  ;;  %v680_v14 = vsel %vm484_vm13, %v679_v29, %v678_v6  ;;  %v812_v38 = vsel %vm484_vm13, %v811_v11, %v810_v8  ;;  %v2750_v5 = vsel %vm484_vm13, %v825_v45, %v824_v30  ;;  %v1842_v0 = vcombine.low %v346_v44, %v346_v44 }
  0xbc   : > { %v1815_v47 = vcombine.low %v226_v59, %v226_v59  ;;  %v515_v43 = vrot.slane %v2742_v53, 1  ;;  %v667_v32 = vrot.slane %v2742_v53, 2  ;;  %v493_v55 = vrot.slane %v2740_v28, 5 }
  0xbd   : > { %v645_v19 = vrot.slane %v2740_v28, 6  ;;  %v813_v34 = vrot.slane %v2742_v53, 3  ;;  %v951_v6 = vsel %vm472_vm7, %v950_v63, %v949_v21  ;;  %v2758_v31 = vunpack.c.l.b16 %v1842_v0 }
  0xbe   : > { %v2760_v8 = vunpack.c.l.b16 %v1815_v47  ;;  %v516_v30 = vsel %vm487_vm14, %v515_v43, %v514_v16  ;;  %v668_v25 = vsel %vm487_vm14, %v667_v32, %v666_v39  ;;  %v228_v29 = vpop.permute.xlu1 %227  ;;  %v494_v45 = vsel %vm475_vm8, %v493_v55, %v492_v26 }
  0xbf   : > { %v230_v11 = vpop.permute.xlu0 %229  ;;  %v646_v44 = vsel %vm475_vm8, %v645_v19, %v644_v7  ;;  %v2768_v59 = vsel %vm487_vm14, %v813_v34, %v812_v38  ;;  %v952_v0 = vsel %vm475_vm8, %v2664_v10, %v951_v6  ;;  %v1816_v63 = vcombine.low %v228_v29, %v228_v29 }
  0xc0   : > { %v1817_v21 = vcombine.low %v230_v11, %v230_v11  ;;  %v529_v16 = vrot.slane %v2758_v31, 1  ;;  %v681_v39 = vrot.slane %v2758_v31, 2  ;;  %v477_v47 = vrot.slane %v2760_v8, 4 }
  0xc1   : > { %v3350_v26 = vrot.slane %v2530_v42, 4  ;;  %v633_v38 = vrot.slane %v2760_v8, 5  ;;  %v3351_v43 = vrot.slane %v2530_v42, 5  ;;  %v2782_v55 = vunpack.c.l.b16 %v1816_v63 }
  0xc2   : > { %v2784_v19 = vunpack.c.l.b16 %v1817_v21  ;;  %v530_v34 = vsel %vm487_vm14, %v529_v16, %v528_v20  ;;  %v682_v6 = vsel %vm487_vm14, %v681_v39, %v680_v14  ;;  %v232_v29 = vpop.permute.xlu1 %231  ;;  %v3353_v14 = vrot.slane %v2534_v40, 2 }
  0xc3   : > { %v496_v7 = vsel %vm478_vm10, %v3350_v26, %v494_v45  ;;  %v648_v32 = vsel %vm478_vm10, %v3351_v43, %v646_v44  ;;  %v538_v11 = vpack.c.b16 %v530_v34, %v516_v30  ;;  %v690_v54 = vpack.c.b16 %v682_v6, %v668_v25 }
  0xc4   : > { %v479_v45 = vsel %vm478_vm10, %v477_v47, %v2409_v33  ;;  %v3352_v26 = vrot.slane %v2532_v18, 3  ;;  %v1818_v44 = vcombine.low %v232_v29, %v232_v29  ;;  %v480_v63 = vrot.slane %v2782_v55, 3 }
  0xc5   : > { %v483_v20 = vrot.slane %v2784_v19, 2  ;;  %1896 = vmatpush3.bf16.msra.mxu0 %v538_v11  ;;  %1906 = vmatpush3.bf16.msra.mxu1 %v690_v54  ;;  %v3354_v33 = vrot.slane %v2536_v52, 1  ;;  %v634_v21 = vsel %vm478_vm10, %v633_v38, %v2416_v56  ;;  %v635_v16 = vrot.slane %v2782_v55, 4 }
  0xc6   : > { %v498_v37 = vsel %vm481_vm12, %v3352_v26, %v496_v7  ;;  %v637_v39 = vrot.slane %v2784_v19, 3  ;;  %v2810_v47 = vunpack.c.l.b16 %v1818_v44  ;;  %v3355_v7 = vmov 0.0  }
  0xc7   : > { %v500_v30 = vsel %vm484_vm13, %v3353_v14, %v498_v37  ;;  %1897 = vmatprep.subr.bf16.mxu0 %v3355_v7  ;;  %1907 = vmatprep.subr.bf16.mxu1 %v3355_v7  ;;  %v482_v54 = vsel %vm481_vm12, %v480_v63, %v479_v45  ;;  %v3356_v37 = vrot.slane %v2532_v18, 4  ;;  %v827_v34 = vrot.slane %v2758_v31, 3 }
  0xc8   : > { %v502_v25 = vsel %vm487_vm14, %v3354_v33, %v500_v30  ;;  %v485_v56 = vsel %vm484_vm13, %v483_v20, %v482_v54  ;;  %v636_v38 = vsel %vm481_vm12, %v635_v16, %v634_v21  ;;  %v3357_v6 = vrot.slane %v2534_v40, 3 }
  0xc9   : > { %v650_v43 = vsel %vm481_vm12, %v3356_v37, %v648_v32  ;;  %v953_v11 = vrot.slane %v2651_v15, 7  ;;  %v486_v26 = vrot.slane %v2810_v47, 1  ;;  %v638_v45 = vsel %vm484_vm13, %v637_v39, %v636_v38 }
  0xca   : > { %v652_v29 = vsel %vm484_vm13, %v3357_v6, %v650_v43  ;;  %v639_v44 = vrot.slane %v2810_v47, 2  ;;  %v3358_v32 = vrot.slane %v2536_v52, 2  ;;  %v828_v20 = vsel %vm487_vm14, %v827_v34, %v2750_v5 }
  0xcb   : > { %v954_v14 = vsel %vm478_vm10, %v953_v11, %v952_v0  ;;  %v955_v30 = vrot.slane %v2686_v17, 6  ;;  %v957_v33 = vrot.slane %v2719_v35, 5  ;;  %v488_v21 = vsel %vm487_vm14, %v486_v26, %v485_v56 }
  0xcc   : > { %v654_v63 = vsel %vm487_vm14, %v3358_v32, %v652_v29  ;;  %v640_v16 = vsel %vm487_vm14, %v639_v44, %v638_v45  ;;  %v836_v39 = vpack.c.b16 %v828_v20, %v2768_v59  ;;  %v959_v54 = vrot.slane %v2742_v53, 4  ;;  %v2850_v29 = vld [vmem:[%s204_s10] sm:$0x3] }
  0xcd   : > { %v537_v37 = vpack.c.b16 %v502_v25, %v488_v21  ;;  %v689_v5 = vpack.c.b16 %v654_v63, %v640_v16  ;;  %v956_v0 = vsel %vm481_vm12, %v955_v30, %v954_v14  ;;  %v969_v43 = vrot.slane %v2702_v49, 6 }
  0xce   : > { %v958_v34 = vsel %vm484_vm13, %v957_v33, %v956_v0  ;;  %v971_v56 = vrot.slane %v2721_v48, 5  ;;  %v973_v38 = vrot.slane %v2758_v31, 4  ;;  %v779_v6 = vrot.slane %v2760_v8, 6 }
  0xcf   : > { %1898 = vmatpush3.bf16.msra.mxu0 %v537_v37  ;;  %1908 = vmatpush3.bf16.msra.mxu1 %v689_v5  ;;  %v960_v59 = vsel %vm487_vm14, %v959_v54, %v958_v34  ;;  %v970_v25 = vsel %vm481_vm12, %v969_v43, %v2594_v51  ;;  %v781_v11 = vrot.slane %v2782_v55, 5  ;;  %v783_v26 = vrot.slane %v2784_v19, 4 }
  0xd0   : > { %1913 = vmatprep.subr.bf16.mxu0 %v3355_v7  ;;  %1923 = vmatprep.subr.bf16.mxu1 %v3355_v7  ;;  %v972_v45 = vsel %vm484_vm13, %v971_v56, %v970_v25  ;;  %v780_v44 = vsel %vm478_vm10, %v779_v6, %v2452_v9  ;;  %v785_v32 = vrot.slane %v2810_v47, 3  ;;  %v787_v63 = vrot.slane %v2666_v1, 2 }
  0xd1   : > { %v974_v20 = vsel %vm487_vm14, %v973_v38, %v972_v45  ;;  %v782_v51 = vsel %vm481_vm12, %v781_v11, %v780_v44  ;;  %v788_v14 = vrot.slane %v2684_v50, 1  ;;  %v791_v30 = vrot.slane %v2740_v28, 7 }
  0xd2   : > { %1900 = vmatmul.mubr.msk.bf16.vlgmr.msra.gmra.mxu0 %vm542_vm15, %v2850_v29  ;;  %1910 = vmatmul.mubr.msk.bf16.vlgmr.msra.gmra.mxu1 %vm542_vm15, %v2850_v29  ;;  %v982_v33 = vpack.c.b16 %v974_v20, %v960_v59  ;;  %v784_v9 = vsel %vm484_vm13, %v783_v26, %v782_v51  ;;  %v925_v21 = vrot.slane %v2760_v8, 7  ;;  %v927_v16 = vrot.slane %v2782_v55, 6 }
  0xd3   : > { %1914 = vmatpush3.bf16.msra.mxu0 %v2678_v57  ;;  %1924 = vmatpush3.bf16.msra.mxu1 %v2681_v2  ;;  %v786_v54 = vsel %vm487_vm14, %v785_v32, %v784_v9  ;;  %v789_v37 = vsel %vm469_vm6, %v788_v14, %v787_v63  ;;  %v929_v5 = vrot.slane %v2784_v19, 5  ;;  %v931_v0 = vrot.slane %v2810_v47, 4 }
  0xd4   : > { %1915 = vmatprep.subr.bf16.mxu0 %v3355_v7  ;;  %1925 = vmatprep.subr.bf16.mxu1 %v3355_v7  ;;  %v790_v43 = vsel %vm472_vm7, %v2704_v41, %v789_v37  ;;  %v926_v57 = vsel %vm478_vm10, %v925_v21, %v2463_v23  ;;  %v933_v2 = vrot.slane %v2666_v1, 3  ;;  %v934_v34 = vrot.slane %v2684_v50, 2 }
  0xd5   : > { %v792_v56 = vsel %vm475_vm8, %v791_v30, %v790_v43  ;;  %v928_v38 = vsel %vm481_vm12, %v927_v16, %v926_v57  ;;  %v936_v6 = vrot.slane %v2704_v41, 1  ;;  %1919 = vmatprep.mubr.msk.bf16.mxu0 %vm2132_vm9, %v3355_v7  ;;  %1929 = vmatprep.mubr.msk.bf16.mxu1 %vm2132_vm9, %v3355_v7  ;;  %v3359_v59 = vrot.slane %v2611_v58, 2 }
  0xd6   : > { %v3360_v25 = vrot.slane %v2530_v42, 6  ;;  %v930_v26 = vsel %vm484_vm13, %v929_v5, %v928_v38  ;;  %v935_v45 = vsel %vm469_vm6, %v934_v34, %v933_v2  ;;  %v1126_v44 = vrot.slane %v2633_v22, 1 }
  0xd7   : > { %v1125_v23 = vsel %vm472_vm7, %v3359_v59, %v2619_v46  ;;  %1916 = vmatpush3.bf16.msra.mxu0 %v836_v39  ;;  %1926 = vmatpush3.bf16.msra.mxu1 %v982_v33  ;;  %v3361_v32 = vrot.slane %v2532_v18, 5  ;;  %v932_v20 = vsel %vm487_vm14, %v931_v0, %v930_v26  ;;  %v937_v46 = vsel %vm472_vm7, %v936_v6, %v935_v45 }
  0xd8   : > { %v794_v11 = vsel %vm478_vm10, %v3360_v25, %v792_v56  ;;  %v1273_v51 = vrot.slane %v2633_v22, 2  ;;  %1917 = vmatprep.subr.bf16.mxu0 %v3355_v7  ;;  %1927 = vmatprep.subr.bf16.mxu1 %v3355_v7  ;;  %v3362_v14 = vrot.slane %v2534_v40, 4  ;;  %v938_v39 = vsel %vm475_vm8, %v2740_v28, %v937_v46 }
  0xd9   : > { %v796_v63 = vsel %vm481_vm12, %v3361_v32, %v794_v11  ;;  %v1127_v33 = vsel %vm475_vm8, %v1126_v44, %v1125_v23  ;;  %v1093_v9 = vrot.slane %v2609_v4, 4  ;;  %v3363_v21 = vrot.slane %v2536_v52, 3 }
  0xda   : > { %v798_v30 = vsel %vm484_vm13, %v3362_v14, %v796_v63  ;;  %v3364_v37 = vrot.slane %v2530_v42, 7  ;;  %v1130_v0 = vpack.c.b16 %v1127_v33, %v1127_v33  ;;  %v3365_v43 = vrot.slane %v2611_v58, 3 }
  0xdb   : > { %v800_v16 = vsel %vm487_vm14, %v3363_v21, %v798_v30  ;;  %v3366_v34 = vrot.slane %v2532_v18, 6  ;;  %v1094_v6 = vrot.slane %v2631_v27, 3  ;;  %v3367_v59 = vrot.slane %v2534_v40, 5 }
  0xdc   : > { %v940_v5 = vsel %vm478_vm10, %v3364_v37, %v938_v39  ;;  %v1272_v57 = vsel %vm472_vm7, %v3365_v43, %v2622_v3  ;;  %v835_v2 = vpack.c.b16 %v800_v16, %v786_v54  ;;  %v1134_v25 = vsel %vm546_vm11, %v1130_v0, 0 }
  0xdd   : > { %v942_v56 = vsel %vm481_vm12, %v3366_v34, %v940_v5  ;;  %v1274_v38 = vsel %vm475_vm8, %v1273_v51, %v1272_v57  ;;  %v1096_v26 = vrot.slane %v2649_v12, 2  ;;  %v3368_v3 = vrot.slane %v2536_v52, 4 }
  0xde   : > { %v944_v23 = vsel %vm484_vm13, %v3367_v59, %v942_v56  ;;  %v1277_v11 = vpack.c.b16 %v1274_v38, %v1274_v38  ;;  %1918 = vmatpush3.bf16.msra.mxu0 %v835_v2  ;;  %v1095_v45 = vsel %vm469_vm6, %v1094_v6, %v1093_v9  ;;  %v1098_v44 = vrot.slane %v2664_v10, 1 }
  0xdf   : > { %v946_v54 = vsel %vm487_vm14, %v3368_v3, %v944_v23  ;;  %v1101_v32 = vrot.slane %v2686_v17, 7  ;;  %1933 = vmatprep.subr.bf16.mxu0 %v3355_v7  ;;  %v1097_v51 = vsel %vm472_vm7, %v1096_v26, %v1095_v45  ;;  %v1103_v14 = vrot.slane %v2719_v35, 6 }
  0xe0   : > { %v981_v63 = vpack.c.b16 %v946_v54, %v932_v20  ;;  %v1281_v46 = vsel %vm546_vm11, %v1277_v11, 0  ;;  %v1099_v30 = vsel %vm475_vm8, %v1098_v44, %v1097_v51  ;;  %v1105_v39 = vrot.slane %v2742_v53, 5 }
  0xe1   : > { %v1115_v33 = vrot.slane %v2702_v49, 7  ;;  %v1117_v9 = vrot.slane %v2721_v48, 6  ;;  %1920 = vmatmul.mubr.msk.bf16.vlgmr.msra.gmra.mxu0 %vm542_vm15, %v2850_v29  ;;  %v1100_v20 = vsel %vm478_vm10, %v2651_v15, %v1099_v30  ;;  %v1119_v21 = vrot.slane %v2758_v31, 5 }
  0xe2   : > { %1928 = vmatpush3.bf16.msra.mxu1 %v981_v63  ;;  %v1240_v16 = vrot.slane %v2609_v4, 5  ;;  %v1241_v37 = vrot.slane %v2631_v27, 4  ;;  %1934 = vmatpush3.bf16.msra.mxu0 %v1134_v25  ;;  %v1102_v5 = vsel %vm481_vm12, %v1101_v32, %v1100_v20  ;;  %v1243_v43 = vrot.slane %v2649_v12, 3 }
  0xe3   : > { %1943 = vmatprep.subr.bf16.mxu1 %v3355_v7  ;;  %v1116_v0 = vsel %vm481_vm12, %v1115_v33, %v2600_v13  ;;  %v1245_v57 = vrot.slane %v2664_v10, 2  ;;  %1935 = vmatprep.subr.bf16.mxu0 %v3355_v7  ;;  %v1104_v2 = vsel %vm484_vm13, %v1103_v14, %v1102_v5  ;;  %v1247_v38 = vrot.slane %v2651_v15, 1 }
  0xe4   : > { %v1118_v34 = vsel %vm484_vm13, %v1117_v9, %v1116_v0  ;;  %v1242_v56 = vsel %vm469_vm6, %v1241_v37, %v1240_v16  ;;  %1939 = vmatprep.mubr.msk.bf16.mxu0 %vm2132_vm9, %v3355_v7  ;;  %v1106_v13 = vsel %vm487_vm14, %v1105_v39, %v1104_v2  ;;  %v1250_v23 = vrot.slane %v2719_v35, 7 }
  0xe5   : > { %1930 = vmatmul.mubr.msk.bf16.vlgmr.msra.gmra.mxu1 %vm542_vm15, %v2850_v29  ;;  %v1120_v6 = vsel %vm487_vm14, %v1119_v21, %v1118_v34  ;;  %v1244_v59 = vsel %vm472_vm7, %v1243_v43, %v1242_v56  ;;  %v1252_v26 = vrot.slane %v2742_v53, 6  ;;  %v3369_v3 = vrot.slane %v2562_v62, 1 }
  0xe6   : > { %1944 = vmatpush3.bf16.msra.mxu1 %v1281_v46  ;;  %v1129_v25 = vpack.c.b16 %v1120_v6, %v1106_v13  ;;  %v1246_v11 = vsel %vm475_vm8, %v1245_v57, %v1244_v59  ;;  %1949 = vmatprep.mubr.msk.bf16.mxu1 %vm2132_vm9, %v3355_v7  ;;  %v1264_v32 = vrot.slane %v2721_v48, 7  ;;  %v1266_v63 = vrot.slane %v2758_v31, 6 }
  0xe7   : > { %v1262_v54 = vsel %vm478_vm10, %v3369_v3, %v2466_v24  ;;  %1945 = vmatprep.subr.bf16.mxu1 %v3355_v7  ;;  %v1248_v45 = vsel %vm478_vm10, %v1247_v38, %v1246_v11  ;;  %v1072_v24 = vsel %vm478_vm10, %v2760_v8, %v2477_v36  ;;  %v1073_v51 = vrot.slane %v2782_v55, 7 }
  0xe8   : > { %v1263_v44 = vsel %vm481_vm12, %v2702_v49, %v1262_v54  ;;  %1936 = vmatpush3.bf16.msra.mxu0 %v1129_v25  ;;  %v1249_v46 = vsel %vm481_vm12, %v2686_v17, %v1248_v45  ;;  %v1075_v14 = vrot.slane %v2784_v19, 6  ;;  %v1077_v33 = vrot.slane %v2810_v47, 5 }
  0xe9   : > { %v1251_v30 = vsel %vm484_vm13, %v1250_v23, %v1249_v46  ;;  %v1265_v39 = vsel %vm484_vm13, %v1264_v32, %v1263_v44  ;;  %1937 = vmatprep.subr.bf16.mxu0 %v3355_v7  ;;  %v1079_v9 = vrot.slane %v2666_v1, 4  ;;  %v1074_v36 = vsel %vm481_vm12, %v1073_v51, %v1072_v24  ;;  %v3371_v24 = vld [vmem:[#allocation7_spill] sm:$0xff] }
  0xea   : > { %v1253_v20 = vsel %vm487_vm14, %v1252_v26, %v1251_v30  ;;  %v1267_v21 = vsel %vm487_vm14, %v1266_v63, %v1265_v39  ;;  %v1080_v16 = vrot.slane %v2684_v50, 3  ;;  %v1076_v5 = vsel %vm484_vm13, %v1075_v14, %v1074_v36 }
  0xeb   : > { %v1276_v37 = vpack.c.b16 %v1267_v21, %v1253_v20  ;;  %v1082_v0 = vrot.slane %v2704_v41, 2  ;;  %v1084_v43 = vrot.slane %v2740_v28, 1  ;;  %v1078_v57 = vsel %vm487_vm14, %v1077_v33, %v1076_v5 }
  0xec   : > { %v1081_v2 = vsel %vm469_vm6, %v1080_v16, %v1079_v9  ;;  %v1219_v34 = vrot.slane %v2760_v8, 1  ;;  %v1222_v56 = vrot.slane %v2784_v19, 7  ;;  %v1224_v13 = vrot.slane %v2810_v47, 6 }
  0xed   : > { %1946 = vmatpush3.bf16.msra.mxu1 %v1276_v37  ;;  %v1083_v38 = vsel %vm472_vm7, %v1082_v0, %v1081_v2  ;;  %v1226_v6 = vrot.slane %v2666_v1, 5  ;;  %v1227_v59 = vrot.slane %v2684_v50, 4  ;;  %v1229_v11 = vrot.slane %v2704_v41, 3 }
  0xee   : > { %1947 = vmatprep.subr.bf16.mxu1 %v3355_v7  ;;  %v1085_v23 = vsel %vm475_vm8, %v1084_v43, %v1083_v38  ;;  %v1220_v25 = vsel %vm478_vm10, %v1219_v34, %v2497_v60  ;;  %v1231_v26 = vrot.slane %v2740_v28, 2  ;;  %v1415_v44 = vrot.slane %v2560_v61, 6 }
  0xef   : > { %v1086_v3 = vsel %vm478_vm10, %v2530_v42, %v1085_v23  ;;  %v1221_v54 = vsel %vm481_vm12, %v2782_v55, %v1220_v25  ;;  %v1228_v45 = vsel %vm469_vm6, %v1227_v59, %v1226_v6  ;;  %v3370_v32 = vrot.slane %v2532_v18, 7 }
  0xf0   : > { %v1223_v60 = vsel %vm484_vm13, %v1222_v56, %v1221_v54  ;;  %v1230_v46 = vsel %vm472_vm7, %v1229_v11, %v1228_v45  ;;  %v1416_v51 = vrot.slane %v3371_v24, 5  ;;  %v3372_v14 = vrot.slane %v2534_v40, 6 }
  0xf1   : > { %v1088_v63 = vsel %vm481_vm12, %v3370_v32, %v1086_v3  ;;  %v1225_v39 = vsel %vm487_vm14, %v1224_v13, %v1223_v60  ;;  %v1232_v33 = vsel %vm475_vm8, %v1231_v26, %v1230_v46  ;;  %v1418_v9 = vrot.slane %v2611_v58, 4 }
  0xf2   : > { %v1090_v30 = vsel %vm484_vm13, %v3372_v14, %v1088_v63  ;;  %v3373_v20 = vrot.slane %v2536_v52, 5  ;;  %v3374_v36 = vrot.slane %v2530_v42, 1  ;;  %v1417_v37 = vsel %vm469_vm6, %v1416_v51, %v1415_v44 }
  0xf3   : > { %v1420_v5 = vrot.slane %v2633_v22, 3  ;;  %v1419_v2 = vsel %vm472_vm7, %v1418_v9, %v1417_v37  ;;  %v1562_v34 = vrot.slane %v2560_v61, 7  ;;  %v3375_v56 = vrot.slane %v2534_v40, 7  ;;  %v3377_v37 = vld [vmem:[#allocation3_spill] sm:$0xff] }
  0xf4   : > { %v1092_v21 = vsel %vm487_vm14, %v3373_v20, %v1090_v30  ;;  %v1234_v16 = vsel %vm478_vm10, %v3374_v36, %v1232_v33  ;;  %v1563_v6 = vrot.slane %v3371_v24, 6  ;;  %v1565_v59 = vrot.slane %v2611_v58, 5 }
  0xf5   : > { %v1128_v0 = vpack.c.b16 %v1092_v21, %v1078_v57  ;;  %v1235_v43 = vsel %vm481_vm12, %v2532_v18, %v1234_v16  ;;  %v1421_v13 = vsel %vm475_vm8, %v1420_v5, %v1419_v2  ;;  %v3376_v57 = vrot.slane %v2536_v52, 6 }
  0xf6   : > { %v1237_v38 = vsel %vm484_vm13, %v3375_v56, %v1235_v43  ;;  %v1424_v25 = vpack.c.b16 %v1421_v13, %v1421_v13  ;;  %v1567_v11 = vrot.slane %v2633_v22, 4  ;;  %v1387_v61 = vrot.slane %v2609_v4, 6 }
  0xf7   : > { %1938 = vmatpush3.bf16.msra.mxu0 %v1128_v0  ;;  %v1239_v23 = vsel %vm487_vm14, %v3376_v57, %v1237_v38  ;;  %v1564_v3 = vsel %vm469_vm6, %v1563_v6, %v1562_v34  ;;  %v1388_v54 = vrot.slane %v2631_v27, 5  ;;  %v1390_v45 = vrot.slane %v2649_v12, 4 }
  0xf8   : > { %v1275_v26 = vpack.c.b16 %v1239_v23, %v1225_v39  ;;  %1953 = vmatprep.subr.bf16.mxu0 %v3355_v7  ;;  %v1428_v58 = vsel %vm546_vm11, %v1424_v25, 0  ;;  %v1566_v44 = vsel %vm472_vm7, %v1565_v59, %v1564_v3  ;;  %v1392_v32 = vrot.slane %v2664_v10, 3 }
  0xf9   : > { %v1394_v63 = vrot.slane %v2651_v15, 2  ;;  %v1568_v22 = vsel %vm475_vm8, %v1567_v11, %v1566_v44  ;;  %v1389_v60 = vsel %vm469_vm6, %v1388_v54, %v1387_v61  ;;  %v1396_v46 = vrot.slane %v2686_v17, 1 }
  0xfa   : > { %1948 = vmatpush3.bf16.msra.mxu1 %v1275_v26  ;;  %1940 = vmatmul.mubr.msk.bf16.vlgmr.msra.gmra.mxu0 %vm542_vm15, %v2850_v29  ;;  %v1399_v24 = vrot.slane %v2742_v53, 7  ;;  %v1571_v51 = vpack.c.b16 %v1568_v22, %v1568_v22  ;;  %v1391_v14 = vsel %vm472_vm7, %v1390_v45, %v1389_v60  ;;  %v1408_v30 = vrot.slane %v2562_v62, 2  ;;  %v3378_v45 = vld [vmem:[#allocation4_spill] sm:$0xff] }
  0xfb   : > { %1963 = vmatprep.subr.bf16.mxu1 %v3355_v7  ;;  %1954 = vmatpush3.bf16.msra.mxu0 %v1428_v58  ;;  %v1410_v39 = vrot.slane %v2702_v49, 1  ;;  %v1393_v33 = vsel %vm475_vm8, %v1392_v32, %v1391_v14  ;;  %v1413_v9 = vrot.slane %v2758_v31, 7  ;;  %v1534_v20 = vrot.slane %v2609_v4, 7 }
  0xfc   : > { %1955 = vmatprep.subr.bf16.mxu0 %v3355_v7  ;;  %v1535_v21 = vrot.slane %v2631_v27, 6  ;;  %1959 = vmatprep.mubr.msk.bf16.mxu0 %vm2132_vm9, %v3355_v7  ;;  %v1575_v36 = vsel %vm546_vm11, %v1571_v51, 0  ;;  %v1395_v16 = vsel %vm478_vm10, %v1394_v63, %v1393_v33  ;;  %v1409_v5 = vsel %vm478_vm10, %v1408_v30, %v3377_v37 }
  0xfd   : > { %1950 = vmatmul.mubr.msk.bf16.vlgmr.msra.gmra.mxu1 %vm542_vm15, %v2850_v29  ;;  %v1537_v0 = vrot.slane %v2649_v12, 5  ;;  %v1397_v4 = vsel %vm481_vm12, %v1396_v46, %v1395_v16  ;;  %v1411_v27 = vsel %vm481_vm12, %v1410_v39, %v1409_v5  ;;  %v1539_v2 = vrot.slane %v2664_v10, 4 }
  0xfe   : > { %1964 = vmatpush3.bf16.msra.mxu1 %v1575_v36  ;;  %v1536_v43 = vsel %vm469_vm6, %v1535_v21, %v1534_v20  ;;  %1969 = vmatprep.mubr.msk.bf16.mxu1 %vm2132_vm9, %v3355_v7  ;;  %v1398_v34 = vsel %vm484_vm13, %v2719_v35, %v1397_v4  ;;  %v1412_v12 = vsel %vm484_vm13, %v2721_v48, %v1411_v27  ;;  %v1541_v38 = vrot.slane %v2651_v15, 3  ;;  %v3380_v36 = vld [vmem:[#allocation6_spill] sm:$0xff] }
  0xff   : > { %1965 = vmatprep.subr.bf16.mxu1 %v3355_v7  ;;  %v1538_v56 = vsel %vm472_vm7, %v1537_v0, %v1536_v43  ;;  %v1400_v13 = vsel %vm487_vm14, %v1399_v24, %v1398_v34  ;;  %v1414_v6 = vsel %vm487_vm14, %v1413_v9, %v1412_v12  ;;  %v1543_v59 = vrot.slane %v2686_v17, 2 }
 0x100   : > { %v1540_v10 = vsel %vm475_vm8, %v1539_v2, %v1538_v56  ;;  %v1423_v57 = vpack.c.b16 %v1414_v6, %v1400_v13  ;;  %v1545_v23 = vrot.slane %v2719_v35, 1  ;;  %v1555_v25 = vrot.slane %v2562_v62, 3 }
 0x101   : > { %v1527_v11 = vrot.slane %v2530_v42, 3  ;;  %v1542_v61 = vsel %vm478_vm10, %v1541_v38, %v1540_v10  ;;  %v1557_v26 = vrot.slane %v2702_v49, 2  ;;  %v1559_v15 = vrot.slane %v2721_v48, 1  ;;  %v3379_v49 = vld [vmem:[#allocation5_spill] sm:$0xff] }
 0x102   : > { %v1366_v3 = vrot.slane %v2760_v8, 2  ;;  %1956 = vmatpush3.bf16.msra.mxu0 %v1423_v57  ;;  %v1544_v54 = vsel %vm481_vm12, %v1543_v59, %v1542_v61  ;;  %v1556_v17 = vsel %vm478_vm10, %v1555_v25, %v3378_v45  ;;  %v1368_v35 = vrot.slane %v2782_v55, 1  ;;  %v3190_v25 = vpop.permute.xlu0 %357 }
 0x103   : > { %v1529_v62 = vrot.slane %v2532_v18, 2  ;;  %v1546_v58 = vsel %vm484_vm13, %v1545_v23, %v1544_v54  ;;  %v1558_v44 = vsel %vm481_vm12, %v1557_v26, %v1556_v17  ;;  %1957 = vmatprep.subr.bf16.mxu0 %v3355_v7  ;;  %v1373_v32 = vrot.slane %v2666_v1, 6 }
 0x104   : > { %v1367_v48 = vsel %vm478_vm10, %v1366_v3, %v3379_v49  ;;  %v1560_v63 = vsel %vm484_vm13, %v1559_v15, %v1558_v44  ;;  %v1371_v22 = vrot.slane %v2810_v47, 7  ;;  %v1374_v60 = vrot.slane %v2684_v50, 5 }
 0x105   : > { %v1376_v46 = vrot.slane %v2704_v41, 4  ;;  %v1547_v24 = vsel %vm487_vm14, %v2742_v53, %v1546_v58  ;;  %v1561_v51 = vsel %vm487_vm14, %v2758_v31, %v1560_v63  ;;  %v1378_v14 = vrot.slane %v2740_v28, 3 }
 0x106   : > { %v1513_v30 = vrot.slane %v2760_v8, 3  ;;  %v1570_v39 = vpack.c.b16 %v1561_v51, %v1547_v24  ;;  %v1369_v33 = vsel %vm481_vm12, %v1368_v35, %v1367_v48  ;;  %v1375_v9 = vsel %vm469_vm6, %v1374_v60, %v1373_v32 }
 0x107   : > { %v1515_v20 = vrot.slane %v2782_v55, 2  ;;  %v1377_v21 = vsel %vm472_vm7, %v1376_v46, %v1375_v9  ;;  %v1517_v53 = vrot.slane %v2784_v19, 1  ;;  %v1520_v31 = vrot.slane %v2666_v1, 7 }
 0x108   : > { %v1514_v16 = vsel %vm478_vm10, %v1513_v30, %v3380_v36  ;;  %1966 = vmatpush3.bf16.msra.mxu1 %v1570_v39  ;;  %v1379_v37 = vsel %vm475_vm8, %v1378_v14, %v1377_v21  ;;  %v1521_v5 = vrot.slane %v2684_v50, 6  ;;  %v1523_v0 = vrot.slane %v2704_v41, 5 }
 0x109   : > { %v1516_v8 = vsel %vm481_vm12, %v1515_v20, %v1514_v16  ;;  %1967 = vmatprep.subr.bf16.mxu1 %v3355_v7  ;;  %v1370_v55 = vsel %vm484_vm13, %v2784_v19, %v1369_v33  ;;  %v3381_v4 = vrot.slane %v2530_v42, 2  ;;  %v1525_v43 = vrot.slane %v2740_v28, 4 }
 0x10a   : > { %v1518_v1 = vsel %vm484_vm13, %v1517_v53, %v1516_v8  ;;  %v1372_v2 = vsel %vm487_vm14, %v1371_v22, %v1370_v55  ;;  %v3382_v34 = vrot.slane %v2532_v18, 1  ;;  %v1522_v7 = vsel %vm469_vm6, %v1521_v5, %v1520_v31 }
 0x10b   : > { %v1381_v27 = vsel %vm478_vm10, %v3381_v4, %v1379_v37  ;;  %v1519_v41 = vsel %vm487_vm14, %v2810_v47, %v1518_v1  ;;  %v1524_v19 = vsel %vm472_vm7, %v1523_v0, %v1522_v7  ;;  %v1531_v12 = vrot.slane %v2534_v40, 1 }
 0x10c   : > { %v1383_v50 = vsel %vm481_vm12, %v3382_v34, %v1381_v27  ;;  %v3383_v28 = vrot.slane %v2536_v52, 7  ;;  %v1526_v18 = vsel %vm475_vm8, %v1525_v43, %v1524_v19  ;;  %v597_v23 = vlaneseq }
 0x10d   : > { %v1384_v42 = vsel %vm484_vm13, %v2534_v40, %v1383_v50  ;;  %v1528_v13 = vsel %vm478_vm10, %v1527_v11, %v1526_v18  ;;  %v2134_v40 = vmov 1966171168  }
 0x10e   : > { %v1386_v56 = vsel %vm487_vm14, %v3383_v28, %v1384_v42  ;;  %v1530_v47 = vsel %vm481_vm12, %v1529_v62, %v1528_v13  ;;  %v595_v57 = vunpack.c.l.s4 %v2134_v40  ;;  %v598_v61 = vshrl.u32 %v597_v23, 7 }
 0x10f   : > { %v1422_v38 = vpack.c.b16 %v1386_v56, %v1372_v2  ;;  %v1532_v6 = vsel %vm484_vm13, %v1531_v12, %v1530_v47 }
 0x110   : > { %v1533_v10 = vsel %vm487_vm14, %v2536_v52, %v1532_v6  ;;  %v596_v11 = vunpack.c.0.s8 %v595_v57 }
 0x111   : > { %1958 = vmatpush3.bf16.msra.mxu0 %v1422_v38  ;;  %v1569_v59 = vpack.c.b16 %v1533_v10, %v1519_v41 }
 0x112   : > { %v3195_v54 = vsub.s32 %v596_v11, %v598_v61 }
 0x113   : > { %1968 = vmatpush3.bf16.msra.mxu1 %v1569_v59 }
 0x114   : > { %1960 = vmatmul.mubr.msk.bf16.vlgmr.msra.gmra.mxu0 %vm542_vm15, %v2850_v29 }
 0x116   : > { %1970 = vmatmul.mubr.msk.bf16.vlgmr.msra.gmra.mxu1 %vm542_vm15, %v2850_v29 }
 0x192   : > { %v584_v26 = vpop.f32.mrf.mxu0  ;;  %v731_v15 = vpop.f32.mrf.mxu1 }
 0x193   : > { %v585_v52 = vadd.f32 %v584_v26, %v3190_v25  ;;  %v732_v3 = vadd.f32 %v731_v15, %v3190_v25 }
 0x194   : > { %v1901_v45 = vpop.f32.mrf.mxu0  ;;  %v1911_v17 = vpop.f32.mrf.mxu1 }
 0x195   : > { %vm590_vm0 = vcmp.ge.f32.partialorder %v585_v52, 0.0  ;;  %v591_v29 = vmul.f32 0.01, %v585_v52  ;;  %vm737_vm1 = vcmp.ge.f32.partialorder %v732_v3, 0.0  ;;  %v738_v35 = vmul.f32 0.01, %v732_v3 }
 0x196   : > { %v587_v62 = vpop.f32.mrf.mxu0  ;;  %v734_v58 = vpop.f32.mrf.mxu1 }
 0x197   : > { %v592_v44 = vsel %vm590_vm0, %v585_v52, %v591_v29  ;;  %v739_v49 = vsel %vm737_vm1, %v732_v3, %v738_v35 }
 0x198   : > { %v600_v48 = vrot.slane %v592_v44, %v3195_v54  ;;  %v747_v32 = vrot.slane %v739_v49, %v3195_v54  ;;  %v1902_v63 = vpop.f32.mrf.mxu0  ;;  %v1912_v22 = vpop.f32.mrf.mxu1 }
 0x19a   : > { %v601_v60 = vcombine.high %v600_v48, %v600_v48  ;;  %v608_v46 = vrot.slane %v600_v48, %v3195_v54  ;;  %v748_v24 = vcombine.high %v747_v32, %v747_v32  ;;  %v755_v51 = vrot.slane %v747_v32, %v3195_v54 }
 0x19c   : > { %v615_v14 = vrot.slane %v601_v60, %v3195_v54  ;;  %v616_v30 = vcombine.high %v608_v46, %v608_v46  ;;  %623 = vst.msk [vmem:[%s3202_s12] sm:$0x1] %vm622_vm2, %v608_v46  ;;  %v762_v39 = vrot.slane %v748_v24, %v3195_v54  ;;  %v763_v33 = vcombine.high %v755_v51, %v755_v51 }
 0x19d   : > { %769 = vst.msk [vmem:[%s3202_s12 + $0x1] sm:$0x1] %vm622_vm2, %v755_v51 }
 0x19e   : > { %v617_v9 = vcombine.high %v615_v14, %v615_v14  ;;  %624 = vst.msk [vmem:[%s3202_s12 + $0x8] sm:$0x1] %vm622_vm2, %v615_v14  ;;  %625 = vst.msk [vmem:[%s3202_s12 + $0x10] sm:$0x1] %vm622_vm2, %v616_v30  ;;  %v764_v20 = vcombine.high %v762_v39, %v762_v39 }
 0x19f   : > { %770 = vst.msk [vmem:[%s3202_s12 + $0x9] sm:$0x1] %vm622_vm2, %v762_v39  ;;  %771 = vst.msk [vmem:[%s3202_s12 + $0x11] sm:$0x1] %vm622_vm2, %v763_v33 }
 0x1a0   : > { %626 = vst.msk [vmem:[%s3202_s12 + $0x18] sm:$0x1] %vm622_vm2, %v617_v9  ;;  %772 = vst.msk [vmem:[%s3202_s12 + $0x19] sm:$0x1] %vm622_vm2, %v764_v20 }
 0x1a1   : > { %v877_v21 = vpop.f32.mrf.mxu0 }
 0x1a2   : > { %v878_v36 = vadd.f32 %v877_v21, %v3190_v25 }
 0x1a3   : > { %v1921_v16 = vpop.f32.mrf.mxu0 }
 0x1a4   : > { %vm883_vm3 = vcmp.ge.f32.partialorder %v878_v36, 0.0  ;;  %v884_v53 = vmul.f32 0.01, %v878_v36 }
 0x1a5   : > { %v1023_v31 = vpop.f32.mrf.mxu1  ;;  %v880_v8 = vpop.f32.mrf.mxu0 }
 0x1a6   : > { %v1024_v37 = vadd.f32 %v1023_v31, %v3190_v25  ;;  %v885_v5 = vsel %vm883_vm3, %v878_v36, %v884_v53 }
 0x1a7   : > { %v1931_v0 = vpop.f32.mrf.mxu1  ;;  %v893_v55 = vrot.slane %v885_v5, %v3195_v54  ;;  %v1922_v27 = vpop.f32.mrf.mxu0 }
 0x1a8   : > { %vm1029_vm4 = vcmp.ge.f32.partialorder %v1024_v37, 0.0  ;;  %v1030_v4 = vmul.f32 0.01, %v1024_v37 }
 0x1a9   : > { %v1026_v1 = vpop.f32.mrf.mxu1  ;;  %v894_v43 = vcombine.high %v893_v55, %v893_v55  ;;  %v901_v2 = vrot.slane %v893_v55, %v3195_v54 }
 0x1aa   : > { %v1031_v34 = vsel %vm1029_vm4, %v1024_v37, %v1030_v4 }
 0x1ab   : > { %v1039_v50 = vrot.slane %v1031_v34, %v3195_v54  ;;  %v1932_v41 = vpop.f32.mrf.mxu1  ;;  %v908_v7 = vrot.slane %v894_v43, %v3195_v54  ;;  %v909_v42 = vcombine.high %v901_v2, %v901_v2  ;;  %915 = vst.msk [vmem:[%s3202_s12 + $0x2] sm:$0x1] %vm622_vm2, %v901_v2 }
 0x1ad   : > { %v1040_v19 = vcombine.high %v1039_v50, %v1039_v50  ;;  %v1047_v12 = vrot.slane %v1039_v50, %v3195_v54  ;;  %v910_v28 = vcombine.high %v908_v7, %v908_v7  ;;  %916 = vst.msk [vmem:[%s3202_s12 + $0xa] sm:$0x1] %vm622_vm2, %v908_v7  ;;  %917 = vst.msk [vmem:[%s3202_s12 + $0x12] sm:$0x1] %vm622_vm2, %v909_v42 }
 0x1af   : > { %v1054_v56 = vrot.slane %v1040_v19, %v3195_v54  ;;  %v1055_v18 = vcombine.high %v1047_v12, %v1047_v12  ;;  %1061 = vst.msk [vmem:[%s3202_s12 + $0x3] sm:$0x1] %vm622_vm2, %v1047_v12  ;;  %918 = vst.msk [vmem:[%s3202_s12 + $0x1a] sm:$0x1] %vm622_vm2, %v910_v28 }
 0x1b1   : > { %v1056_v38 = vcombine.high %v1054_v56, %v1054_v56  ;;  %1062 = vst.msk [vmem:[%s3202_s12 + $0xb] sm:$0x1] %vm622_vm2, %v1054_v56  ;;  %1063 = vst.msk [vmem:[%s3202_s12 + $0x13] sm:$0x1] %vm622_vm2, %v1055_v18 }
 0x1b3   : > { %1064 = vst.msk [vmem:[%s3202_s12 + $0x1b] sm:$0x1] %vm622_vm2, %v1056_v38 }
 0x1ba   : > { %v1170_v13 = vpop.f32.mrf.mxu0 }
 0x1bb   : > { %v1171_v47 = vadd.f32 %v1170_v13, %v3190_v25 }
 0x1bc   : > { %v1941_v6 = vpop.f32.mrf.mxu0 }
 0x1bd   : > { %vm1176_vm5 = vcmp.ge.f32.partialorder %v1171_v47, 0.0  ;;  %v1177_v10 = vmul.f32 0.01, %v1171_v47  ;;  %v1317_v59 = vpop.f32.mrf.mxu1 }
 0x1be   : > { %v1318_v40 = vadd.f32 %v1317_v59, %v3190_v25  ;;  %v1173_v57 = vpop.f32.mrf.mxu0 }
 0x1bf   : > { %v1178_v23 = vsel %vm1176_vm5, %v1171_v47, %v1177_v10  ;;  %v1951_v11 = vpop.f32.mrf.mxu1 }
 0x1c0   : > { %v1186_v61 = vrot.slane %v1178_v23, %v3195_v54  ;;  %vm1323_vm6 = vcmp.ge.f32.partialorder %v1318_v40, 0.0  ;;  %v1324_v26 = vmul.f32 0.01, %v1318_v40  ;;  %v1942_v15 = vpop.f32.mrf.mxu0 }
 0x1c1   : > { %v1320_v52 = vpop.f32.mrf.mxu1 }
 0x1c2   : > { %v1187_v3 = vcombine.high %v1186_v61, %v1186_v61  ;;  %v1194_v45 = vrot.slane %v1186_v61, %v3195_v54  ;;  %v1325_v17 = vsel %vm1323_vm6, %v1318_v40, %v1324_v26 }
 0x1c3   : > { %v1333_v29 = vrot.slane %v1325_v17, %v3195_v54  ;;  %v1952_v35 = vpop.f32.mrf.mxu1 }
 0x1c4   : > { %v1201_v62 = vrot.slane %v1187_v3, %v3195_v54  ;;  %v1202_v58 = vcombine.high %v1194_v45, %v1194_v45  ;;  %1208 = vst.msk [vmem:[%s3202_s12 + $0x4] sm:$0x1] %vm622_vm2, %v1194_v45 }
 0x1c5   : > { %v1334_v44 = vcombine.high %v1333_v29, %v1333_v29  ;;  %v1341_v49 = vrot.slane %v1333_v29, %v3195_v54 }
 0x1c6   : > { %v1203_v48 = vcombine.high %v1201_v62, %v1201_v62  ;;  %1209 = vst.msk [vmem:[%s3202_s12 + $0xc] sm:$0x1] %vm622_vm2, %v1201_v62  ;;  %1210 = vst.msk [vmem:[%s3202_s12 + $0x14] sm:$0x1] %vm622_vm2, %v1202_v58 }
 0x1c7   : > { %v1348_v32 = vrot.slane %v1334_v44, %v3195_v54  ;;  %v1349_v63 = vcombine.high %v1341_v49, %v1341_v49  ;;  %1355 = vst.msk [vmem:[%s3202_s12 + $0x5] sm:$0x1] %vm622_vm2, %v1341_v49 }
 0x1c8   : > { %1211 = vst.msk [vmem:[%s3202_s12 + $0x1c] sm:$0x1] %vm622_vm2, %v1203_v48 }
 0x1c9   : > { %v1350_v22 = vcombine.high %v1348_v32, %v1348_v32  ;;  %1356 = vst.msk [vmem:[%s3202_s12 + $0xd] sm:$0x1] %vm622_vm2, %v1348_v32  ;;  %1357 = vst.msk [vmem:[%s3202_s12 + $0x15] sm:$0x1] %vm622_vm2, %v1349_v63 }
 0x1cb   : > { %1358 = vst.msk [vmem:[%s3202_s12 + $0x1d] sm:$0x1] %vm622_vm2, %v1350_v22 }
 0x1d4   : > { %v1464_v60 = vpop.f32.mrf.mxu0 }
 0x1d5   : > { %v1465_v46 = vadd.f32 %v1464_v60, %v3190_v25 }
 0x1d6   : > { %v1961_v24 = vpop.f32.mrf.mxu0  ;;  %v1611_v14 = vpop.f32.mrf.mxu1 }
 0x1d7   : > { %vm1470_vm7 = vcmp.ge.f32.partialorder %v1465_v46, 0.0  ;;  %v1471_v51 = vmul.f32 0.01, %v1465_v46  ;;  %v1612_v33 = vadd.f32 %v1611_v14, %v3190_v25 }
 0x1d8   : > { %v1467_v30 = vpop.f32.mrf.mxu0  ;;  %v1971_v20 = vpop.f32.mrf.mxu1 }
 0x1d9   : > { %v1472_v39 = vsel %vm1470_vm7, %v1465_v46, %v1471_v51  ;;  %vm1617_vm8 = vcmp.ge.f32.partialorder %v1612_v33, 0.0  ;;  %v1618_v36 = vmul.f32 0.01, %v1612_v33 }
 0x1da   : > { %v1480_v9 = vrot.slane %v1472_v39, %v3195_v54  ;;  %v1962_v21 = vpop.f32.mrf.mxu0  ;;  %v1614_v31 = vpop.f32.mrf.mxu1 }
 0x1db   : > { %v1619_v37 = vsel %vm1617_vm8, %v1612_v33, %v1618_v36 }
 0x1dc   : > { %v1481_v16 = vcombine.high %v1480_v9, %v1480_v9  ;;  %v1488_v53 = vrot.slane %v1480_v9, %v3195_v54  ;;  %v1627_v5 = vrot.slane %v1619_v37, %v3195_v54  ;;  %v1972_v0 = vpop.f32.mrf.mxu1 }
 0x1de   : > { %v1495_v8 = vrot.slane %v1481_v16, %v3195_v54  ;;  %v1496_v25 = vcombine.high %v1488_v53, %v1488_v53  ;;  %1502 = vst.msk [vmem:[%s3202_s12 + $0x6] sm:$0x1] %vm622_vm2, %v1488_v53  ;;  %v1628_v4 = vcombine.high %v1627_v5, %v1627_v5  ;;  %v1635_v27 = vrot.slane %v1627_v5, %v3195_v54 }
 0x1e0   : > { %v1497_v55 = vcombine.high %v1495_v8, %v1495_v8  ;;  %1503 = vst.msk [vmem:[%s3202_s12 + $0xe] sm:$0x1] %vm622_vm2, %v1495_v8  ;;  %1504 = vst.msk [vmem:[%s3202_s12 + $0x16] sm:$0x1] %vm622_vm2, %v1496_v25  ;;  %v1642_v1 = vrot.slane %v1628_v4, %v3195_v54  ;;  %v1643_v43 = vcombine.high %v1635_v27, %v1635_v27  ;;  %1659 = sbr.rel (!%p2214_p6) target bundleno = 493 (0x1ed), region = 36 }
 0x1e1   : > { %1649 = vst.msk [vmem:[%s3202_s12 + $0x7] sm:$0x1] %vm622_vm2, %v1635_v27 }
 0x1e2   : > { %1505 = vst.msk [vmem:[%s3202_s12 + $0x1e] sm:$0x1] %vm622_vm2, %v1497_v55  ;;  %v1644_v2 = vcombine.high %v1642_v1, %v1642_v1  ;;  %1650 = vst.msk [vmem:[%s3202_s12 + $0xf] sm:$0x1] %vm622_vm2, %v1642_v1 }
 0x1e3   : > { %1651 = vst.msk [vmem:[%s3202_s12 + $0x17] sm:$0x1] %vm622_vm2, %v1643_v43 }
 0x1e4   : > { %1652 = vst.msk [vmem:[%s3202_s12 + $0x1f] sm:$0x1] %vm622_vm2, %v1644_v2 }
 0x1e8   : > { %v1700_v54 = vld [vmem:[%s3202_s12] sm:$0xff] }
 0x1e9   : > { %v1702_v34 = vld [vmem:[%s3202_s12 + $0x8] sm:$0xff]  ;;  %1701 = vst [vmem:[%s1665_s25] sm:$0xff] %v1700_v54 }
 0x1ea   : > { %v1704_v50 = vld [vmem:[%s3202_s12 + $0x10] sm:$0xff]  ;;  %1703 = vst [vmem:[%s1665_s25 + $0x10] sm:$0xff] %v1702_v34 }
 0x1eb   : > { %v1706_v41 = vld [vmem:[%s3202_s12 + $0x18] sm:$0xff]  ;;  %1705 = vst [vmem:[%s1665_s25 + $0x20] sm:$0xff] %v1704_v50 }
 0x1ec   : > { %1707 = vst [vmem:[%s1665_s25 + $0x30] sm:$0xff] %v1706_v41 }
 0x1ed PF: > { %s13_s20 = sadd.s32 1, %s2127_s20   ;;  %s3384_s12 = smov %s2099_s13 }
 0x1ee   : > { %p10_p12 = scmp.ge.s32.totalorder %s13_s20, 18   ;;  %s3385_s13 = smov %s2228_s5 }
 0x1ef   : > { %s3386_s14 = smov %s2115_s17  ;;  %s3387_s15 = smov %s2119_s18 }
 0x1f0   : > { %s3388_s16 = smov %s2123_s19  ;;  %s3389_s17 = smov %s3393_s21 }
 0x1f1   : > { %s3390_s18 = smov %s3397_s22  ;;  %s3391_s19 = smov %s3401_s24 }
 0x1f2   :  { %12 = sbr.rel (!%p10_p12) target bundleno = 5 (0x5), region = 104 }

// kernel: hyper_decoder_forward.4
= control target key start
LH: loop header
LB: loop body
LE: loop exit
PB: predicated region body
PF: predicated region fallthrough
CT: control target
= control target key end

     0   :  { %s2155_s12 = smov 0   ;;  %s2157_s13 = smov 0   ;;  %s3332_s0 = inlined_call_operand.vmem [shape: bf16[2,4,34,34], index: 0, kind: input, shape index: {}]   ;;  %s3333_s1 = inlined_call_operand.vmem [shape: bf16[4,4,36], index: 1, kind: input, shape index: {}]   ;;  %s3334_s2 = inlined_call_operand.vmem [shape: f32[4,1], index: 2, kind: input, shape index: {}]   ;;  %s3335_s3 = inlined_call_operand.vmem [shape: f32[4,2,4,32,32], index: 3, kind: output, shape index: {}]  }
   0x1   :  { %s2159_s14 = smov 0   ;;  %s2161_s15 = smov 0  }
   0x2   :  { %s2163_s16 = smov 0   ;;  %s2165_s17 = smov 0  }
   0x3   :  { %s2167_s18 = smov 0   ;;  %s2169_s19 = smov 0  }
   0x4   :  { %s2171_s20 = smov 0  }
   0x5 LB: > { %s25_s21 = sadd.s32 1, %s2115_s17  ;;  %s28_s22 = sadd.s32 1, %s2119_s18  ;;  %s2127_s20 = sphi %s2171_s20, %s13_s20   ;;  %s2123_s19 = sphi %s2169_s19, %s3391_s19   ;;  %s2119_s18 = sphi %s2167_s18, %s3390_s18   ;;  %s2115_s17 = sphi %s2165_s17, %s3389_s17   ;;  %s2111_s16 = sphi %s2163_s16, %s3388_s16   ;;  %s2107_s15 = sphi %s2161_s15, %s3387_s15   ;;  %s2103_s14 = sphi %s2159_s14, %s3386_s14   ;;  %s2099_s13 = sphi %s2157_s13, %s3385_s13   ;;  %s2095_s12 = sphi %s2155_s12, %s3384_s12  }
   0x6   : > { %p26_p0 = scmp.ge.s32.totalorder %s25_s21, 4  ;;  %s1797_s23 = sadd.s32 4294967295, %s2127_s20  }
   0x7   : > { %s32_s24 = sadd.s32 1, %s2123_s19  ;;  %p126_p1 = scmp.ne.s32.totalorder %s2099_s13, %s2095_s12 }
   0x8   : > { %s3393_s21 = smov (%p26_p0, %s25_s21), 0  ;;  %s3395_s22 = smov (!%p26_p0, %s28_s22), %s2119_s18 }
   0x9   : > { %p30_p2 = scmp.ge.s32.totalorder %s3395_s22, 4  ;;  %p127_p3 = scmp.eq.s32.totalorder %s1797_s23, 31 }
   0xa   : > { %p1801_p4 = scmp.ge.s32.totalorder %s2127_s20, 1  ;;  %p169_p5 = scmp.lt.s32.totalorder %s2127_s20, 33 }
   0xb   : > { %s3397_s22 = smov (%p30_p2, %s3395_s22), 0  ;;  %s3399_s24 = smov (!%p30_p2, %s32_s24), %s2123_s19 }
   0xc   : > { %p2214_p6 = por %p127_p3, %p126_p1  ;;  %p34_p7 = scmp.ge.s32.totalorder %s3399_s24, 2 }
   0xd   : > { %p170_p8 = pnand %p1801_p4, %p169_p5  ;;  %s109_s26 = ssub.s32 %s2119_s18, %s3397_s22 }
   0xe   : > { %s3401_s24 = smov (%p34_p7, %s3399_s24), 0  ;;  %s112_s27 = ssub.s32 %s2115_s17, %s3393_s21 }
   0xf   : > { %s110_s28 = ssub.s32 %s2123_s19, %s3401_s24  ;;  %s116_s4 = sadd.s32 1, %s2099_s13 }
  0x10   : > { %s111_s29 = sor.u32 %s110_s28, %s109_s26  ;;  %173 = sbr.rel (%p170_p8) target bundleno = 493 (0x1ed), region = 32 }
  0x11   : > { %s113_s30 = sor.u32 %s112_s27, %s111_s29 }
  0x12   : > { %p114_p9 = scmp.eq.s32.totalorder %s113_s30, 0 }
  0x14   : > { %s2228_s5 = scalar_select %p114_p9, %s2099_s13, %s116_s4  }
  0x15   : > { %p196_p10 = scmp.lt.s32.totalorder %s2111_s16, 1  ;;  %s1805_s6 = sshll.u32 %s2103_s14, 3  ;;  %vm320_vm0 = vcmask 1042432   ;;  %vm321_vm1 = vcmask 1046532   ;;  %vm241_vm3 = vsmask.f32 3328 }
  0x16   : > { %s209_s7 = sshra.s32 %s1805_s6, 3  ;;  %vm2236_vm2 = vmor %vm320_vm0, %vm321_vm1  ;;  %s2129_s28 = smov 126   ;;  %vm242_vm4 = vsmask.f32 7440  ;;  %vm469_vm6 = vcmask 1041409   ;;  %vm472_vm7 = vcmask 1042434  }
  0x17   : > { %s197_s8 = scalar_select %p196_p10, %s2111_s16, 1  ;;  %vm2269_vm5 = vmor %vm241_vm3, %vm242_vm4  ;;  %v3336_v63 = vmov 0.0   ;;  %vm475_vm8 = vcmask 1043459   ;;  %vm2132_vm9 = vmmov 0   ;;  %vm478_vm10 = vcmask 1044484  }
  0x18   : > { %s1806_s10 = sshll.u32 %s209_s7, 2  ;;  %s2130_s29 = smov 127   ;;  %1893 = vmatprep.subr.bf16.mxu0 %v3336_v63  ;;  %1903 = vmatprep.subr.bf16.mxu1 %v3336_v63  ;;  %vm546_vm11 = vcmask 1041408   ;;  %vm481_vm12 = vcmask 1045509   ;;  %vm484_vm13 = vcmask 1046534   ;;  %vm487_vm14 = vcmask 1047559  }
  0x19   : > { %s1973_s9 = smul.u32 80, %s197_s8  ;;  %1899 = vmatprep.mubr.msk.bf16.mxu0 %vm2132_vm9, %v3336_v63  ;;  %1909 = vmatprep.mubr.msk.bf16.mxu1 %vm2132_vm9, %v3336_v63  ;;  %p201_p11 = scmp.lt.s32.totalorder %s2107_s15, 3  ;;  %vm542_vm15 = vcmask 293888  }
  0x1a   : > { %s193_s11 = sand.u32 1, %s2095_s12  }
  0x1b   : > { %s200_s26 = scalar_lea.vmem %s3332_s0, %s1973_s9  ;;  %s1802_s23 = sshll.u32 %s193_s11, 5 }
  0x1c   : > { %s212_s27 = scalar_lea.vmem %s200_s26, %s1806_s10  ;;  %s3202_s12 = scalar_lea.vmem [#allocation2], %s1802_s23 }
  0x1d   : > { %v2240_v1 = vld [vmem:[%s212_s27] sm:$0xf]  ;;  %v214_v2 = vld [vmem:[%s212_s27 + $0x4] sm:$0x1]  ;;  %v2242_v3 = vld [vmem:[%s212_s27 + $0x14] sm:$0xf] }
  0x1e   : > { %v1807_v4 = vrot.slane %v2240_v1, 9  ;;  %v325_v5 = vrot.slane %v214_v2, 5  ;;  %v216_v6 = vld [vmem:[%s212_s27 + $0x18] sm:$0x1]  ;;  %v1808_v7 = vrot.slane %v2242_v3, 9  ;;  %v245_v9 = vshrl.u32 %v2240_v1, 16 }
  0x1f   : > { %v329_v8 = vrot.slane %v216_v6, 5  ;;  %v248_v10 = vshll.u32 %v2240_v1, 16  ;;  %v2248_v11 = vld [vmem:[%s212_s27 + $0x28] sm:$0xf]  ;;  %v254_v13 = vshll.u32 %v214_v2, 16  ;;  %v259_v20 = vshrl.u32 %v2242_v3, 16 }
  0x20   : > { %v326_v12 = vsel %vm2236_vm2, %v1807_v4, %v325_v5  ;;  %v218_v14 = vld [vmem:[%s212_s27 + $0x2c] sm:$0x1]  ;;  %v247_v15 = vrot.slane %v245_v9, 4  ;;  %v1809_v18 = vrot.slane %v2248_v11, 9  ;;  %v262_v21 = vshll.u32 %v2242_v3, 16  ;;  %s2796_s6 = scalar_select %p201_p11, %s2107_s15, 3 }
  0x21   : > { %347 = vrot.lane.b32.xlu0 %v326_v12, %s2129_s28  ;;  %339 = vrot.lane.b32.xlu1 %v326_v12, %s2130_s29  ;;  %v2256_v16 = vsel %vm2236_vm2, %v1808_v7, %v329_v8  ;;  %v250_v17 = vrot.slane %v248_v10, 5  ;;  %v333_v19 = vrot.slane %v218_v14, 5  ;;  %v2261_v22 = vld [vmem:[%s212_s27 + $0x3c] sm:$0xf]  ;;  %v220_v23 = vld [vmem:[%s212_s27 + $0x40] sm:$0x1]  ;;  %v1835_v27 = vcombine.low %v326_v12, %v326_v12 }
  0x22   : > { %v256_v25 = vrot.slane %v254_v13, 5  ;;  %v268_v26 = vshll.u32 %v216_v6, 16  ;;  %v1836_v28 = vcombine.low %v2256_v16, %v2256_v16  ;;  %v261_v30 = vrot.slane %v259_v20, 4  ;;  %s1804_s7 = sshll.u32 %s2796_s6, 1  ;;  %s1856_s26 = sshll.u32 (%p2214_p6), %s2111_s16, 4 }
  0x23   : > { %v251_v24 = vor.u32 %v250_v17, %v247_v15  ;;  %v264_v31 = vrot.slane %v262_v21, 5  ;;  %v2275_v33 = vsel %vm2236_vm2, %v1809_v18, %v333_v19  ;;  %v1810_v34 = vrot.slane %v2261_v22, 9  ;;  %s204_s10 = scalar_lea.vmem %s3333_s1, %s1804_s7  ;;  %s1857_s27 = sshll.u32 (%p2214_p6), %s2107_s15, 5 }
  0x24   : > { %v337_v35 = vrot.slane %v220_v23, 5  ;;  %v1837_v36 = vcombine.low %v2275_v33, %v2275_v33  ;;  %v270_v38 = vrot.slane %v268_v26, 5  ;;  %v273_v39 = vshrl.u32 %v2248_v11, 16 }
  0x25   : > { %349 = vrot.lane.b32.xlu0 %v2256_v16, %s2129_s28  ;;  %v252_v32 = vrot.slane %v251_v24, 4  ;;  %v265_v37 = vor.u32 %v264_v31, %v261_v30  ;;  %v276_v42 = vshll.u32 %v2248_v11, 16  ;;  %v282_v43 = vshll.u32 %v218_v14, 16 }
  0x26   : > { %v2287_v41 = vsel %vm2236_vm2, %v1810_v34, %v337_v35  ;;  %v2296_v46 = vunpack.c.l.b16 %v1835_v27  ;;  %v275_v47 = vrot.slane %v273_v39, 4  ;;  %v287_v49 = vshrl.u32 %v2261_v22, 16 }
  0x27   : > { %v2283_v40 = vsel %vm2269_vm5, %v252_v32, %v256_v25  ;;  %v266_v44 = vrot.slane %v265_v37, 4  ;;  %v1838_v45 = vcombine.low %v2287_v41, %v2287_v41  ;;  %v278_v48 = vrot.slane %v276_v42, 5 }
  0x28   : > { %300 = vrot.lane.b32.xlu1 %v2283_v40, %s2130_s29  ;;  %v2299_v50 = vunpack.c.l.b16 %v1836_v28  ;;  %v2301_v51 = vunpack.c.l.b16 %v1837_v36  ;;  %v290_v53 = vshll.u32 %v2261_v22, 16  ;;  %v284_v55 = vrot.slane %v282_v43, 5 }
  0x29   : > { %351 = vrot.lane.b32.xlu0 %v2275_v33, %s2129_s28  ;;  %v2305_v52 = vsel %vm2269_vm5, %v266_v44, %v270_v38  ;;  %v279_v54 = vor.u32 %v278_v48, %v275_v47  ;;  %v289_v56 = vrot.slane %v287_v49, 4  ;;  %v296_v57 = vshll.u32 %v220_v23, 16 }
  0x2a   : > { %v2310_v58 = vunpack.c.l.b16 %v1838_v45  ;;  %v292_v59 = vrot.slane %v290_v53, 5  ;;  %v517_v60 = vrot.slane %v2299_v50, 7  ;;  %v519_v0 = vrot.slane %v2301_v51, 6 }
  0x2b   : > { %v280_v61 = vrot.slane %v279_v54, 4  ;;  %v298_v62 = vrot.slane %v296_v57, 5  ;;  %v669_v6 = vrot.slane %v2296_v46, 1  ;;  %v671_v9 = vrot.slane %v2301_v51, 7 }
  0x2c   : > { %302 = vrot.lane.b32.xlu1 %v2305_v52, %s2130_s29  ;;  %v293_v2 = vor.u32 %v292_v59, %v289_v56  ;;  %v518_v4 = vsel %vm469_vm6, %v517_v60, %v2296_v46  ;;  %v521_v5 = vrot.slane %v2310_v58, 5  ;;  %v673_v10 = vrot.slane %v2310_v58, 6 }
  0x2d   : > { %353 = vrot.lane.b32.xlu0 %v2287_v41, %s2129_s28  ;;  %v2324_v7 = vsel %vm2269_vm5, %v280_v61, %v284_v55  ;;  %v520_v8 = vsel %vm472_vm7, %v519_v0, %v518_v4  ;;  %v670_v14 = vsel %vm469_vm6, %v2299_v50, %v669_v6  ;;  %v815_v15 = vrot.slane %v2296_v46, 2 }
  0x2e   : > { %v294_v12 = vrot.slane %v293_v2, 4  ;;  %v2334_v13 = vsel %vm475_vm8, %v521_v5, %v520_v8  ;;  %v816_v17 = vrot.slane %v2299_v50, 1  ;;  %v819_v18 = vrot.slane %v2310_v58, 7 }
  0x2f   : > { %v672_v20 = vsel %vm472_vm7, %v671_v9, %v670_v14  ;;  %v961_v25 = vrot.slane %v2296_v46, 3  ;;  %v962_v26 = vrot.slane %v2299_v50, 2  ;;  %v964_v28 = vrot.slane %v2301_v51, 1 }
  0x30   : > { %304 = vrot.lane.b32.xlu1 %v2324_v7, %s2130_s29  ;;  %v2343_v19 = vsel %vm2269_vm5, %v294_v12, %v298_v62  ;;  %v2347_v21 = vsel %vm475_vm8, %v673_v10, %v672_v20  ;;  %v817_v23 = vsel %vm469_vm6, %v816_v17, %v815_v15  ;;  %v1812_v32 = vcombine.low %v2242_v3, %v2242_v3 }
  0x31   : > { %308 = vrot.lane.b32.xlu0 %v2283_v40, %s2129_s28  ;;  %v818_v24 = vsel %vm472_vm7, %v2301_v51, %v817_v23  ;;  %v963_v29 = vsel %vm469_vm6, %v962_v26, %v961_v25  ;;  %v1813_v34 = vcombine.low %v2248_v11, %v2248_v11  ;;  %v1811_v35 = vcombine.low %v2240_v1, %v2240_v1 }
  0x32   : > { %v2359_v27 = vsel %vm475_vm8, %v819_v18, %v818_v24  ;;  %v965_v30 = vsel %vm472_vm7, %v964_v28, %v963_v29  ;;  %v1814_v36 = vcombine.low %v2261_v22, %v2261_v22  ;;  %v2384_v37 = vunpack.c.l.b16 %v1812_v32 }
  0x33   : > { %v2370_v31 = vsel %vm475_vm8, %v2310_v58, %v965_v30  ;;  %v2386_v38 = vunpack.c.l.b16 %v1813_v34  ;;  %v2388_v39 = vunpack.c.l.b16 %v1811_v35  ;;  %v1107_v57 = vrot.slane %v2296_v46, 4 }
  0x34   : > { %306 = vrot.lane.b32.xlu1 %v2343_v19, %s2130_s29  ;;  %v2390_v42 = vunpack.c.l.b16 %v1814_v36  ;;  %v468_v43 = vrot.slane %v2384_v37, 7  ;;  %v1108_v59 = vrot.slane %v2299_v50, 3  ;;  %v774_v62 = vrot.slane %v2384_v37, 1 }
  0x35   : > { %233 = vrot.lane.b32.xlu0 %v2240_v1, %s2129_s28  ;;  %v627_v47 = vrot.slane %v2388_v39, 1  ;;  %v629_v49 = vrot.slane %v2386_v38, 7  ;;  %v773_v61 = vrot.slane %v2388_v39, 2  ;;  %v1254_v4 = vrot.slane %v2296_v46, 5 }
  0x36   : > { %v470_v44 = vsel %vm469_vm6, %v468_v43, %v2388_v39  ;;  %v474_v45 = vrot.slane %v2390_v42, 5  ;;  %v631_v54 = vrot.slane %v2390_v42, 6  ;;  %v777_v0 = vrot.slane %v2390_v42, 7 }
  0x37   : > { %v628_v53 = vsel %vm469_vm6, %v2384_v37, %v627_v47  ;;  %v775_v2 = vsel %vm469_vm6, %v774_v62, %v773_v61  ;;  %v1255_v5 = vrot.slane %v2299_v50, 4  ;;  %v1259_v8 = vrot.slane %v2310_v58, 2 }
  0x38   : > { %235 = vrot.lane.b32.xlu1 %v2242_v3, %s2129_s28  ;;  %v630_v55 = vsel %vm472_vm7, %v629_v49, %v628_v53  ;;  %v776_v6 = vsel %vm472_vm7, %v2386_v38, %v775_v2  ;;  %v919_v10 = vrot.slane %v2388_v39, 3  ;;  %v920_v12 = vrot.slane %v2384_v37, 2 }
  0x39   : > { %310 = vrot.lane.b32.xlu0 %v2305_v52, %s2129_s28  ;;  %v2416_v56 = vsel %vm475_vm8, %v631_v54, %v630_v55  ;;  %v2452_v9 = vsel %vm475_vm8, %v777_v0, %v776_v6  ;;  %v922_v14 = vrot.slane %v2386_v38, 1  ;;  %v1256_v17 = vsel %vm469_vm6, %v1255_v5, %v1254_v4 }
  0x3a   : > { %v921_v15 = vsel %vm469_vm6, %v920_v12, %v919_v10  ;;  %v1065_v25 = vrot.slane %v2388_v39, 4  ;;  %v1066_v26 = vrot.slane %v2384_v37, 3  ;;  %v1068_v28 = vrot.slane %v2386_v38, 2 }
  0x3b   : > { %v923_v18 = vsel %vm472_vm7, %v922_v14, %v921_v15  ;;  %v1070_v29 = vrot.slane %v2390_v42, 1  ;;  %v1401_v34 = vrot.slane %v2296_v46, 6  ;;  %v1402_v35 = vrot.slane %v2299_v50, 5 }
  0x3c   : > { %341 = vrot.lane.b32.xlu1 %v2256_v16, %s2130_s29  ;;  %v471_v16 = vrot.slane %v2386_v38, 6  ;;  %v2463_v23 = vsel %vm475_vm8, %v2390_v42, %v923_v18  ;;  %v1067_v30 = vsel %vm469_vm6, %v1066_v26, %v1065_v25  ;;  %v1404_v43 = vrot.slane %v2301_v51, 4 }
  0x3d   : > { %237 = vrot.lane.b32.xlu0 %v2248_v11, %s2129_s28  ;;  %v1069_v32 = vsel %vm472_vm7, %v1068_v28, %v1067_v30  ;;  %v1212_v47 = vrot.slane %v2388_v39, 5  ;;  %v1215_v49 = vrot.slane %v2386_v38, 3  ;;  %v1217_v53 = vrot.slane %v2390_v42, 2 }
  0x3e   : > { %v473_v48 = vsel %vm472_vm7, %v471_v16, %v470_v44  ;;  %v2477_v36 = vsel %vm475_vm8, %v1070_v29, %v1069_v32  ;;  %v1403_v16 = vsel %vm469_vm6, %v1402_v35, %v1401_v34  ;;  %v1406_v44 = vrot.slane %v2310_v58, 3 }
  0x3f   : > { %v1364_v2 = vrot.slane %v2390_v42, 3  ;;  %v1506_v6 = vrot.slane %v2388_v39, 7  ;;  %v1511_v10 = vrot.slane %v2390_v42, 4  ;;  %v1823_v12 = vcombine.low %v2283_v40, %v2283_v40 }
  0x40   : > { %312 = vrot.lane.b32.xlu1 %v2324_v7, %s2129_s28  ;;  %v1824_v14 = vcombine.low %v2305_v52, %v2305_v52  ;;  %v1825_v15 = vcombine.low %v2324_v7, %v2324_v7  ;;  %v2133_v29 = vmov 0   ;;  %vm622_vm2 = vcmask 253952  }
  0x41   : > { %343 = vrot.lane.b32.xlu0 %v2275_v33, %s2130_s29  ;;  %v2409_v33 = vsel %vm475_vm8, %v474_v45, %v473_v48  ;;  %v1405_v45 = vsel %vm472_vm7, %v1404_v43, %v1403_v16  ;;  %v1213_v48 = vrot.slane %v2384_v37, 4  ;;  %v2530_v42 = vunpack.c.l.b16 %v1823_v12 }
  0x42   : > { %v2488_v54 = vsel %vm475_vm8, %v1406_v44, %v1405_v45  ;;  %v2532_v18 = vunpack.c.l.b16 %v1824_v14  ;;  %v2534_v40 = vunpack.c.l.b16 %v1825_v15  ;;  %2052 = vset.pattern.permute.xlu0 %v2133_v29 }
  0x43   : > { %3345 = vst [vmem:[#allocation3_spill] sm:$0xff] %v2488_v54  ;;  %v1214_v55 = vsel %vm469_vm6, %v1213_v48, %v1212_v47 }
  0x44   : > { %239 = vrot.lane.b32.xlu1 %v2261_v22, %s2129_s28 }
  0x45   : > { %314 = vrot.lane.b32.xlu0 %v2343_v19, %s2129_s28  ;;  %s1661_s28 = sadd.s32 (%p2214_p6), %s2103_s14, %s1856_s26 }
  0x48   : > { %345 = vrot.lane.b32.xlu1 %v2287_v41, %s2130_s29  ;;  %v1110_v41 = vrot.slane %v2301_v51, 2 }
  0x49   : > { %225 = vrot.lane.b32.xlu0 %v2240_v1, %s2130_s29  ;;  %v1109_v1 = vsel %vm469_vm6, %v1108_v59, %v1107_v57  ;;  %v1548_v57 = vrot.slane %v2296_v46, 7  ;;  %v1549_v59 = vrot.slane %v2299_v50, 6  ;;  %v1359_v46 = vrot.slane %v2388_v39, 6 }
  0x4a   : > { %v1111_v60 = vsel %vm472_vm7, %v1110_v41, %v1109_v1  ;;  %v1551_v41 = vrot.slane %v2301_v51, 5  ;;  %v1216_v1 = vsel %vm472_vm7, %v1215_v49, %v1214_v55  ;;  %v1360_v50 = vrot.slane %v2384_v37, 5 }
  0x4b   : > { %v1550_v61 = vsel %vm469_vm6, %v1549_v59, %v1548_v57  ;;  %v1826_v39 = vcombine.low %v2343_v19, %v2343_v19  ;;  %v208_v19 = vld [vmem:[%s3334_s2] sm:$0xf] }
  0x4c   : > { %227 = vrot.lane.b32.xlu1 %v2242_v3, %s2130_s29  ;;  %v1112_v3 = vrot.slane %v2310_v58, 1  ;;  %v1552_v62 = vsel %vm472_vm7, %v1551_v41, %v1550_v61 }
  0x4d   : > { %229 = vrot.lane.b32.xlu0 %v2248_v11, %s2130_s29  ;;  %v2536_v52 = vunpack.c.l.b16 %v1826_v39 }
  0x4e   : > { %v2439_v11 = vsel %vm475_vm8, %v1112_v3, %v1111_v60  ;;  %v1553_v3 = vrot.slane %v2310_v58, 4  ;;  %v2497_v60 = vsel %vm475_vm8, %v1217_v53, %v1216_v1  ;;  %v1361_v58 = vsel %vm469_vm6, %v1360_v50, %v1359_v46 }
  0x50   : > { %231 = vrot.lane.b32.xlu1 %v2261_v22, %s2130_s29  ;;  %v1257_v22 = vrot.slane %v2301_v51, 3  ;;  %v2502_v0 = vsel %vm475_vm8, %v1553_v3, %v1552_v62  ;;  %v1362_v51 = vrot.slane %v2386_v38, 4  ;;  %s1663_s29 = sadd.s32 (%p2214_p6), %s1857_s27, %s1661_s28 }
  0x51   : > { %3346 = vst [vmem:[#allocation4_spill] sm:$0xff] %v2502_v0  ;;  %357 = vperm.xlu0 %2052, %v208_v19   ;;  %s1858_s30 = sshll.u32 (%p2214_p6), %s1663_s29, 3 }
  0x52   : > { %v1258_v20 = vsel %vm472_vm7, %v1257_v22, %v1256_v17  ;;  %v1363_v4 = vsel %vm472_vm7, %v1362_v51, %v1361_v58  ;;  %v1507_v22 = vrot.slane %v2384_v37, 6  ;;  %s1665_s25 = scalar_lea.vmem (%p2214_p6), %s3335_s3, %s1858_s30 }
  0x53   : > { %v2466_v24 = vsel %vm475_vm8, %v1259_v8, %v1258_v20  ;;  %v2511_v5 = vsel %vm475_vm8, %v1364_v2, %v1363_v4  ;;  %v1509_v8 = vrot.slane %v2386_v38, 5 }
  0x54   : > { %3347 = vst [vmem:[#allocation5_spill] sm:$0xff] %v2511_v5  ;;  %v1508_v17 = vsel %vm469_vm6, %v1507_v22, %v1506_v6 }
  0x55   : > { %v1510_v37 = vsel %vm472_vm7, %v1509_v8, %v1508_v17 }
  0x56   : > { %v2528_v38 = vsel %vm475_vm8, %v1511_v10, %v1510_v37 }
  0x57   : > { %3348 = vst [vmem:[#allocation6_spill] sm:$0xff] %v2528_v38 }
  0x93   : > { %v348_v43 = vpop.permute.xlu0 %347  ;;  %v340_v16 = vpop.permute.xlu1 %339 }
  0x94   : > { %v1843_v49 = vcombine.low %v348_v43, %v348_v43  ;;  %v1839_v53 = vcombine.low %v340_v16, %v340_v16 }
  0x96   : > { %v2560_v61 = vunpack.c.l.b16 %v1843_v49  ;;  %v2562_v62 = vunpack.c.l.b16 %v1839_v53 }
  0x97   : > { %v350_v51 = vpop.permute.xlu0 %349 }
  0x98   : > { %v1844_v22 = vcombine.low %v350_v51, %v350_v51  ;;  %v683_v8 = vrot.slane %v2560_v61, 1  ;;  %v523_v10 = vrot.slane %v2562_v62, 4  ;;  %v675_v12 = vrot.slane %v2562_v62, 5 }
  0x99   : > { %v829_v14 = vrot.slane %v2560_v61, 2  ;;  %v975_v15 = vrot.slane %v2560_v61, 3  ;;  %v821_v17 = vrot.slane %v2562_v62, 6  ;;  %v967_v39 = vrot.slane %v2562_v62, 7 }
  0x9a   : > { %v2577_v37 = vunpack.c.l.b16 %v1844_v22  ;;  %v2581_v19 = vsel %vm478_vm10, %v523_v10, %v2334_v13  ;;  %v2585_v29 = vsel %vm478_vm10, %v675_v12, %v2347_v21  ;;  %v1121_v43 = vrot.slane %v2560_v61, 4  ;;  %v301_v16 = vpop.permute.xlu1 %300 }
  0x9b   : > { %v352_v49 = vpop.permute.xlu0 %351  ;;  %v2590_v53 = vsel %vm478_vm10, %v821_v17, %v2359_v27  ;;  %v2594_v51 = vsel %vm478_vm10, %v967_v39, %v2370_v31  ;;  %v1268_v22 = vrot.slane %v2560_v61, 5  ;;  %v2600_v13 = vsel %vm478_vm10, %v2562_v62, %v2439_v11 }
  0x9c   : > { %3349 = vst [vmem:[#allocation7_spill] sm:$0xff] %v2577_v37  ;;  %v1827_v21 = vcombine.low %v301_v16, %v301_v16  ;;  %v1845_v10 = vcombine.low %v352_v49, %v352_v49  ;;  %v531_v12 = vrot.slane %v2577_v37, 7  ;;  %v684_v6 = vsel %vm469_vm6, %v2577_v37, %v683_v8 }
  0x9d   : > { %v830_v27 = vrot.slane %v2577_v37, 1  ;;  %v976_v17 = vrot.slane %v2577_v37, 2  ;;  %v1122_v31 = vrot.slane %v2577_v37, 3  ;;  %v1269_v39 = vrot.slane %v2577_v37, 4 }
  0x9e   : > { %v2609_v4 = vunpack.c.l.b16 %v1827_v21  ;;  %v2611_v58 = vunpack.c.l.b16 %v1845_v10  ;;  %v532_v11 = vsel %vm469_vm6, %v531_v12, %v2560_v61  ;;  %v303_v49 = vpop.permute.xlu1 %302 }
  0x9f   : > { %v354_v2 = vpop.permute.xlu0 %353  ;;  %v831_v8 = vsel %vm469_vm6, %v830_v27, %v829_v14  ;;  %v977_v50 = vsel %vm469_vm6, %v976_v17, %v975_v15  ;;  %v2619_v46 = vsel %vm469_vm6, %v1122_v31, %v1121_v43  ;;  %v2622_v3 = vsel %vm469_vm6, %v1269_v39, %v1268_v22 }
  0xa0   : > { %v1828_v21 = vcombine.low %v303_v49, %v303_v49  ;;  %v1846_v10 = vcombine.low %v354_v2, %v354_v2  ;;  %v533_v1 = vrot.slane %v2611_v58, 6  ;;  %v685_v12 = vrot.slane %v2611_v58, 7 }
  0xa1   : > { %v655_v41 = vrot.slane %v2609_v4, 1  ;;  %v832_v14 = vsel %vm472_vm7, %v2611_v58, %v831_v8  ;;  %v978_v15 = vrot.slane %v2611_v58, 1  ;;  %v801_v43 = vrot.slane %v2609_v4, 2 }
  0xa2   : > { %v2631_v27 = vunpack.c.l.b16 %v1828_v21  ;;  %v2633_v22 = vunpack.c.l.b16 %v1846_v10  ;;  %v534_v2 = vsel %vm472_vm7, %v533_v1, %v532_v11  ;;  %v686_v17 = vsel %vm472_vm7, %v685_v12, %v684_v6  ;;  %v305_v31 = vpop.permute.xlu1 %304 }
  0xa3   : > { %v309_v39 = vpop.permute.xlu0 %308  ;;  %v979_v49 = vsel %vm472_vm7, %v978_v15, %v977_v50  ;;  %v947_v16 = vrot.slane %v2609_v4, 3  ;;  %v1829_v57 = vcombine.low %v305_v31, %v305_v31 }
  0xa4   : > { %v1831_v55 = vcombine.low %v309_v39, %v309_v39  ;;  %v535_v21 = vrot.slane %v2633_v22, 5  ;;  %v687_v10 = vrot.slane %v2633_v22, 6  ;;  %v503_v1 = vrot.slane %v2631_v27, 7 }
  0xa5   : > { %v656_v6 = vsel %vm469_vm6, %v2631_v27, %v655_v41  ;;  %v833_v11 = vrot.slane %v2633_v22, 7  ;;  %v980_v50 = vsel %vm475_vm8, %v2633_v22, %v979_v49  ;;  %v2649_v12 = vunpack.c.l.b16 %v1829_v57 }
  0xa6   : > { %v2651_v15 = vunpack.c.l.b16 %v1831_v55  ;;  %v536_v31 = vsel %vm475_vm8, %v535_v21, %v534_v2  ;;  %v688_v39 = vsel %vm475_vm8, %v687_v10, %v686_v17  ;;  %v307_v59 = vpop.permute.xlu1 %306  ;;  %v504_v41 = vsel %vm469_vm6, %v503_v1, %v2609_v4 }
  0xa7   : > { %v234_v48 = vpop.permute.xlu0 %233  ;;  %v539_v47 = vpack.c.b16 %v536_v31, %v536_v31  ;;  %v691_v45 = vpack.c.b16 %v688_v39, %v688_v39  ;;  %v834_v44 = vsel %vm475_vm8, %v833_v11, %v832_v14  ;;  %v1830_v35 = vcombine.low %v307_v59, %v307_v59 }
  0xa8   : > { %v1819_v8 = vcombine.low %v234_v48, %v234_v48  ;;  %v505_v57 = vrot.slane %v2649_v12, 6  ;;  %v509_v55 = vrot.slane %v2651_v15, 4  ;;  %v657_v17 = vrot.slane %v2649_v12, 7 }
  0xa9   : > { %v548_v49 = vsel %vm546_vm11, %v539_v47, 0  ;;  %v695_v2 = vsel %vm546_vm11, %v691_v45, 0  ;;  %v661_v21 = vrot.slane %v2651_v15, 5  ;;  %v2664_v10 = vunpack.c.l.b16 %v1830_v35 }
  0xaa   : > { %v2666_v1 = vunpack.c.l.b16 %v1819_v8  ;;  %1894 = vmatpush3.bf16.msra.mxu0 %v548_v49  ;;  %1904 = vmatpush3.bf16.msra.mxu1 %v695_v2  ;;  %v506_v48 = vsel %vm472_vm7, %v505_v57, %v504_v41  ;;  %v837_v59 = vpack.c.b16 %v834_v44, %v834_v44  ;;  %v236_v14 = vpop.permute.xlu1 %235  ;;  %v658_v45 = vsel %vm472_vm7, %v657_v17, %v656_v6 }
  0xab   : > { %v311_v11 = vpop.permute.xlu0 %310  ;;  %1895 = vmatprep.subr.bf16.mxu0 %v3336_v63  ;;  %1905 = vmatprep.subr.bf16.mxu1 %v3336_v63  ;;  %v983_v47 = vpack.c.b16 %v980_v50, %v980_v50  ;;  %v802_v31 = vrot.slane %v2631_v27, 1  ;;  %v807_v35 = vrot.slane %v2651_v15, 6  ;;  %v1820_v8 = vcombine.low %v236_v14, %v236_v14 }
  0xac   : > { %v1832_v39 = vcombine.low %v311_v11, %v311_v11  ;;  %v507_v49 = vrot.slane %v2664_v10, 5  ;;  %v659_v41 = vrot.slane %v2664_v10, 6  ;;  %v641_v44 = vrot.slane %v2666_v1, 1 }
  0xad   : > { %v2678_v57 = vsel %vm546_vm11, %v837_v59, 0  ;;  %v2681_v2 = vsel %vm546_vm11, %v983_v47, 0  ;;  %v803_v6 = vsel %vm469_vm6, %v802_v31, %v801_v43  ;;  %v2684_v50 = vunpack.c.l.b16 %v1820_v8 }
  0xae   : > { %v2686_v17 = vunpack.c.l.b16 %v1832_v39  ;;  %v508_v14 = vsel %vm475_vm8, %v507_v49, %v506_v48  ;;  %v660_v11 = vsel %vm475_vm8, %v659_v41, %v658_v45  ;;  %v342_v34 = vpop.permute.xlu1 %341  ;;  %v804_v47 = vsel %vm472_vm7, %v2649_v12, %v803_v6 }
  0xaf   : > { %v238_v32 = vpop.permute.xlu0 %237  ;;  %v510_v28 = vsel %vm478_vm10, %v509_v55, %v508_v14  ;;  %v662_v59 = vsel %vm478_vm10, %v661_v21, %v660_v11  ;;  %v805_v63 = vrot.slane %v2664_v10, 7  ;;  %v1840_v43 = vcombine.low %v342_v34, %v342_v34 }
  0xb0   : > { %v1821_v31 = vcombine.low %v238_v32, %v238_v32  ;;  %v511_v8 = vrot.slane %v2686_v17, 3  ;;  %v663_v39 = vrot.slane %v2686_v17, 4  ;;  %v489_v48 = vrot.slane %v2684_v50, 7 }
  0xb1   : > { %v642_v45 = vsel %vm469_vm6, %v2684_v50, %v641_v44  ;;  %v806_v55 = vsel %vm475_vm8, %v805_v63, %v804_v47  ;;  %v809_v21 = vrot.slane %v2686_v17, 5  ;;  %v2702_v49 = vunpack.c.l.b16 %v1840_v43 }
  0xb2   : > { %v2704_v41 = vunpack.c.l.b16 %v1821_v31  ;;  %v512_v32 = vsel %vm481_vm12, %v511_v8, %v510_v28  ;;  %v664_v34 = vsel %vm481_vm12, %v663_v39, %v662_v59  ;;  %v313_v6 = vpop.permute.xlu1 %312  ;;  %v490_v11 = vsel %vm469_vm6, %v489_v48, %v2666_v1 }
  0xb3   : > { %v344_v14 = vpop.permute.xlu0 %343  ;;  %v808_v30 = vsel %vm478_vm10, %v807_v35, %v806_v55  ;;  %v948_v44 = vrot.slane %v2631_v27, 2  ;;  %v950_v63 = vrot.slane %v2649_v12, 1  ;;  %v1833_v47 = vcombine.low %v313_v6, %v313_v6 }
  0xb4   : > { %v1841_v43 = vcombine.low %v344_v14, %v344_v14  ;;  %v525_v31 = vrot.slane %v2702_v49, 3  ;;  %v677_v25 = vrot.slane %v2702_v49, 4  ;;  %v491_v28 = vrot.slane %v2704_v41, 6 }
  0xb5   : > { %v643_v59 = vrot.slane %v2704_v41, 7  ;;  %v810_v8 = vsel %vm481_vm12, %v809_v21, %v808_v30  ;;  %v823_v39 = vrot.slane %v2702_v49, 5  ;;  %v2719_v35 = vunpack.c.l.b16 %v1833_v47 }
  0xb6   : > { %v2721_v48 = vunpack.c.l.b16 %v1841_v43  ;;  %v526_v55 = vsel %vm481_vm12, %v525_v31, %v2581_v19  ;;  %v678_v6 = vsel %vm481_vm12, %v677_v25, %v2585_v29  ;;  %v240_v14 = vpop.permute.xlu1 %239  ;;  %v492_v26 = vsel %vm472_vm7, %v491_v28, %v490_v11 }
  0xb7   : > { %v315_v20 = vpop.permute.xlu0 %314  ;;  %v644_v7 = vsel %vm472_vm7, %v643_v59, %v642_v45  ;;  %v824_v30 = vsel %vm481_vm12, %v823_v39, %v2590_v53  ;;  %v949_v21 = vsel %vm469_vm6, %v948_v44, %v947_v16  ;;  %v1822_v47 = vcombine.low %v240_v14, %v240_v14 }
  0xb8   : > { %v1834_v43 = vcombine.low %v315_v20, %v315_v20  ;;  %v513_v19 = vrot.slane %v2719_v35, 2  ;;  %v527_v31 = vrot.slane %v2721_v48, 2  ;;  %v665_v25 = vrot.slane %v2719_v35, 3 }
  0xb9   : > { %v679_v29 = vrot.slane %v2721_v48, 3  ;;  %v811_v11 = vrot.slane %v2719_v35, 4  ;;  %v825_v45 = vrot.slane %v2721_v48, 4  ;;  %v2740_v28 = vunpack.c.l.b16 %v1822_v47 }
  0xba   : > { %v2742_v53 = vunpack.c.l.b16 %v1834_v43  ;;  %v514_v16 = vsel %vm484_vm13, %v513_v19, %v512_v32  ;;  %v528_v20 = vsel %vm484_vm13, %v527_v31, %v526_v55  ;;  %v346_v44 = vpop.permute.xlu1 %345  ;;  %v666_v39 = vsel %vm484_vm13, %v665_v25, %v664_v34 }
  0xbb   : > { %v226_v59 = vpop.permute.xlu0 %225  ;;  %v680_v14 = vsel %vm484_vm13, %v679_v29, %v678_v6  ;;  %v812_v38 = vsel %vm484_vm13, %v811_v11, %v810_v8  ;;  %v2750_v5 = vsel %vm484_vm13, %v825_v45, %v824_v30  ;;  %v1842_v0 = vcombine.low %v346_v44, %v346_v44 }
  0xbc   : > { %v1815_v47 = vcombine.low %v226_v59, %v226_v59  ;;  %v515_v43 = vrot.slane %v2742_v53, 1  ;;  %v667_v32 = vrot.slane %v2742_v53, 2  ;;  %v493_v55 = vrot.slane %v2740_v28, 5 }
  0xbd   : > { %v645_v19 = vrot.slane %v2740_v28, 6  ;;  %v813_v34 = vrot.slane %v2742_v53, 3  ;;  %v951_v6 = vsel %vm472_vm7, %v950_v63, %v949_v21  ;;  %v2758_v31 = vunpack.c.l.b16 %v1842_v0 }
  0xbe   : > { %v2760_v8 = vunpack.c.l.b16 %v1815_v47  ;;  %v516_v30 = vsel %vm487_vm14, %v515_v43, %v514_v16  ;;  %v668_v25 = vsel %vm487_vm14, %v667_v32, %v666_v39  ;;  %v228_v29 = vpop.permute.xlu1 %227  ;;  %v494_v45 = vsel %vm475_vm8, %v493_v55, %v492_v26 }
  0xbf   : > { %v230_v11 = vpop.permute.xlu0 %229  ;;  %v646_v44 = vsel %vm475_vm8, %v645_v19, %v644_v7  ;;  %v2768_v59 = vsel %vm487_vm14, %v813_v34, %v812_v38  ;;  %v952_v0 = vsel %vm475_vm8, %v2664_v10, %v951_v6  ;;  %v1816_v63 = vcombine.low %v228_v29, %v228_v29 }
  0xc0   : > { %v1817_v21 = vcombine.low %v230_v11, %v230_v11  ;;  %v529_v16 = vrot.slane %v2758_v31, 1  ;;  %v681_v39 = vrot.slane %v2758_v31, 2  ;;  %v477_v47 = vrot.slane %v2760_v8, 4 }
  0xc1   : > { %v3350_v26 = vrot.slane %v2530_v42, 4  ;;  %v633_v38 = vrot.slane %v2760_v8, 5  ;;  %v3351_v43 = vrot.slane %v2530_v42, 5  ;;  %v2782_v55 = vunpack.c.l.b16 %v1816_v63 }
  0xc2   : > { %v2784_v19 = vunpack.c.l.b16 %v1817_v21  ;;  %v530_v34 = vsel %vm487_vm14, %v529_v16, %v528_v20  ;;  %v682_v6 = vsel %vm487_vm14, %v681_v39, %v680_v14  ;;  %v232_v29 = vpop.permute.xlu1 %231  ;;  %v3353_v14 = vrot.slane %v2534_v40, 2 }
  0xc3   : > { %v496_v7 = vsel %vm478_vm10, %v3350_v26, %v494_v45  ;;  %v648_v32 = vsel %vm478_vm10, %v3351_v43, %v646_v44  ;;  %v538_v11 = vpack.c.b16 %v530_v34, %v516_v30  ;;  %v690_v54 = vpack.c.b16 %v682_v6, %v668_v25 }
  0xc4   : > { %v479_v45 = vsel %vm478_vm10, %v477_v47, %v2409_v33  ;;  %v3352_v26 = vrot.slane %v2532_v18, 3  ;;  %v1818_v44 = vcombine.low %v232_v29, %v232_v29  ;;  %v480_v63 = vrot.slane %v2782_v55, 3 }
  0xc5   : > { %v483_v20 = vrot.slane %v2784_v19, 2  ;;  %1896 = vmatpush3.bf16.msra.mxu0 %v538_v11  ;;  %1906 = vmatpush3.bf16.msra.mxu1 %v690_v54  ;;  %v3354_v33 = vrot.slane %v2536_v52, 1  ;;  %v634_v21 = vsel %vm478_vm10, %v633_v38, %v2416_v56  ;;  %v635_v16 = vrot.slane %v2782_v55, 4 }
  0xc6   : > { %v498_v37 = vsel %vm481_vm12, %v3352_v26, %v496_v7  ;;  %v637_v39 = vrot.slane %v2784_v19, 3  ;;  %v2810_v47 = vunpack.c.l.b16 %v1818_v44  ;;  %v3355_v7 = vmov 0.0  }
  0xc7   : > { %v500_v30 = vsel %vm484_vm13, %v3353_v14, %v498_v37  ;;  %1897 = vmatprep.subr.bf16.mxu0 %v3355_v7  ;;  %1907 = vmatprep.subr.bf16.mxu1 %v3355_v7  ;;  %v482_v54 = vsel %vm481_vm12, %v480_v63, %v479_v45  ;;  %v3356_v37 = vrot.slane %v2532_v18, 4  ;;  %v827_v34 = vrot.slane %v2758_v31, 3 }
  0xc8   : > { %v502_v25 = vsel %vm487_vm14, %v3354_v33, %v500_v30  ;;  %v485_v56 = vsel %vm484_vm13, %v483_v20, %v482_v54  ;;  %v636_v38 = vsel %vm481_vm12, %v635_v16, %v634_v21  ;;  %v3357_v6 = vrot.slane %v2534_v40, 3 }
  0xc9   : > { %v650_v43 = vsel %vm481_vm12, %v3356_v37, %v648_v32  ;;  %v953_v11 = vrot.slane %v2651_v15, 7  ;;  %v486_v26 = vrot.slane %v2810_v47, 1  ;;  %v638_v45 = vsel %vm484_vm13, %v637_v39, %v636_v38 }
  0xca   : > { %v652_v29 = vsel %vm484_vm13, %v3357_v6, %v650_v43  ;;  %v639_v44 = vrot.slane %v2810_v47, 2  ;;  %v3358_v32 = vrot.slane %v2536_v52, 2  ;;  %v828_v20 = vsel %vm487_vm14, %v827_v34, %v2750_v5 }
  0xcb   : > { %v954_v14 = vsel %vm478_vm10, %v953_v11, %v952_v0  ;;  %v955_v30 = vrot.slane %v2686_v17, 6  ;;  %v957_v33 = vrot.slane %v2719_v35, 5  ;;  %v488_v21 = vsel %vm487_vm14, %v486_v26, %v485_v56 }
  0xcc   : > { %v654_v63 = vsel %vm487_vm14, %v3358_v32, %v652_v29  ;;  %v640_v16 = vsel %vm487_vm14, %v639_v44, %v638_v45  ;;  %v836_v39 = vpack.c.b16 %v828_v20, %v2768_v59  ;;  %v959_v54 = vrot.slane %v2742_v53, 4  ;;  %v2850_v29 = vld [vmem:[%s204_s10] sm:$0x3] }
  0xcd   : > { %v537_v37 = vpack.c.b16 %v502_v25, %v488_v21  ;;  %v689_v5 = vpack.c.b16 %v654_v63, %v640_v16  ;;  %v956_v0 = vsel %vm481_vm12, %v955_v30, %v954_v14  ;;  %v969_v43 = vrot.slane %v2702_v49, 6 }
  0xce   : > { %v958_v34 = vsel %vm484_vm13, %v957_v33, %v956_v0  ;;  %v971_v56 = vrot.slane %v2721_v48, 5  ;;  %v973_v38 = vrot.slane %v2758_v31, 4  ;;  %v779_v6 = vrot.slane %v2760_v8, 6 }
  0xcf   : > { %1898 = vmatpush3.bf16.msra.mxu0 %v537_v37  ;;  %1908 = vmatpush3.bf16.msra.mxu1 %v689_v5  ;;  %v960_v59 = vsel %vm487_vm14, %v959_v54, %v958_v34  ;;  %v970_v25 = vsel %vm481_vm12, %v969_v43, %v2594_v51  ;;  %v781_v11 = vrot.slane %v2782_v55, 5  ;;  %v783_v26 = vrot.slane %v2784_v19, 4 }
  0xd0   : > { %1913 = vmatprep.subr.bf16.mxu0 %v3355_v7  ;;  %1923 = vmatprep.subr.bf16.mxu1 %v3355_v7  ;;  %v972_v45 = vsel %vm484_vm13, %v971_v56, %v970_v25  ;;  %v780_v44 = vsel %vm478_vm10, %v779_v6, %v2452_v9  ;;  %v785_v32 = vrot.slane %v2810_v47, 3  ;;  %v787_v63 = vrot.slane %v2666_v1, 2 }
  0xd1   : > { %v974_v20 = vsel %vm487_vm14, %v973_v38, %v972_v45  ;;  %v782_v51 = vsel %vm481_vm12, %v781_v11, %v780_v44  ;;  %v788_v14 = vrot.slane %v2684_v50, 1  ;;  %v791_v30 = vrot.slane %v2740_v28, 7 }
  0xd2   : > { %1900 = vmatmul.mubr.msk.bf16.vlgmr.msra.gmra.mxu0 %vm542_vm15, %v2850_v29  ;;  %1910 = vmatmul.mubr.msk.bf16.vlgmr.msra.gmra.mxu1 %vm542_vm15, %v2850_v29  ;;  %v982_v33 = vpack.c.b16 %v974_v20, %v960_v59  ;;  %v784_v9 = vsel %vm484_vm13, %v783_v26, %v782_v51  ;;  %v925_v21 = vrot.slane %v2760_v8, 7  ;;  %v927_v16 = vrot.slane %v2782_v55, 6 }
  0xd3   : > { %1914 = vmatpush3.bf16.msra.mxu0 %v2678_v57  ;;  %1924 = vmatpush3.bf16.msra.mxu1 %v2681_v2  ;;  %v786_v54 = vsel %vm487_vm14, %v785_v32, %v784_v9  ;;  %v789_v37 = vsel %vm469_vm6, %v788_v14, %v787_v63  ;;  %v929_v5 = vrot.slane %v2784_v19, 5  ;;  %v931_v0 = vrot.slane %v2810_v47, 4 }
  0xd4   : > { %1915 = vmatprep.subr.bf16.mxu0 %v3355_v7  ;;  %1925 = vmatprep.subr.bf16.mxu1 %v3355_v7  ;;  %v790_v43 = vsel %vm472_vm7, %v2704_v41, %v789_v37  ;;  %v926_v57 = vsel %vm478_vm10, %v925_v21, %v2463_v23  ;;  %v933_v2 = vrot.slane %v2666_v1, 3  ;;  %v934_v34 = vrot.slane %v2684_v50, 2 }
  0xd5   : > { %v792_v56 = vsel %vm475_vm8, %v791_v30, %v790_v43  ;;  %v928_v38 = vsel %vm481_vm12, %v927_v16, %v926_v57  ;;  %v936_v6 = vrot.slane %v2704_v41, 1  ;;  %1919 = vmatprep.mubr.msk.bf16.mxu0 %vm2132_vm9, %v3355_v7  ;;  %1929 = vmatprep.mubr.msk.bf16.mxu1 %vm2132_vm9, %v3355_v7  ;;  %v3359_v59 = vrot.slane %v2611_v58, 2 }
  0xd6   : > { %v3360_v25 = vrot.slane %v2530_v42, 6  ;;  %v930_v26 = vsel %vm484_vm13, %v929_v5, %v928_v38  ;;  %v935_v45 = vsel %vm469_vm6, %v934_v34, %v933_v2  ;;  %v1126_v44 = vrot.slane %v2633_v22, 1 }
  0xd7   : > { %v1125_v23 = vsel %vm472_vm7, %v3359_v59, %v2619_v46  ;;  %1916 = vmatpush3.bf16.msra.mxu0 %v836_v39  ;;  %1926 = vmatpush3.bf16.msra.mxu1 %v982_v33  ;;  %v3361_v32 = vrot.slane %v2532_v18, 5  ;;  %v932_v20 = vsel %vm487_vm14, %v931_v0, %v930_v26  ;;  %v937_v46 = vsel %vm472_vm7, %v936_v6, %v935_v45 }
  0xd8   : > { %v794_v11 = vsel %vm478_vm10, %v3360_v25, %v792_v56  ;;  %v1273_v51 = vrot.slane %v2633_v22, 2  ;;  %1917 = vmatprep.subr.bf16.mxu0 %v3355_v7  ;;  %1927 = vmatprep.subr.bf16.mxu1 %v3355_v7  ;;  %v3362_v14 = vrot.slane %v2534_v40, 4  ;;  %v938_v39 = vsel %vm475_vm8, %v2740_v28, %v937_v46 }
  0xd9   : > { %v796_v63 = vsel %vm481_vm12, %v3361_v32, %v794_v11  ;;  %v1127_v33 = vsel %vm475_vm8, %v1126_v44, %v1125_v23  ;;  %v1093_v9 = vrot.slane %v2609_v4, 4  ;;  %v3363_v21 = vrot.slane %v2536_v52, 3 }
  0xda   : > { %v798_v30 = vsel %vm484_vm13, %v3362_v14, %v796_v63  ;;  %v3364_v37 = vrot.slane %v2530_v42, 7  ;;  %v1130_v0 = vpack.c.b16 %v1127_v33, %v1127_v33  ;;  %v3365_v43 = vrot.slane %v2611_v58, 3 }
  0xdb   : > { %v800_v16 = vsel %vm487_vm14, %v3363_v21, %v798_v30  ;;  %v3366_v34 = vrot.slane %v2532_v18, 6  ;;  %v1094_v6 = vrot.slane %v2631_v27, 3  ;;  %v3367_v59 = vrot.slane %v2534_v40, 5 }
  0xdc   : > { %v940_v5 = vsel %vm478_vm10, %v3364_v37, %v938_v39  ;;  %v1272_v57 = vsel %vm472_vm7, %v3365_v43, %v2622_v3  ;;  %v835_v2 = vpack.c.b16 %v800_v16, %v786_v54  ;;  %v1134_v25 = vsel %vm546_vm11, %v1130_v0, 0 }
  0xdd   : > { %v942_v56 = vsel %vm481_vm12, %v3366_v34, %v940_v5  ;;  %v1274_v38 = vsel %vm475_vm8, %v1273_v51, %v1272_v57  ;;  %v1096_v26 = vrot.slane %v2649_v12, 2  ;;  %v3368_v3 = vrot.slane %v2536_v52, 4 }
  0xde   : > { %v944_v23 = vsel %vm484_vm13, %v3367_v59, %v942_v56  ;;  %v1277_v11 = vpack.c.b16 %v1274_v38, %v1274_v38  ;;  %1918 = vmatpush3.bf16.msra.mxu0 %v835_v2  ;;  %v1095_v45 = vsel %vm469_vm6, %v1094_v6, %v1093_v9  ;;  %v1098_v44 = vrot.slane %v2664_v10, 1 }
  0xdf   : > { %v946_v54 = vsel %vm487_vm14, %v3368_v3, %v944_v23  ;;  %v1101_v32 = vrot.slane %v2686_v17, 7  ;;  %1933 = vmatprep.subr.bf16.mxu0 %v3355_v7  ;;  %v1097_v51 = vsel %vm472_vm7, %v1096_v26, %v1095_v45  ;;  %v1103_v14 = vrot.slane %v2719_v35, 6 }
  0xe0   : > { %v981_v63 = vpack.c.b16 %v946_v54, %v932_v20  ;;  %v1281_v46 = vsel %vm546_vm11, %v1277_v11, 0  ;;  %v1099_v30 = vsel %vm475_vm8, %v1098_v44, %v1097_v51  ;;  %v1105_v39 = vrot.slane %v2742_v53, 5 }
  0xe1   : > { %v1115_v33 = vrot.slane %v2702_v49, 7  ;;  %v1117_v9 = vrot.slane %v2721_v48, 6  ;;  %1920 = vmatmul.mubr.msk.bf16.vlgmr.msra.gmra.mxu0 %vm542_vm15, %v2850_v29  ;;  %v1100_v20 = vsel %vm478_vm10, %v2651_v15, %v1099_v30  ;;  %v1119_v21 = vrot.slane %v2758_v31, 5 }
  0xe2   : > { %1928 = vmatpush3.bf16.msra.mxu1 %v981_v63  ;;  %v1240_v16 = vrot.slane %v2609_v4, 5  ;;  %v1241_v37 = vrot.slane %v2631_v27, 4  ;;  %1934 = vmatpush3.bf16.msra.mxu0 %v1134_v25  ;;  %v1102_v5 = vsel %vm481_vm12, %v1101_v32, %v1100_v20  ;;  %v1243_v43 = vrot.slane %v2649_v12, 3 }
  0xe3   : > { %1943 = vmatprep.subr.bf16.mxu1 %v3355_v7  ;;  %v1116_v0 = vsel %vm481_vm12, %v1115_v33, %v2600_v13  ;;  %v1245_v57 = vrot.slane %v2664_v10, 2  ;;  %1935 = vmatprep.subr.bf16.mxu0 %v3355_v7  ;;  %v1104_v2 = vsel %vm484_vm13, %v1103_v14, %v1102_v5  ;;  %v1247_v38 = vrot.slane %v2651_v15, 1 }
  0xe4   : > { %v1118_v34 = vsel %vm484_vm13, %v1117_v9, %v1116_v0  ;;  %v1242_v56 = vsel %vm469_vm6, %v1241_v37, %v1240_v16  ;;  %1939 = vmatprep.mubr.msk.bf16.mxu0 %vm2132_vm9, %v3355_v7  ;;  %v1106_v13 = vsel %vm487_vm14, %v1105_v39, %v1104_v2  ;;  %v1250_v23 = vrot.slane %v2719_v35, 7 }
  0xe5   : > { %1930 = vmatmul.mubr.msk.bf16.vlgmr.msra.gmra.mxu1 %vm542_vm15, %v2850_v29  ;;  %v1120_v6 = vsel %vm487_vm14, %v1119_v21, %v1118_v34  ;;  %v1244_v59 = vsel %vm472_vm7, %v1243_v43, %v1242_v56  ;;  %v1252_v26 = vrot.slane %v2742_v53, 6  ;;  %v3369_v3 = vrot.slane %v2562_v62, 1 }
  0xe6   : > { %1944 = vmatpush3.bf16.msra.mxu1 %v1281_v46  ;;  %v1129_v25 = vpack.c.b16 %v1120_v6, %v1106_v13  ;;  %v1246_v11 = vsel %vm475_vm8, %v1245_v57, %v1244_v59  ;;  %1949 = vmatprep.mubr.msk.bf16.mxu1 %vm2132_vm9, %v3355_v7  ;;  %v1264_v32 = vrot.slane %v2721_v48, 7  ;;  %v1266_v63 = vrot.slane %v2758_v31, 6 }
  0xe7   : > { %v1262_v54 = vsel %vm478_vm10, %v3369_v3, %v2466_v24  ;;  %1945 = vmatprep.subr.bf16.mxu1 %v3355_v7  ;;  %v1248_v45 = vsel %vm478_vm10, %v1247_v38, %v1246_v11  ;;  %v1072_v24 = vsel %vm478_vm10, %v2760_v8, %v2477_v36  ;;  %v1073_v51 = vrot.slane %v2782_v55, 7 }
  0xe8   : > { %v1263_v44 = vsel %vm481_vm12, %v2702_v49, %v1262_v54  ;;  %1936 = vmatpush3.bf16.msra.mxu0 %v1129_v25  ;;  %v1249_v46 = vsel %vm481_vm12, %v2686_v17, %v1248_v45  ;;  %v1075_v14 = vrot.slane %v2784_v19, 6  ;;  %v1077_v33 = vrot.slane %v2810_v47, 5 }
  0xe9   : > { %v1251_v30 = vsel %vm484_vm13, %v1250_v23, %v1249_v46  ;;  %v1265_v39 = vsel %vm484_vm13, %v1264_v32, %v1263_v44  ;;  %1937 = vmatprep.subr.bf16.mxu0 %v3355_v7  ;;  %v1079_v9 = vrot.slane %v2666_v1, 4  ;;  %v1074_v36 = vsel %vm481_vm12, %v1073_v51, %v1072_v24  ;;  %v3371_v24 = vld [vmem:[#allocation7_spill] sm:$0xff] }
  0xea   : > { %v1253_v20 = vsel %vm487_vm14, %v1252_v26, %v1251_v30  ;;  %v1267_v21 = vsel %vm487_vm14, %v1266_v63, %v1265_v39  ;;  %v1080_v16 = vrot.slane %v2684_v50, 3  ;;  %v1076_v5 = vsel %vm484_vm13, %v1075_v14, %v1074_v36 }
  0xeb   : > { %v1276_v37 = vpack.c.b16 %v1267_v21, %v1253_v20  ;;  %v1082_v0 = vrot.slane %v2704_v41, 2  ;;  %v1084_v43 = vrot.slane %v2740_v28, 1  ;;  %v1078_v57 = vsel %vm487_vm14, %v1077_v33, %v1076_v5 }
  0xec   : > { %v1081_v2 = vsel %vm469_vm6, %v1080_v16, %v1079_v9  ;;  %v1219_v34 = vrot.slane %v2760_v8, 1  ;;  %v1222_v56 = vrot.slane %v2784_v19, 7  ;;  %v1224_v13 = vrot.slane %v2810_v47, 6 }
  0xed   : > { %1946 = vmatpush3.bf16.msra.mxu1 %v1276_v37  ;;  %v1083_v38 = vsel %vm472_vm7, %v1082_v0, %v1081_v2  ;;  %v1226_v6 = vrot.slane %v2666_v1, 5  ;;  %v1227_v59 = vrot.slane %v2684_v50, 4  ;;  %v1229_v11 = vrot.slane %v2704_v41, 3 }
  0xee   : > { %1947 = vmatprep.subr.bf16.mxu1 %v3355_v7  ;;  %v1085_v23 = vsel %vm475_vm8, %v1084_v43, %v1083_v38  ;;  %v1220_v25 = vsel %vm478_vm10, %v1219_v34, %v2497_v60  ;;  %v1231_v26 = vrot.slane %v2740_v28, 2  ;;  %v1415_v44 = vrot.slane %v2560_v61, 6 }
  0xef   : > { %v1086_v3 = vsel %vm478_vm10, %v2530_v42, %v1085_v23  ;;  %v1221_v54 = vsel %vm481_vm12, %v2782_v55, %v1220_v25  ;;  %v1228_v45 = vsel %vm469_vm6, %v1227_v59, %v1226_v6  ;;  %v3370_v32 = vrot.slane %v2532_v18, 7 }
  0xf0   : > { %v1223_v60 = vsel %vm484_vm13, %v1222_v56, %v1221_v54  ;;  %v1230_v46 = vsel %vm472_vm7, %v1229_v11, %v1228_v45  ;;  %v1416_v51 = vrot.slane %v3371_v24, 5  ;;  %v3372_v14 = vrot.slane %v2534_v40, 6 }
  0xf1   : > { %v1088_v63 = vsel %vm481_vm12, %v3370_v32, %v1086_v3  ;;  %v1225_v39 = vsel %vm487_vm14, %v1224_v13, %v1223_v60  ;;  %v1232_v33 = vsel %vm475_vm8, %v1231_v26, %v1230_v46  ;;  %v1418_v9 = vrot.slane %v2611_v58, 4 }
  0xf2   : > { %v1090_v30 = vsel %vm484_vm13, %v3372_v14, %v1088_v63  ;;  %v3373_v20 = vrot.slane %v2536_v52, 5  ;;  %v3374_v36 = vrot.slane %v2530_v42, 1  ;;  %v1417_v37 = vsel %vm469_vm6, %v1416_v51, %v1415_v44 }
  0xf3   : > { %v1420_v5 = vrot.slane %v2633_v22, 3  ;;  %v1419_v2 = vsel %vm472_vm7, %v1418_v9, %v1417_v37  ;;  %v1562_v34 = vrot.slane %v2560_v61, 7  ;;  %v3375_v56 = vrot.slane %v2534_v40, 7  ;;  %v3377_v37 = vld [vmem:[#allocation3_spill] sm:$0xff] }
  0xf4   : > { %v1092_v21 = vsel %vm487_vm14, %v3373_v20, %v1090_v30  ;;  %v1234_v16 = vsel %vm478_vm10, %v3374_v36, %v1232_v33  ;;  %v1563_v6 = vrot.slane %v3371_v24, 6  ;;  %v1565_v59 = vrot.slane %v2611_v58, 5 }
  0xf5   : > { %v1128_v0 = vpack.c.b16 %v1092_v21, %v1078_v57  ;;  %v1235_v43 = vsel %vm481_vm12, %v2532_v18, %v1234_v16  ;;  %v1421_v13 = vsel %vm475_vm8, %v1420_v5, %v1419_v2  ;;  %v3376_v57 = vrot.slane %v2536_v52, 6 }
  0xf6   : > { %v1237_v38 = vsel %vm484_vm13, %v3375_v56, %v1235_v43  ;;  %v1424_v25 = vpack.c.b16 %v1421_v13, %v1421_v13  ;;  %v1567_v11 = vrot.slane %v2633_v22, 4  ;;  %v1387_v61 = vrot.slane %v2609_v4, 6 }
  0xf7   : > { %1938 = vmatpush3.bf16.msra.mxu0 %v1128_v0  ;;  %v1239_v23 = vsel %vm487_vm14, %v3376_v57, %v1237_v38  ;;  %v1564_v3 = vsel %vm469_vm6, %v1563_v6, %v1562_v34  ;;  %v1388_v54 = vrot.slane %v2631_v27, 5  ;;  %v1390_v45 = vrot.slane %v2649_v12, 4 }
  0xf8   : > { %v1275_v26 = vpack.c.b16 %v1239_v23, %v1225_v39  ;;  %1953 = vmatprep.subr.bf16.mxu0 %v3355_v7  ;;  %v1428_v58 = vsel %vm546_vm11, %v1424_v25, 0  ;;  %v1566_v44 = vsel %vm472_vm7, %v1565_v59, %v1564_v3  ;;  %v1392_v32 = vrot.slane %v2664_v10, 3 }
  0xf9   : > { %v1394_v63 = vrot.slane %v2651_v15, 2  ;;  %v1568_v22 = vsel %vm475_vm8, %v1567_v11, %v1566_v44  ;;  %v1389_v60 = vsel %vm469_vm6, %v1388_v54, %v1387_v61  ;;  %v1396_v46 = vrot.slane %v2686_v17, 1 }
  0xfa   : > { %1948 = vmatpush3.bf16.msra.mxu1 %v1275_v26  ;;  %1940 = vmatmul.mubr.msk.bf16.vlgmr.msra.gmra.mxu0 %vm542_vm15, %v2850_v29  ;;  %v1399_v24 = vrot.slane %v2742_v53, 7  ;;  %v1571_v51 = vpack.c.b16 %v1568_v22, %v1568_v22  ;;  %v1391_v14 = vsel %vm472_vm7, %v1390_v45, %v1389_v60  ;;  %v1408_v30 = vrot.slane %v2562_v62, 2  ;;  %v3378_v45 = vld [vmem:[#allocation4_spill] sm:$0xff] }
  0xfb   : > { %1963 = vmatprep.subr.bf16.mxu1 %v3355_v7  ;;  %1954 = vmatpush3.bf16.msra.mxu0 %v1428_v58  ;;  %v1410_v39 = vrot.slane %v2702_v49, 1  ;;  %v1393_v33 = vsel %vm475_vm8, %v1392_v32, %v1391_v14  ;;  %v1413_v9 = vrot.slane %v2758_v31, 7  ;;  %v1534_v20 = vrot.slane %v2609_v4, 7 }
  0xfc   : > { %1955 = vmatprep.subr.bf16.mxu0 %v3355_v7  ;;  %v1535_v21 = vrot.slane %v2631_v27, 6  ;;  %1959 = vmatprep.mubr.msk.bf16.mxu0 %vm2132_vm9, %v3355_v7  ;;  %v1575_v36 = vsel %vm546_vm11, %v1571_v51, 0  ;;  %v1395_v16 = vsel %vm478_vm10, %v1394_v63, %v1393_v33  ;;  %v1409_v5 = vsel %vm478_vm10, %v1408_v30, %v3377_v37 }
  0xfd   : > { %1950 = vmatmul.mubr.msk.bf16.vlgmr.msra.gmra.mxu1 %vm542_vm15, %v2850_v29  ;;  %v1537_v0 = vrot.slane %v2649_v12, 5  ;;  %v1397_v4 = vsel %vm481_vm12, %v1396_v46, %v1395_v16  ;;  %v1411_v27 = vsel %vm481_vm12, %v1410_v39, %v1409_v5  ;;  %v1539_v2 = vrot.slane %v2664_v10, 4 }
  0xfe   : > { %1964 = vmatpush3.bf16.msra.mxu1 %v1575_v36  ;;  %v1536_v43 = vsel %vm469_vm6, %v1535_v21, %v1534_v20  ;;  %1969 = vmatprep.mubr.msk.bf16.mxu1 %vm2132_vm9, %v3355_v7  ;;  %v1398_v34 = vsel %vm484_vm13, %v2719_v35, %v1397_v4  ;;  %v1412_v12 = vsel %vm484_vm13, %v2721_v48, %v1411_v27  ;;  %v1541_v38 = vrot.slane %v2651_v15, 3  ;;  %v3380_v36 = vld [vmem:[#allocation6_spill] sm:$0xff] }
  0xff   : > { %1965 = vmatprep.subr.bf16.mxu1 %v3355_v7  ;;  %v1538_v56 = vsel %vm472_vm7, %v1537_v0, %v1536_v43  ;;  %v1400_v13 = vsel %vm487_vm14, %v1399_v24, %v1398_v34  ;;  %v1414_v6 = vsel %vm487_vm14, %v1413_v9, %v1412_v12  ;;  %v1543_v59 = vrot.slane %v2686_v17, 2 }
 0x100   : > { %v1540_v10 = vsel %vm475_vm8, %v1539_v2, %v1538_v56  ;;  %v1423_v57 = vpack.c.b16 %v1414_v6, %v1400_v13  ;;  %v1545_v23 = vrot.slane %v2719_v35, 1  ;;  %v1555_v25 = vrot.slane %v2562_v62, 3 }
 0x101   : > { %v1527_v11 = vrot.slane %v2530_v42, 3  ;;  %v1542_v61 = vsel %vm478_vm10, %v1541_v38, %v1540_v10  ;;  %v1557_v26 = vrot.slane %v2702_v49, 2  ;;  %v1559_v15 = vrot.slane %v2721_v48, 1  ;;  %v3379_v49 = vld [vmem:[#allocation5_spill] sm:$0xff] }
 0x102   : > { %v1366_v3 = vrot.slane %v2760_v8, 2  ;;  %1956 = vmatpush3.bf16.msra.mxu0 %v1423_v57  ;;  %v1544_v54 = vsel %vm481_vm12, %v1543_v59, %v1542_v61  ;;  %v1556_v17 = vsel %vm478_vm10, %v1555_v25, %v3378_v45  ;;  %v1368_v35 = vrot.slane %v2782_v55, 1  ;;  %v3190_v25 = vpop.permute.xlu0 %357 }
 0x103   : > { %v1529_v62 = vrot.slane %v2532_v18, 2  ;;  %v1546_v58 = vsel %vm484_vm13, %v1545_v23, %v1544_v54  ;;  %v1558_v44 = vsel %vm481_vm12, %v1557_v26, %v1556_v17  ;;  %1957 = vmatprep.subr.bf16.mxu0 %v3355_v7  ;;  %v1373_v32 = vrot.slane %v2666_v1, 6 }
 0x104   : > { %v1367_v48 = vsel %vm478_vm10, %v1366_v3, %v3379_v49  ;;  %v1560_v63 = vsel %vm484_vm13, %v1559_v15, %v1558_v44  ;;  %v1371_v22 = vrot.slane %v2810_v47, 7  ;;  %v1374_v60 = vrot.slane %v2684_v50, 5 }
 0x105   : > { %v1376_v46 = vrot.slane %v2704_v41, 4  ;;  %v1547_v24 = vsel %vm487_vm14, %v2742_v53, %v1546_v58  ;;  %v1561_v51 = vsel %vm487_vm14, %v2758_v31, %v1560_v63  ;;  %v1378_v14 = vrot.slane %v2740_v28, 3 }
 0x106   : > { %v1513_v30 = vrot.slane %v2760_v8, 3  ;;  %v1570_v39 = vpack.c.b16 %v1561_v51, %v1547_v24  ;;  %v1369_v33 = vsel %vm481_vm12, %v1368_v35, %v1367_v48  ;;  %v1375_v9 = vsel %vm469_vm6, %v1374_v60, %v1373_v32 }
 0x107   : > { %v1515_v20 = vrot.slane %v2782_v55, 2  ;;  %v1377_v21 = vsel %vm472_vm7, %v1376_v46, %v1375_v9  ;;  %v1517_v53 = vrot.slane %v2784_v19, 1  ;;  %v1520_v31 = vrot.slane %v2666_v1, 7 }
 0x108   : > { %v1514_v16 = vsel %vm478_vm10, %v1513_v30, %v3380_v36  ;;  %1966 = vmatpush3.bf16.msra.mxu1 %v1570_v39  ;;  %v1379_v37 = vsel %vm475_vm8, %v1378_v14, %v1377_v21  ;;  %v1521_v5 = vrot.slane %v2684_v50, 6  ;;  %v1523_v0 = vrot.slane %v2704_v41, 5 }
 0x109   : > { %v1516_v8 = vsel %vm481_vm12, %v1515_v20, %v1514_v16  ;;  %1967 = vmatprep.subr.bf16.mxu1 %v3355_v7  ;;  %v1370_v55 = vsel %vm484_vm13, %v2784_v19, %v1369_v33  ;;  %v3381_v4 = vrot.slane %v2530_v42, 2  ;;  %v1525_v43 = vrot.slane %v2740_v28, 4 }
 0x10a   : > { %v1518_v1 = vsel %vm484_vm13, %v1517_v53, %v1516_v8  ;;  %v1372_v2 = vsel %vm487_vm14, %v1371_v22, %v1370_v55  ;;  %v3382_v34 = vrot.slane %v2532_v18, 1  ;;  %v1522_v7 = vsel %vm469_vm6, %v1521_v5, %v1520_v31 }
 0x10b   : > { %v1381_v27 = vsel %vm478_vm10, %v3381_v4, %v1379_v37  ;;  %v1519_v41 = vsel %vm487_vm14, %v2810_v47, %v1518_v1  ;;  %v1524_v19 = vsel %vm472_vm7, %v1523_v0, %v1522_v7  ;;  %v1531_v12 = vrot.slane %v2534_v40, 1 }
 0x10c   : > { %v1383_v50 = vsel %vm481_vm12, %v3382_v34, %v1381_v27  ;;  %v3383_v28 = vrot.slane %v2536_v52, 7  ;;  %v1526_v18 = vsel %vm475_vm8, %v1525_v43, %v1524_v19  ;;  %v597_v23 = vlaneseq }
 0x10d   : > { %v1384_v42 = vsel %vm484_vm13, %v2534_v40, %v1383_v50  ;;  %v1528_v13 = vsel %vm478_vm10, %v1527_v11, %v1526_v18  ;;  %v2134_v40 = vmov 1966171168  }
 0x10e   : > { %v1386_v56 = vsel %vm487_vm14, %v3383_v28, %v1384_v42  ;;  %v1530_v47 = vsel %vm481_vm12, %v1529_v62, %v1528_v13  ;;  %v595_v57 = vunpack.c.l.s4 %v2134_v40  ;;  %v598_v61 = vshrl.u32 %v597_v23, 7 }
 0x10f   : > { %v1422_v38 = vpack.c.b16 %v1386_v56, %v1372_v2  ;;  %v1532_v6 = vsel %vm484_vm13, %v1531_v12, %v1530_v47 }
 0x110   : > { %v1533_v10 = vsel %vm487_vm14, %v2536_v52, %v1532_v6  ;;  %v596_v11 = vunpack.c.0.s8 %v595_v57 }
 0x111   : > { %1958 = vmatpush3.bf16.msra.mxu0 %v1422_v38  ;;  %v1569_v59 = vpack.c.b16 %v1533_v10, %v1519_v41 }
 0x112   : > { %v3195_v54 = vsub.s32 %v596_v11, %v598_v61 }
 0x113   : > { %1968 = vmatpush3.bf16.msra.mxu1 %v1569_v59 }
 0x114   : > { %1960 = vmatmul.mubr.msk.bf16.vlgmr.msra.gmra.mxu0 %vm542_vm15, %v2850_v29 }
 0x116   : > { %1970 = vmatmul.mubr.msk.bf16.vlgmr.msra.gmra.mxu1 %vm542_vm15, %v2850_v29 }
 0x192   : > { %v584_v26 = vpop.f32.mrf.mxu0  ;;  %v731_v15 = vpop.f32.mrf.mxu1 }
 0x193   : > { %v585_v52 = vadd.f32 %v584_v26, %v3190_v25  ;;  %v732_v3 = vadd.f32 %v731_v15, %v3190_v25 }
 0x194   : > { %v1901_v45 = vpop.f32.mrf.mxu0  ;;  %v1911_v17 = vpop.f32.mrf.mxu1 }
 0x195   : > { %vm590_vm0 = vcmp.ge.f32.partialorder %v585_v52, 0.0  ;;  %v591_v29 = vmul.f32 0.01, %v585_v52  ;;  %vm737_vm1 = vcmp.ge.f32.partialorder %v732_v3, 0.0  ;;  %v738_v35 = vmul.f32 0.01, %v732_v3 }
 0x196   : > { %v587_v62 = vpop.f32.mrf.mxu0  ;;  %v734_v58 = vpop.f32.mrf.mxu1 }
 0x197   : > { %v592_v44 = vsel %vm590_vm0, %v585_v52, %v591_v29  ;;  %v739_v49 = vsel %vm737_vm1, %v732_v3, %v738_v35 }
 0x198   : > { %v600_v48 = vrot.slane %v592_v44, %v3195_v54  ;;  %v747_v32 = vrot.slane %v739_v49, %v3195_v54  ;;  %v1902_v63 = vpop.f32.mrf.mxu0  ;;  %v1912_v22 = vpop.f32.mrf.mxu1 }
 0x19a   : > { %v601_v60 = vcombine.high %v600_v48, %v600_v48  ;;  %v608_v46 = vrot.slane %v600_v48, %v3195_v54  ;;  %v748_v24 = vcombine.high %v747_v32, %v747_v32  ;;  %v755_v51 = vrot.slane %v747_v32, %v3195_v54 }
 0x19c   : > { %v615_v14 = vrot.slane %v601_v60, %v3195_v54  ;;  %v616_v30 = vcombine.high %v608_v46, %v608_v46  ;;  %623 = vst.msk [vmem:[%s3202_s12] sm:$0x1] %vm622_vm2, %v608_v46  ;;  %v762_v39 = vrot.slane %v748_v24, %v3195_v54  ;;  %v763_v33 = vcombine.high %v755_v51, %v755_v51 }
 0x19d   : > { %769 = vst.msk [vmem:[%s3202_s12 + $0x1] sm:$0x1] %vm622_vm2, %v755_v51 }
 0x19e   : > { %v617_v9 = vcombine.high %v615_v14, %v615_v14  ;;  %624 = vst.msk [vmem:[%s3202_s12 + $0x8] sm:$0x1] %vm622_vm2, %v615_v14  ;;  %625 = vst.msk [vmem:[%s3202_s12 + $0x10] sm:$0x1] %vm622_vm2, %v616_v30  ;;  %v764_v20 = vcombine.high %v762_v39, %v762_v39 }
 0x19f   : > { %770 = vst.msk [vmem:[%s3202_s12 + $0x9] sm:$0x1] %vm622_vm2, %v762_v39  ;;  %771 = vst.msk [vmem:[%s3202_s12 + $0x11] sm:$0x1] %vm622_vm2, %v763_v33 }
 0x1a0   : > { %626 = vst.msk [vmem:[%s3202_s12 + $0x18] sm:$0x1] %vm622_vm2, %v617_v9  ;;  %772 = vst.msk [vmem:[%s3202_s12 + $0x19] sm:$0x1] %vm622_vm2, %v764_v20 }
 0x1a1   : > { %v877_v21 = vpop.f32.mrf.mxu0 }
 0x1a2   : > { %v878_v36 = vadd.f32 %v877_v21, %v3190_v25 }
 0x1a3   : > { %v1921_v16 = vpop.f32.mrf.mxu0 }
 0x1a4   : > { %vm883_vm3 = vcmp.ge.f32.partialorder %v878_v36, 0.0  ;;  %v884_v53 = vmul.f32 0.01, %v878_v36 }
 0x1a5   : > { %v1023_v31 = vpop.f32.mrf.mxu1  ;;  %v880_v8 = vpop.f32.mrf.mxu0 }
 0x1a6   : > { %v1024_v37 = vadd.f32 %v1023_v31, %v3190_v25  ;;  %v885_v5 = vsel %vm883_vm3, %v878_v36, %v884_v53 }
 0x1a7   : > { %v1931_v0 = vpop.f32.mrf.mxu1  ;;  %v893_v55 = vrot.slane %v885_v5, %v3195_v54  ;;  %v1922_v27 = vpop.f32.mrf.mxu0 }
 0x1a8   : > { %vm1029_vm4 = vcmp.ge.f32.partialorder %v1024_v37, 0.0  ;;  %v1030_v4 = vmul.f32 0.01, %v1024_v37 }
 0x1a9   : > { %v1026_v1 = vpop.f32.mrf.mxu1  ;;  %v894_v43 = vcombine.high %v893_v55, %v893_v55  ;;  %v901_v2 = vrot.slane %v893_v55, %v3195_v54 }
 0x1aa   : > { %v1031_v34 = vsel %vm1029_vm4, %v1024_v37, %v1030_v4 }
 0x1ab   : > { %v1039_v50 = vrot.slane %v1031_v34, %v3195_v54  ;;  %v1932_v41 = vpop.f32.mrf.mxu1  ;;  %v908_v7 = vrot.slane %v894_v43, %v3195_v54  ;;  %v909_v42 = vcombine.high %v901_v2, %v901_v2  ;;  %915 = vst.msk [vmem:[%s3202_s12 + $0x2] sm:$0x1] %vm622_vm2, %v901_v2 }
 0x1ad   : > { %v1040_v19 = vcombine.high %v1039_v50, %v1039_v50  ;;  %v1047_v12 = vrot.slane %v1039_v50, %v3195_v54  ;;  %v910_v28 = vcombine.high %v908_v7, %v908_v7  ;;  %916 = vst.msk [vmem:[%s3202_s12 + $0xa] sm:$0x1] %vm622_vm2, %v908_v7  ;;  %917 = vst.msk [vmem:[%s3202_s12 + $0x12] sm:$0x1] %vm622_vm2, %v909_v42 }
 0x1af   : > { %v1054_v56 = vrot.slane %v1040_v19, %v3195_v54  ;;  %v1055_v18 = vcombine.high %v1047_v12, %v1047_v12  ;;  %1061 = vst.msk [vmem:[%s3202_s12 + $0x3] sm:$0x1] %vm622_vm2, %v1047_v12  ;;  %918 = vst.msk [vmem:[%s3202_s12 + $0x1a] sm:$0x1] %vm622_vm2, %v910_v28 }
 0x1b1   : > { %v1056_v38 = vcombine.high %v1054_v56, %v1054_v56  ;;  %1062 = vst.msk [vmem:[%s3202_s12 + $0xb] sm:$0x1] %vm622_vm2, %v1054_v56  ;;  %1063 = vst.msk [vmem:[%s3202_s12 + $0x13] sm:$0x1] %vm622_vm2, %v1055_v18 }
 0x1b3   : > { %1064 = vst.msk [vmem:[%s3202_s12 + $0x1b] sm:$0x1] %vm622_vm2, %v1056_v38 }
 0x1ba   : > { %v1170_v13 = vpop.f32.mrf.mxu0 }
 0x1bb   : > { %v1171_v47 = vadd.f32 %v1170_v13, %v3190_v25 }
 0x1bc   : > { %v1941_v6 = vpop.f32.mrf.mxu0 }
 0x1bd   : > { %vm1176_vm5 = vcmp.ge.f32.partialorder %v1171_v47, 0.0  ;;  %v1177_v10 = vmul.f32 0.01, %v1171_v47  ;;  %v1317_v59 = vpop.f32.mrf.mxu1 }
 0x1be   : > { %v1318_v40 = vadd.f32 %v1317_v59, %v3190_v25  ;;  %v1173_v57 = vpop.f32.mrf.mxu0 }
 0x1bf   : > { %v1178_v23 = vsel %vm1176_vm5, %v1171_v47, %v1177_v10  ;;  %v1951_v11 = vpop.f32.mrf.mxu1 }
 0x1c0   : > { %v1186_v61 = vrot.slane %v1178_v23, %v3195_v54  ;;  %vm1323_vm6 = vcmp.ge.f32.partialorder %v1318_v40, 0.0  ;;  %v1324_v26 = vmul.f32 0.01, %v1318_v40  ;;  %v1942_v15 = vpop.f32.mrf.mxu0 }
 0x1c1   : > { %v1320_v52 = vpop.f32.mrf.mxu1 }
 0x1c2   : > { %v1187_v3 = vcombine.high %v1186_v61, %v1186_v61  ;;  %v1194_v45 = vrot.slane %v1186_v61, %v3195_v54  ;;  %v1325_v17 = vsel %vm1323_vm6, %v1318_v40, %v1324_v26 }
 0x1c3   : > { %v1333_v29 = vrot.slane %v1325_v17, %v3195_v54  ;;  %v1952_v35 = vpop.f32.mrf.mxu1 }
 0x1c4   : > { %v1201_v62 = vrot.slane %v1187_v3, %v3195_v54  ;;  %v1202_v58 = vcombine.high %v1194_v45, %v1194_v45  ;;  %1208 = vst.msk [vmem:[%s3202_s12 + $0x4] sm:$0x1] %vm622_vm2, %v1194_v45 }
 0x1c5   : > { %v1334_v44 = vcombine.high %v1333_v29, %v1333_v29  ;;  %v1341_v49 = vrot.slane %v1333_v29, %v3195_v54 }
 0x1c6   : > { %v1203_v48 = vcombine.high %v1201_v62, %v1201_v62  ;;  %1209 = vst.msk [vmem:[%s3202_s12 + $0xc] sm:$0x1] %vm622_vm2, %v1201_v62  ;;  %1210 = vst.msk [vmem:[%s3202_s12 + $0x14] sm:$0x1] %vm622_vm2, %v1202_v58 }
 0x1c7   : > { %v1348_v32 = vrot.slane %v1334_v44, %v3195_v54  ;;  %v1349_v63 = vcombine.high %v1341_v49, %v1341_v49  ;;  %1355 = vst.msk [vmem:[%s3202_s12 + $0x5] sm:$0x1] %vm622_vm2, %v1341_v49 }
 0x1c8   : > { %1211 = vst.msk [vmem:[%s3202_s12 + $0x1c] sm:$0x1] %vm622_vm2, %v1203_v48 }
 0x1c9   : > { %v1350_v22 = vcombine.high %v1348_v32, %v1348_v32  ;;  %1356 = vst.msk [vmem:[%s3202_s12 + $0xd] sm:$0x1] %vm622_vm2, %v1348_v32  ;;  %1357 = vst.msk [vmem:[%s3202_s12 + $0x15] sm:$0x1] %vm622_vm2, %v1349_v63 }
 0x1cb   : > { %1358 = vst.msk [vmem:[%s3202_s12 + $0x1d] sm:$0x1] %vm622_vm2, %v1350_v22 }
 0x1d4   : > { %v1464_v60 = vpop.f32.mrf.mxu0 }
 0x1d5   : > { %v1465_v46 = vadd.f32 %v1464_v60, %v3190_v25 }
 0x1d6   : > { %v1961_v24 = vpop.f32.mrf.mxu0  ;;  %v1611_v14 = vpop.f32.mrf.mxu1 }
 0x1d7   : > { %vm1470_vm7 = vcmp.ge.f32.partialorder %v1465_v46, 0.0  ;;  %v1471_v51 = vmul.f32 0.01, %v1465_v46  ;;  %v1612_v33 = vadd.f32 %v1611_v14, %v3190_v25 }
 0x1d8   : > { %v1467_v30 = vpop.f32.mrf.mxu0  ;;  %v1971_v20 = vpop.f32.mrf.mxu1 }
 0x1d9   : > { %v1472_v39 = vsel %vm1470_vm7, %v1465_v46, %v1471_v51  ;;  %vm1617_vm8 = vcmp.ge.f32.partialorder %v1612_v33, 0.0  ;;  %v1618_v36 = vmul.f32 0.01, %v1612_v33 }
 0x1da   : > { %v1480_v9 = vrot.slane %v1472_v39, %v3195_v54  ;;  %v1962_v21 = vpop.f32.mrf.mxu0  ;;  %v1614_v31 = vpop.f32.mrf.mxu1 }
 0x1db   : > { %v1619_v37 = vsel %vm1617_vm8, %v1612_v33, %v1618_v36 }
 0x1dc   : > { %v1481_v16 = vcombine.high %v1480_v9, %v1480_v9  ;;  %v1488_v53 = vrot.slane %v1480_v9, %v3195_v54  ;;  %v1627_v5 = vrot.slane %v1619_v37, %v3195_v54  ;;  %v1972_v0 = vpop.f32.mrf.mxu1 }
 0x1de   : > { %v1495_v8 = vrot.slane %v1481_v16, %v3195_v54  ;;  %v1496_v25 = vcombine.high %v1488_v53, %v1488_v53  ;;  %1502 = vst.msk [vmem:[%s3202_s12 + $0x6] sm:$0x1] %vm622_vm2, %v1488_v53  ;;  %v1628_v4 = vcombine.high %v1627_v5, %v1627_v5  ;;  %v1635_v27 = vrot.slane %v1627_v5, %v3195_v54 }
 0x1e0   : > { %v1497_v55 = vcombine.high %v1495_v8, %v1495_v8  ;;  %1503 = vst.msk [vmem:[%s3202_s12 + $0xe] sm:$0x1] %vm622_vm2, %v1495_v8  ;;  %1504 = vst.msk [vmem:[%s3202_s12 + $0x16] sm:$0x1] %vm622_vm2, %v1496_v25  ;;  %v1642_v1 = vrot.slane %v1628_v4, %v3195_v54  ;;  %v1643_v43 = vcombine.high %v1635_v27, %v1635_v27  ;;  %1659 = sbr.rel (!%p2214_p6) target bundleno = 493 (0x1ed), region = 36 }
 0x1e1   : > { %1649 = vst.msk [vmem:[%s3202_s12 + $0x7] sm:$0x1] %vm622_vm2, %v1635_v27 }
 0x1e2   : > { %1505 = vst.msk [vmem:[%s3202_s12 + $0x1e] sm:$0x1] %vm622_vm2, %v1497_v55  ;;  %v1644_v2 = vcombine.high %v1642_v1, %v1642_v1  ;;  %1650 = vst.msk [vmem:[%s3202_s12 + $0xf] sm:$0x1] %vm622_vm2, %v1642_v1 }
 0x1e3   : > { %1651 = vst.msk [vmem:[%s3202_s12 + $0x17] sm:$0x1] %vm622_vm2, %v1643_v43 }
 0x1e4   : > { %1652 = vst.msk [vmem:[%s3202_s12 + $0x1f] sm:$0x1] %vm622_vm2, %v1644_v2 }
 0x1e8   : > { %v1700_v54 = vld [vmem:[%s3202_s12] sm:$0xff] }
 0x1e9   : > { %v1702_v34 = vld [vmem:[%s3202_s12 + $0x8] sm:$0xff]  ;;  %1701 = vst [vmem:[%s1665_s25] sm:$0xff] %v1700_v54 }
 0x1ea   : > { %v1704_v50 = vld [vmem:[%s3202_s12 + $0x10] sm:$0xff]  ;;  %1703 = vst [vmem:[%s1665_s25 + $0x20] sm:$0xff] %v1702_v34 }
 0x1eb   : > { %v1706_v41 = vld [vmem:[%s3202_s12 + $0x18] sm:$0xff]  ;;  %1705 = vst [vmem:[%s1665_s25 + $0x40] sm:$0xff] %v1704_v50 }
 0x1ec   : > { %1707 = vst [vmem:[%s1665_s25 + $0x60] sm:$0xff] %v1706_v41 }
 0x1ed PF: > { %s13_s20 = sadd.s32 1, %s2127_s20   ;;  %s3384_s12 = smov %s2099_s13 }
 0x1ee   : > { %p10_p12 = scmp.ge.s32.totalorder %s13_s20, 34   ;;  %s3385_s13 = smov %s2228_s5 }
 0x1ef   : > { %s3386_s14 = smov %s2115_s17  ;;  %s3387_s15 = smov %s2119_s18 }
 0x1f0   : > { %s3388_s16 = smov %s2123_s19  ;;  %s3389_s17 = smov %s3393_s21 }
 0x1f1   : > { %s3390_s18 = smov %s3397_s22  ;;  %s3391_s19 = smov %s3401_s24 }
 0x1f2   :  { %12 = sbr.rel (!%p10_p12) target bundleno = 5 (0x5), region = 104 }

// kernel: hyper_decoder_forward.5
= control target key start
LH: loop header
LB: loop body
LE: loop exit
PB: predicated region body
PF: predicated region fallthrough
CT: control target
= control target key end

     0   :  { %8 = vsyncpa [#allocation3], 0  ;;  %s3321_s0 = inlined_call_operand.vmem [shape: bf16[2,4,66,66], index: 0, kind: input, shape index: {}]   ;;  %s3322_s1 = inlined_call_operand.vmem [shape: bf16[1,4,36], index: 1, kind: input, shape index: {}]   ;;  %s3323_s2 = inlined_call_operand.vmem [shape: f32[4,1], index: 2, kind: input, shape index: {}]   ;;  %s3324_s3 = inlined_call_operand.hbm [shape: f32[1,2,4,64,64], index: 3, kind: output, shape index: {}]  }
   0x1   :  { %10 = vsyncpa [#allocation3 + $0x1], 0  ;;  %s2132_s12 = smov 0   ;;  %s2134_s13 = smov 0  }
   0x2   :  { %s2136_s14 = smov 0   ;;  %s2138_s15 = smov 0  }
   0x3   :  { %s2140_s16 = smov 0   ;;  %s2142_s17 = smov 0  }
   0x4   :  { %s2144_s18 = smov 0   ;;  %s2146_s19 = smov 0  }
   0x5 LB: > { %s1747_s20 = sadd.s32 4294967295, %s2100_s19   ;;  %s1748_s21 = sadd.s32 4294967294, %s2100_s19   ;;  %s2100_s19 = sphi %s2146_s19, %s16_s19   ;;  %s2096_s18 = sphi %s2144_s18, %s3384_s18   ;;  %s2092_s17 = sphi %s2142_s17, %s3383_s17   ;;  %s2088_s16 = sphi %s2140_s16, %s3382_s16   ;;  %s2084_s15 = sphi %s2138_s15, %s3381_s15   ;;  %s2080_s14 = sphi %s2136_s14, %s3380_s14   ;;  %s2076_s13 = sphi %s2134_s13, %s3379_s13   ;;  %s2072_s12 = sphi %s2132_s12, %s3378_s12  }
   0x6   : > { %s28_s22 = sadd.s32 1, %s2092_s17  ;;  %s35_s23 = sadd.s32 1, %s2096_s18 }
   0x7   : > { %p29_p0 = scmp.ge.s32.totalorder %s28_s22, 8  ;;  %p129_p1 = scmp.ne.s32.totalorder %s2080_s14, %s2076_s13 }
   0x8   : > { %p130_p2 = scmp.eq.s32.totalorder %s1747_s20, 15  ;;  %p135_p5 = scmp.ne.s32.totalorder %s2076_s13, %s2072_s12 }
   0x9   : > { %s3386_s22 = smov (%p29_p0, %s28_s22), 0  ;;  %s3388_s23 = smov (!%p29_p0, %s35_s23), %s2096_s18 }
   0xa   : > { %s115_s24 = ssub.s32 %s2092_s17, %s3386_s22  ;;  %p2183_p3 = por %p130_p2, %p129_p1 }
   0xb   : > { %p37_p4 = scmp.ge.s32.totalorder %s3388_s23, 2  ;;  %p136_p6 = scmp.eq.s32.totalorder %s1748_s21, 15 }
   0xc   : > { %p1752_p7 = scmp.ge.s32.totalorder %s2100_s19, 1  ;;  %p172_p9 = scmp.lt.s32.totalorder %s2100_s19, 17 }
   0xd   : > { %s3390_s23 = smov (%p37_p4, %s3388_s23), 0  ;;  %p2192_p8 = por %p136_p6, %p135_p5 }
   0xe   : > { %s113_s27 = ssub.s32 %s2096_s18, %s3390_s23  ;;  %s119_s28 = sadd.s32 1, %s2080_s14 }
   0xf   : > { %s116_s29 = sor.u32 %s115_s24, %s113_s27  ;;  %p173_p10 = pnand %p1752_p7, %p172_p9 }
  0x10   : > { %p117_p11 = scmp.eq.s32.totalorder %s116_s29, 0 }
  0x11   : > { %176 = sbr.rel (%p173_p10) target bundleno = 497 (0x1f1), region = 32 }
  0x12   : > { %s2201_s30 = scalar_select %p117_p11, %s2080_s14, %s119_s28  }
  0x16   : > { %p200_p12 = scmp.lt.s32.totalorder %s2088_s16, 1  ;;  %s1755_s4 = sshll.u32 %s2084_s15, 3  ;;  %vm324_vm0 = vcmask 1042432   ;;  %vm325_vm1 = vcmask 1046532   ;;  %vm245_vm3 = vsmask.f32 3328 }
  0x17   : > { %s213_s5 = sshra.s32 %s1755_s4, 3  ;;  %vm2209_vm2 = vmor %vm324_vm0, %vm325_vm1  ;;  %s2102_s21 = smov 126   ;;  %vm246_vm4 = vsmask.f32 7440  ;;  %vm473_vm6 = vcmask 1041409   ;;  %vm476_vm7 = vcmask 1042434  }
  0x18   : > { %s201_s6 = scalar_select %p200_p12, %s2088_s16, 1  ;;  %vm2242_vm5 = vmor %vm245_vm3, %vm246_vm4  ;;  %v3325_v63 = vmov 0.0   ;;  %vm479_vm8 = vcmask 1043459   ;;  %vm2105_vm9 = vmmov 0   ;;  %vm482_vm10 = vcmask 1044484  }
  0x19   : > { %s1756_s8 = sshll.u32 %s213_s5, 2  ;;  %s2103_s24 = smov 127   ;;  %1842 = vmatprep.subr.bf16.mxu0 %v3325_v63  ;;  %1852 = vmatprep.subr.bf16.mxu1 %v3325_v63  ;;  %vm550_vm11 = vcmask 1041408   ;;  %vm485_vm12 = vcmask 1045509   ;;  %vm488_vm13 = vcmask 1046534   ;;  %vm491_vm14 = vcmask 1047559  }
  0x1a   : > { %s1922_s7 = smul.u32 144, %s201_s6  ;;  %1848 = vmatprep.mubr.msk.bf16.mxu0 %vm2105_vm9, %v3325_v63  ;;  %1858 = vmatprep.mubr.msk.bf16.mxu1 %vm2105_vm9, %v3325_v63  ;;  %vm546_vm15 = vcmask 293888   ;;  %s197_s5 = sand.u32 1, %s2076_s13   ;;  %vm623_vm0 = vcmask 516096  }
  0x1b   : > { %s1753_s6 = sshll.u32 %s197_s5, 5  ;;  %s2108_s27 = smov [#allocation2]  }
  0x1c   : > { %s204_s11 = scalar_lea.vmem %s3321_s0, %s1922_s7  ;;  %s3167_s7 = scalar_lea.vmem [#allocation2], %s1753_s6 }
  0x1d   : > { %s216_s20 = scalar_lea.vmem %s204_s11, %s1756_s8  ;;  %s1806_s8 = sshll.u32 %s2088_s16, 5 }
  0x1e   : > { %v2213_v1 = vld [vmem:[%s216_s20] sm:$0xf]  ;;  %v218_v2 = vld [vmem:[%s216_s20 + $0x4] sm:$0x1]  ;;  %v220_v6 = vld [vmem:[%s216_s20 + $0x28] sm:$0x1]  ;;  %s1645_s9 = sadd.s32 %s2084_s15, %s1806_s8 }
  0x1f   : > { %v2215_v3 = vld [vmem:[%s216_s20 + $0x24] sm:$0xf]  ;;  %v1757_v4 = vrot.slane %v2213_v1, 9  ;;  %v329_v5 = vrot.slane %v218_v2, 5  ;;  %v333_v8 = vrot.slane %v220_v6, 5  ;;  %v249_v9 = vshrl.u32 %v2213_v1, 16 }
  0x20   : > { %v1758_v7 = vrot.slane %v2215_v3, 9  ;;  %v252_v10 = vshll.u32 %v2213_v1, 16  ;;  %v2221_v11 = vld [vmem:[%s216_s20 + $0x48] sm:$0xf]  ;;  %v258_v13 = vshll.u32 %v218_v2, 16  ;;  %v263_v20 = vshrl.u32 %v2215_v3, 16 }
  0x21   : > { %v330_v12 = vsel %vm2209_vm2, %v1757_v4, %v329_v5  ;;  %v222_v14 = vld [vmem:[%s216_s20 + $0x4c] sm:$0x1]  ;;  %v251_v15 = vrot.slane %v249_v9, 4  ;;  %v1759_v18 = vrot.slane %v2221_v11, 9  ;;  %v266_v21 = vshll.u32 %v2215_v3, 16  ;;  %s1650_s16 = sshll.u32 %s3167_s7, 4  ;;  %s3255_s16 = int_to_ptr.vmem [resolvable:$true] %s1650_s16 }
  0x22   : > { %351 = vrot.lane.b32.xlu0 %v330_v12, %s2102_s21  ;;  %343 = vrot.lane.b32.xlu1 %v330_v12, %s2103_s24  ;;  %v2229_v16 = vsel %vm2209_vm2, %v1758_v7, %v333_v8  ;;  %v254_v17 = vrot.slane %v252_v10, 5  ;;  %v337_v19 = vrot.slane %v222_v14, 5  ;;  %v2234_v22 = vld [vmem:[%s216_s20 + $0x6c] sm:$0xf]  ;;  %v224_v23 = vld [vmem:[%s216_s20 + $0x70] sm:$0x1]  ;;  %v1785_v27 = vcombine.low %v330_v12, %v330_v12 }
  0x23   : > { %v260_v25 = vrot.slane %v258_v13, 5  ;;  %v272_v26 = vshll.u32 %v220_v6, 16  ;;  %v1786_v28 = vcombine.low %v2229_v16, %v2229_v16  ;;  %v265_v30 = vrot.slane %v263_v20, 4  ;;  %s1807_s15 = sshll.u32 %s1645_s9, 7  ;;  %s2012_s28 = sshll.u32 %s2108_s27, 4  ;;  %s2013_s28 = int_to_ptr.vmem [resolvable:$false] %s2012_s28 }
  0x24   : > { %v255_v24 = vor.u32 %v254_v17, %v251_v15  ;;  %v268_v31 = vrot.slane %v266_v21, 5  ;;  %v2248_v33 = vsel %vm2209_vm2, %v1759_v18, %v337_v19  ;;  %v1760_v34 = vrot.slane %v2234_v22, 9  ;;  %s3260_s20 = scalar_lea.hbm %s3324_s3, %s1807_s15  ;;  %s2014_s29 = scalar_lea.vmem %s2013_s28, 1024 }
  0x25   : > { %v341_v35 = vrot.slane %v224_v23, 5  ;;  %v1787_v36 = vcombine.low %v2248_v33, %v2248_v33  ;;  %v274_v38 = vrot.slane %v272_v26, 5  ;;  %v277_v39 = vshrl.u32 %v2221_v11, 16  ;;  %p2015_p2 = scmp.lt.s32.totalorder %s3255_s16, %s2013_s28 }
  0x26   : > { %353 = vrot.lane.b32.xlu0 %v2229_v16, %s2102_s21  ;;  %v256_v32 = vrot.slane %v255_v24, 4  ;;  %v269_v37 = vor.u32 %v268_v31, %v265_v30  ;;  %v280_v42 = vshll.u32 %v2221_v11, 16  ;;  %v286_v43 = vshll.u32 %v222_v14, 16 }
  0x27   : > { %v2260_v41 = vsel %vm2209_vm2, %v1760_v34, %v341_v35  ;;  %v2269_v46 = vunpack.c.l.b16 %v1785_v27  ;;  %v279_v47 = vrot.slane %v277_v39, 4  ;;  %v291_v49 = vshrl.u32 %v2234_v22, 16 }
  0x28   : > { %v2256_v40 = vsel %vm2242_vm5, %v256_v32, %v260_v25  ;;  %v270_v44 = vrot.slane %v269_v37, 4  ;;  %v1788_v45 = vcombine.low %v2260_v41, %v2260_v41  ;;  %v282_v48 = vrot.slane %v280_v42, 5 }
  0x29   : > { %304 = vrot.lane.b32.xlu1 %v2256_v40, %s2103_s24  ;;  %v2272_v50 = vunpack.c.l.b16 %v1786_v28  ;;  %v2274_v51 = vunpack.c.l.b16 %v1787_v36  ;;  %v294_v53 = vshll.u32 %v2234_v22, 16  ;;  %v288_v55 = vrot.slane %v286_v43, 5 }
  0x2a   : > { %355 = vrot.lane.b32.xlu0 %v2248_v33, %s2102_s21  ;;  %v2278_v52 = vsel %vm2242_vm5, %v270_v44, %v274_v38  ;;  %v283_v54 = vor.u32 %v282_v48, %v279_v47  ;;  %v293_v56 = vrot.slane %v291_v49, 4  ;;  %v300_v57 = vshll.u32 %v224_v23, 16 }
  0x2b   : > { %v2283_v58 = vunpack.c.l.b16 %v1788_v45  ;;  %v296_v59 = vrot.slane %v294_v53, 5  ;;  %v521_v60 = vrot.slane %v2272_v50, 7  ;;  %v523_v0 = vrot.slane %v2274_v51, 6 }
  0x2c   : > { %v284_v61 = vrot.slane %v283_v54, 4  ;;  %v302_v62 = vrot.slane %v300_v57, 5  ;;  %v670_v6 = vrot.slane %v2269_v46, 1  ;;  %v672_v9 = vrot.slane %v2274_v51, 7 }
  0x2d   : > { %306 = vrot.lane.b32.xlu1 %v2278_v52, %s2103_s24  ;;  %v297_v2 = vor.u32 %v296_v59, %v293_v56  ;;  %v522_v4 = vsel %vm473_vm6, %v521_v60, %v2269_v46  ;;  %v525_v5 = vrot.slane %v2283_v58, 5  ;;  %v674_v10 = vrot.slane %v2283_v58, 6 }
  0x2e   : > { %357 = vrot.lane.b32.xlu0 %v2260_v41, %s2102_s21  ;;  %v2297_v7 = vsel %vm2242_vm5, %v284_v61, %v288_v55  ;;  %v524_v8 = vsel %vm476_vm7, %v523_v0, %v522_v4  ;;  %v671_v14 = vsel %vm473_vm6, %v2272_v50, %v670_v6  ;;  %v813_v15 = vrot.slane %v2269_v46, 2 }
  0x2f   : > { %v298_v12 = vrot.slane %v297_v2, 4  ;;  %v2307_v13 = vsel %vm479_vm8, %v525_v5, %v524_v8  ;;  %v814_v17 = vrot.slane %v2272_v50, 1  ;;  %v817_v18 = vrot.slane %v2283_v58, 7 }
  0x30   : > { %v673_v20 = vsel %vm476_vm7, %v672_v9, %v671_v14  ;;  %v956_v25 = vrot.slane %v2269_v46, 3  ;;  %v957_v26 = vrot.slane %v2272_v50, 2  ;;  %v959_v28 = vrot.slane %v2274_v51, 1 }
  0x31   : > { %308 = vrot.lane.b32.xlu1 %v2297_v7, %s2103_s24  ;;  %v2316_v19 = vsel %vm2242_vm5, %v298_v12, %v302_v62  ;;  %v2320_v21 = vsel %vm479_vm8, %v674_v10, %v673_v20  ;;  %v815_v23 = vsel %vm473_vm6, %v814_v17, %v813_v15  ;;  %v1762_v32 = vcombine.low %v2215_v3, %v2215_v3 }
  0x32   : > { %312 = vrot.lane.b32.xlu0 %v2256_v40, %s2102_s21  ;;  %v816_v24 = vsel %vm476_vm7, %v2274_v51, %v815_v23  ;;  %v958_v29 = vsel %vm473_vm6, %v957_v26, %v956_v25  ;;  %v1763_v34 = vcombine.low %v2221_v11, %v2221_v11  ;;  %v1761_v35 = vcombine.low %v2213_v1, %v2213_v1 }
  0x33   : > { %v2332_v27 = vsel %vm479_vm8, %v817_v18, %v816_v24  ;;  %v960_v30 = vsel %vm476_vm7, %v959_v28, %v958_v29  ;;  %v1764_v36 = vcombine.low %v2234_v22, %v2234_v22  ;;  %v2357_v37 = vunpack.c.l.b16 %v1762_v32 }
  0x34   : > { %v2343_v31 = vsel %vm479_vm8, %v2283_v58, %v960_v30  ;;  %v2359_v38 = vunpack.c.l.b16 %v1763_v34  ;;  %v2361_v39 = vunpack.c.l.b16 %v1761_v35  ;;  %v1099_v57 = vrot.slane %v2269_v46, 4 }
  0x35   : > { %310 = vrot.lane.b32.xlu1 %v2316_v19, %s2103_s24  ;;  %v2363_v42 = vunpack.c.l.b16 %v1764_v36  ;;  %v472_v43 = vrot.slane %v2357_v37, 7  ;;  %v1100_v59 = vrot.slane %v2272_v50, 3  ;;  %v772_v62 = vrot.slane %v2357_v37, 1 }
  0x36   : > { %237 = vrot.lane.b32.xlu0 %v2213_v1, %s2102_s21  ;;  %v628_v47 = vrot.slane %v2361_v39, 1  ;;  %v630_v49 = vrot.slane %v2359_v38, 7  ;;  %v771_v61 = vrot.slane %v2361_v39, 2  ;;  %v1243_v4 = vrot.slane %v2269_v46, 5 }
  0x37   : > { %v474_v44 = vsel %vm473_vm6, %v472_v43, %v2361_v39  ;;  %v478_v45 = vrot.slane %v2363_v42, 5  ;;  %v632_v54 = vrot.slane %v2363_v42, 6  ;;  %v775_v0 = vrot.slane %v2363_v42, 7 }
  0x38   : > { %v629_v53 = vsel %vm473_vm6, %v2357_v37, %v628_v47  ;;  %v773_v2 = vsel %vm473_vm6, %v772_v62, %v771_v61  ;;  %v1244_v5 = vrot.slane %v2272_v50, 4  ;;  %v1248_v8 = vrot.slane %v2283_v58, 2 }
  0x39   : > { %239 = vrot.lane.b32.xlu1 %v2215_v3, %s2102_s21  ;;  %v631_v55 = vsel %vm476_vm7, %v630_v49, %v629_v53  ;;  %v774_v6 = vsel %vm476_vm7, %v2359_v38, %v773_v2  ;;  %v914_v10 = vrot.slane %v2361_v39, 3  ;;  %v915_v12 = vrot.slane %v2357_v37, 2 }
  0x3a   : > { %314 = vrot.lane.b32.xlu0 %v2278_v52, %s2102_s21  ;;  %v2389_v56 = vsel %vm479_vm8, %v632_v54, %v631_v55  ;;  %v2425_v9 = vsel %vm479_vm8, %v775_v0, %v774_v6  ;;  %v917_v14 = vrot.slane %v2359_v38, 1  ;;  %v1245_v17 = vsel %vm473_vm6, %v1244_v5, %v1243_v4 }
  0x3b   : > { %v916_v15 = vsel %vm473_vm6, %v915_v12, %v914_v10  ;;  %v1057_v25 = vrot.slane %v2361_v39, 4  ;;  %v1058_v26 = vrot.slane %v2357_v37, 3  ;;  %v1060_v28 = vrot.slane %v2359_v38, 2 }
  0x3c   : > { %v918_v18 = vsel %vm476_vm7, %v917_v14, %v916_v15  ;;  %v1062_v29 = vrot.slane %v2363_v42, 1  ;;  %v1387_v34 = vrot.slane %v2269_v46, 6  ;;  %v1388_v35 = vrot.slane %v2272_v50, 5 }
  0x3d   : > { %345 = vrot.lane.b32.xlu1 %v2229_v16, %s2103_s24  ;;  %v475_v16 = vrot.slane %v2359_v38, 6  ;;  %v2436_v23 = vsel %vm479_vm8, %v2363_v42, %v918_v18  ;;  %v1059_v30 = vsel %vm473_vm6, %v1058_v26, %v1057_v25  ;;  %v1390_v43 = vrot.slane %v2274_v51, 4 }
  0x3e   : > { %241 = vrot.lane.b32.xlu0 %v2221_v11, %s2102_s21  ;;  %v1061_v32 = vsel %vm476_vm7, %v1060_v28, %v1059_v30  ;;  %v1201_v47 = vrot.slane %v2361_v39, 5  ;;  %v1204_v49 = vrot.slane %v2359_v38, 3  ;;  %v1206_v53 = vrot.slane %v2363_v42, 2 }
  0x3f   : > { %v477_v48 = vsel %vm476_vm7, %v475_v16, %v474_v44  ;;  %v2450_v36 = vsel %vm479_vm8, %v1062_v29, %v1061_v32  ;;  %v1389_v16 = vsel %vm473_vm6, %v1388_v35, %v1387_v34  ;;  %v1392_v44 = vrot.slane %v2283_v58, 3 }
  0x40   : > { %v1350_v2 = vrot.slane %v2363_v42, 3  ;;  %v1489_v6 = vrot.slane %v2361_v39, 7  ;;  %v1494_v10 = vrot.slane %v2363_v42, 4  ;;  %v1773_v12 = vcombine.low %v2256_v40, %v2256_v40 }
  0x41   : > { %316 = vrot.lane.b32.xlu1 %v2297_v7, %s2102_s21  ;;  %v1774_v14 = vcombine.low %v2278_v52, %v2278_v52  ;;  %v1775_v15 = vcombine.low %v2297_v7, %v2297_v7  ;;  %v2106_v29 = vmov 0  }
  0x42   : > { %347 = vrot.lane.b32.xlu0 %v2248_v33, %s2103_s24  ;;  %v2382_v33 = vsel %vm479_vm8, %v478_v45, %v477_v48  ;;  %v1391_v45 = vsel %vm476_vm7, %v1390_v43, %v1389_v16  ;;  %v1202_v48 = vrot.slane %v2357_v37, 4  ;;  %v2503_v42 = vunpack.c.l.b16 %v1773_v12 }
  0x43   : > { %v2461_v54 = vsel %vm479_vm8, %v1392_v44, %v1391_v45  ;;  %v2505_v18 = vunpack.c.l.b16 %v1774_v14  ;;  %v2507_v40 = vunpack.c.l.b16 %v1775_v15  ;;  %2003 = vset.pattern.permute.xlu0 %v2106_v29 }
  0x44   : > { %3337 = vst [vmem:[#allocation5_spill] sm:$0xff] %v2461_v54  ;;  %v1203_v55 = vsel %vm473_vm6, %v1202_v48, %v1201_v47 }
  0x45   : > { %243 = vrot.lane.b32.xlu1 %v2234_v22, %s2102_s21 }
  0x46   : > { %318 = vrot.lane.b32.xlu0 %v2316_v19, %s2102_s21  ;;  %s3270_s21 = scalar_lea.sflag [#allocation3], %s197_s5 }
  0x49   : > { %349 = vrot.lane.b32.xlu1 %v2260_v41, %s2103_s24  ;;  %v1102_v41 = vrot.slane %v2274_v51, 2 }
  0x4a   : > { %229 = vrot.lane.b32.xlu0 %v2213_v1, %s2103_s24  ;;  %v1101_v1 = vsel %vm473_vm6, %v1100_v59, %v1099_v57  ;;  %v1531_v57 = vrot.slane %v2269_v46, 7  ;;  %v1532_v59 = vrot.slane %v2272_v50, 6  ;;  %v1345_v46 = vrot.slane %v2361_v39, 6 }
  0x4b   : > { %v1103_v60 = vsel %vm476_vm7, %v1102_v41, %v1101_v1  ;;  %v1534_v41 = vrot.slane %v2274_v51, 5  ;;  %v1205_v1 = vsel %vm476_vm7, %v1204_v49, %v1203_v55  ;;  %v1346_v50 = vrot.slane %v2357_v37, 5 }
  0x4c   : > { %v1533_v61 = vsel %vm473_vm6, %v1532_v59, %v1531_v57  ;;  %v1776_v39 = vcombine.low %v2316_v19, %v2316_v19  ;;  %v212_v19 = vld [vmem:[%s3323_s2] sm:$0xf] }
  0x4d   : > { %231 = vrot.lane.b32.xlu1 %v2215_v3, %s2103_s24  ;;  %v1104_v3 = vrot.slane %v2283_v58, 1  ;;  %v1535_v62 = vsel %vm476_vm7, %v1534_v41, %v1533_v61 }
  0x4e   : > { %233 = vrot.lane.b32.xlu0 %v2221_v11, %s2103_s24  ;;  %v2509_v52 = vunpack.c.l.b16 %v1776_v39 }
  0x4f   : > { %v2412_v11 = vsel %vm479_vm8, %v1104_v3, %v1103_v60  ;;  %v1536_v3 = vrot.slane %v2283_v58, 4  ;;  %v2470_v60 = vsel %vm479_vm8, %v1206_v53, %v1205_v1  ;;  %v1347_v58 = vsel %vm473_vm6, %v1346_v50, %v1345_v46 }
  0x51   : > { %235 = vrot.lane.b32.xlu1 %v2234_v22, %s2103_s24  ;;  %v1246_v22 = vrot.slane %v2274_v51, 3  ;;  %v2475_v0 = vsel %vm479_vm8, %v1536_v3, %v1535_v62  ;;  %v1348_v51 = vrot.slane %v2359_v38, 4  ;;  %s2008_s24 = scalar_lea.vmem %s3255_s16, 512 }
  0x52   : > { %3338 = vst [vmem:[#allocation6_spill] sm:$0xff] %v2475_v0  ;;  %361 = vperm.xlu0 %2003, %v212_v19   ;;  %p2009_p13 = scmp.ne.s32.totalorder %s3255_s16, %s2008_s24  ;;  %p2016_p4 = scmp.lt.s32.totalorder %s2014_s29, %s2008_s24 }
  0x53   : > { %v1247_v20 = vsel %vm476_vm7, %v1246_v22, %v1245_v17  ;;  %v1349_v4 = vsel %vm476_vm7, %v1348_v51, %v1347_v58  ;;  %v1490_v22 = vrot.slane %v2357_v37, 6 }
  0x54   : > { %v2439_v24 = vsel %vm479_vm8, %v1248_v8, %v1247_v20  ;;  %v2484_v5 = vsel %vm479_vm8, %v1350_v2, %v1349_v4  ;;  %v1492_v8 = vrot.slane %v2359_v38, 5  ;;  %p2010_p0 = pnand %p2009_p13, %p2183_p3  ;;  %p2017_p5 = por %p2016_p4, %p2015_p2 }
  0x55   : > { %3339 = vst [vmem:[#allocation7_spill] sm:$0xff] %v2484_v5  ;;  %v1491_v17 = vsel %vm473_vm6, %v1490_v22, %v1489_v6 }
  0x56   : > { %v1493_v37 = vsel %vm476_vm7, %v1492_v8, %v1491_v17  ;;  %p2011_p1 = pneg %p2010_p0 }
  0x57   : > { %v2501_v38 = vsel %vm479_vm8, %v1494_v10, %v1493_v37 }
  0x58   : > { %3340 = vst [vmem:[#allocation8_spill] sm:$0xff] %v2501_v38  ;;  %p2018_p6 = pnand %p2017_p5, %p2011_p1 }
  0x94   : > { %v352_v43 = vpop.permute.xlu0 %351  ;;  %v344_v16 = vpop.permute.xlu1 %343 }
  0x95   : > { %v1793_v49 = vcombine.low %v352_v43, %v352_v43  ;;  %v1789_v53 = vcombine.low %v344_v16, %v344_v16 }
  0x97   : > { %v2533_v61 = vunpack.c.l.b16 %v1793_v49  ;;  %v2535_v62 = vunpack.c.l.b16 %v1789_v53 }
  0x98   : > { %v354_v51 = vpop.permute.xlu0 %353 }
  0x99   : > { %3341 = vst [vmem:[#allocation9_spill] sm:$0xff] %v2533_v61  ;;  %v1794_v22 = vcombine.low %v354_v51, %v354_v51  ;;  %v684_v8 = vrot.slane %v2533_v61, 1  ;;  %v527_v10 = vrot.slane %v2535_v62, 4  ;;  %v676_v12 = vrot.slane %v2535_v62, 5 }
  0x9a   : > { %v827_v14 = vrot.slane %v2533_v61, 2  ;;  %v970_v15 = vrot.slane %v2533_v61, 3  ;;  %v819_v17 = vrot.slane %v2535_v62, 6  ;;  %v962_v39 = vrot.slane %v2535_v62, 7 }
  0x9b   : > { %v2550_v37 = vunpack.c.l.b16 %v1794_v22  ;;  %v2554_v19 = vsel %vm482_vm10, %v527_v10, %v2307_v13  ;;  %v2558_v29 = vsel %vm482_vm10, %v676_v12, %v2320_v21  ;;  %v1113_v43 = vrot.slane %v2533_v61, 4  ;;  %v305_v16 = vpop.permute.xlu1 %304 }
  0x9c   : > { %v356_v49 = vpop.permute.xlu0 %355  ;;  %v2563_v53 = vsel %vm482_vm10, %v819_v17, %v2332_v27  ;;  %v2567_v51 = vsel %vm482_vm10, %v962_v39, %v2343_v31  ;;  %v1257_v22 = vrot.slane %v2533_v61, 5  ;;  %v2573_v13 = vsel %vm482_vm10, %v2535_v62, %v2412_v11 }
  0x9d   : > { %3342 = vst [vmem:[#allocation10_spill] sm:$0xff] %v2550_v37  ;;  %v1777_v21 = vcombine.low %v305_v16, %v305_v16  ;;  %v1795_v10 = vcombine.low %v356_v49, %v356_v49  ;;  %v535_v12 = vrot.slane %v2550_v37, 7  ;;  %v685_v6 = vsel %vm473_vm6, %v2550_v37, %v684_v8 }
  0x9e   : > { %v828_v27 = vrot.slane %v2550_v37, 1  ;;  %v971_v17 = vrot.slane %v2550_v37, 2  ;;  %v1114_v31 = vrot.slane %v2550_v37, 3  ;;  %v1258_v39 = vrot.slane %v2550_v37, 4 }
  0x9f   : > { %v2582_v4 = vunpack.c.l.b16 %v1777_v21  ;;  %v2584_v58 = vunpack.c.l.b16 %v1795_v10  ;;  %v536_v11 = vsel %vm473_vm6, %v535_v12, %v2533_v61  ;;  %v307_v49 = vpop.permute.xlu1 %306 }
  0xa0   : > { %v358_v2 = vpop.permute.xlu0 %357  ;;  %v829_v8 = vsel %vm473_vm6, %v828_v27, %v827_v14  ;;  %v972_v50 = vsel %vm473_vm6, %v971_v17, %v970_v15  ;;  %v2592_v46 = vsel %vm473_vm6, %v1114_v31, %v1113_v43  ;;  %v2595_v3 = vsel %vm473_vm6, %v1258_v39, %v1257_v22 }
  0xa1   : > { %v1778_v21 = vcombine.low %v307_v49, %v307_v49  ;;  %v1796_v10 = vcombine.low %v358_v2, %v358_v2  ;;  %v537_v1 = vrot.slane %v2584_v58, 6  ;;  %v686_v12 = vrot.slane %v2584_v58, 7 }
  0xa2   : > { %v656_v41 = vrot.slane %v2582_v4, 1  ;;  %v830_v14 = vsel %vm476_vm7, %v2584_v58, %v829_v8  ;;  %v973_v15 = vrot.slane %v2584_v58, 1  ;;  %v799_v43 = vrot.slane %v2582_v4, 2 }
  0xa3   : > { %v2604_v27 = vunpack.c.l.b16 %v1778_v21  ;;  %v2606_v22 = vunpack.c.l.b16 %v1796_v10  ;;  %v538_v2 = vsel %vm476_vm7, %v537_v1, %v536_v11  ;;  %v687_v17 = vsel %vm476_vm7, %v686_v12, %v685_v6  ;;  %v309_v31 = vpop.permute.xlu1 %308 }
  0xa4   : > { %v313_v39 = vpop.permute.xlu0 %312  ;;  %v974_v49 = vsel %vm476_vm7, %v973_v15, %v972_v50  ;;  %v942_v16 = vrot.slane %v2582_v4, 3  ;;  %v1779_v57 = vcombine.low %v309_v31, %v309_v31 }
  0xa5   : > { %v1781_v55 = vcombine.low %v313_v39, %v313_v39  ;;  %v539_v21 = vrot.slane %v2606_v22, 5  ;;  %v688_v10 = vrot.slane %v2606_v22, 6  ;;  %v507_v1 = vrot.slane %v2604_v27, 7 }
  0xa6   : > { %v657_v6 = vsel %vm473_vm6, %v2604_v27, %v656_v41  ;;  %v831_v11 = vrot.slane %v2606_v22, 7  ;;  %v975_v50 = vsel %vm479_vm8, %v2606_v22, %v974_v49  ;;  %v2622_v12 = vunpack.c.l.b16 %v1779_v57 }
  0xa7   : > { %v2624_v15 = vunpack.c.l.b16 %v1781_v55  ;;  %v540_v31 = vsel %vm479_vm8, %v539_v21, %v538_v2  ;;  %v689_v39 = vsel %vm479_vm8, %v688_v10, %v687_v17  ;;  %v311_v59 = vpop.permute.xlu1 %310  ;;  %v508_v41 = vsel %vm473_vm6, %v507_v1, %v2582_v4 }
  0xa8   : > { %v238_v48 = vpop.permute.xlu0 %237  ;;  %v543_v47 = vpack.c.b16 %v540_v31, %v540_v31  ;;  %v692_v45 = vpack.c.b16 %v689_v39, %v689_v39  ;;  %v832_v44 = vsel %vm479_vm8, %v831_v11, %v830_v14  ;;  %v1780_v35 = vcombine.low %v311_v59, %v311_v59 }
  0xa9   : > { %v1769_v8 = vcombine.low %v238_v48, %v238_v48  ;;  %v509_v57 = vrot.slane %v2622_v12, 6  ;;  %v513_v55 = vrot.slane %v2624_v15, 4  ;;  %v658_v17 = vrot.slane %v2622_v12, 7 }
  0xaa   : > { %v552_v49 = vsel %vm550_vm11, %v543_v47, 0  ;;  %v696_v2 = vsel %vm550_vm11, %v692_v45, 0  ;;  %v662_v21 = vrot.slane %v2624_v15, 5  ;;  %v2637_v10 = vunpack.c.l.b16 %v1780_v35 }
  0xab   : > { %v2639_v1 = vunpack.c.l.b16 %v1769_v8  ;;  %1843 = vmatpush3.bf16.msra.mxu0 %v552_v49  ;;  %1853 = vmatpush3.bf16.msra.mxu1 %v696_v2  ;;  %v510_v48 = vsel %vm476_vm7, %v509_v57, %v508_v41  ;;  %v835_v59 = vpack.c.b16 %v832_v44, %v832_v44  ;;  %v240_v14 = vpop.permute.xlu1 %239  ;;  %v659_v45 = vsel %vm476_vm7, %v658_v17, %v657_v6 }
  0xac   : > { %v315_v11 = vpop.permute.xlu0 %314  ;;  %1844 = vmatprep.subr.bf16.mxu0 %v3325_v63  ;;  %1854 = vmatprep.subr.bf16.mxu1 %v3325_v63  ;;  %v978_v47 = vpack.c.b16 %v975_v50, %v975_v50  ;;  %v800_v31 = vrot.slane %v2604_v27, 1  ;;  %v805_v35 = vrot.slane %v2624_v15, 6  ;;  %v1770_v8 = vcombine.low %v240_v14, %v240_v14 }
  0xad   : > { %v1782_v39 = vcombine.low %v315_v11, %v315_v11  ;;  %v511_v49 = vrot.slane %v2637_v10, 5  ;;  %v660_v41 = vrot.slane %v2637_v10, 6  ;;  %v642_v44 = vrot.slane %v2639_v1, 1 }
  0xae   : > { %v2651_v57 = vsel %vm550_vm11, %v835_v59, 0  ;;  %v2654_v2 = vsel %vm550_vm11, %v978_v47, 0  ;;  %v801_v6 = vsel %vm473_vm6, %v800_v31, %v799_v43  ;;  %v2657_v50 = vunpack.c.l.b16 %v1770_v8 }
  0xaf   : > { %v2659_v17 = vunpack.c.l.b16 %v1782_v39  ;;  %v512_v14 = vsel %vm479_vm8, %v511_v49, %v510_v48  ;;  %v661_v11 = vsel %vm479_vm8, %v660_v41, %v659_v45  ;;  %v346_v34 = vpop.permute.xlu1 %345  ;;  %v802_v47 = vsel %vm476_vm7, %v2622_v12, %v801_v6 }
  0xb0   : > { %v242_v32 = vpop.permute.xlu0 %241  ;;  %v514_v28 = vsel %vm482_vm10, %v513_v55, %v512_v14  ;;  %v663_v59 = vsel %vm482_vm10, %v662_v21, %v661_v11  ;;  %v803_v63 = vrot.slane %v2637_v10, 7  ;;  %v1790_v43 = vcombine.low %v346_v34, %v346_v34 }
  0xb1   : > { %v1771_v31 = vcombine.low %v242_v32, %v242_v32  ;;  %v515_v8 = vrot.slane %v2659_v17, 3  ;;  %v664_v39 = vrot.slane %v2659_v17, 4  ;;  %v493_v48 = vrot.slane %v2657_v50, 7 }
  0xb2   : > { %v643_v45 = vsel %vm473_vm6, %v2657_v50, %v642_v44  ;;  %v804_v55 = vsel %vm479_vm8, %v803_v63, %v802_v47  ;;  %v807_v21 = vrot.slane %v2659_v17, 5  ;;  %v2675_v49 = vunpack.c.l.b16 %v1790_v43 }
  0xb3   : > { %v2677_v41 = vunpack.c.l.b16 %v1771_v31  ;;  %v516_v32 = vsel %vm485_vm12, %v515_v8, %v514_v28  ;;  %v665_v34 = vsel %vm485_vm12, %v664_v39, %v663_v59  ;;  %v317_v6 = vpop.permute.xlu1 %316  ;;  %v494_v11 = vsel %vm473_vm6, %v493_v48, %v2639_v1 }
  0xb4   : > { %v348_v14 = vpop.permute.xlu0 %347  ;;  %v806_v30 = vsel %vm482_vm10, %v805_v35, %v804_v55  ;;  %v943_v44 = vrot.slane %v2604_v27, 2  ;;  %v945_v63 = vrot.slane %v2622_v12, 1  ;;  %v1783_v47 = vcombine.low %v317_v6, %v317_v6 }
  0xb5   : > { %v1791_v43 = vcombine.low %v348_v14, %v348_v14  ;;  %v529_v31 = vrot.slane %v2675_v49, 3  ;;  %v678_v25 = vrot.slane %v2675_v49, 4  ;;  %v495_v28 = vrot.slane %v2677_v41, 6 }
  0xb6   : > { %v644_v59 = vrot.slane %v2677_v41, 7  ;;  %v808_v8 = vsel %vm485_vm12, %v807_v21, %v806_v30  ;;  %v821_v39 = vrot.slane %v2675_v49, 5  ;;  %v2692_v35 = vunpack.c.l.b16 %v1783_v47 }
  0xb7   : > { %v2694_v48 = vunpack.c.l.b16 %v1791_v43  ;;  %v530_v55 = vsel %vm485_vm12, %v529_v31, %v2554_v19  ;;  %v679_v6 = vsel %vm485_vm12, %v678_v25, %v2558_v29  ;;  %v244_v14 = vpop.permute.xlu1 %243  ;;  %v496_v26 = vsel %vm476_vm7, %v495_v28, %v494_v11 }
  0xb8   : > { %v319_v20 = vpop.permute.xlu0 %318  ;;  %v645_v7 = vsel %vm476_vm7, %v644_v59, %v643_v45  ;;  %v822_v30 = vsel %vm485_vm12, %v821_v39, %v2563_v53  ;;  %v944_v21 = vsel %vm473_vm6, %v943_v44, %v942_v16  ;;  %v1772_v47 = vcombine.low %v244_v14, %v244_v14 }
  0xb9   : > { %v1784_v43 = vcombine.low %v319_v20, %v319_v20  ;;  %v517_v19 = vrot.slane %v2692_v35, 2  ;;  %v531_v31 = vrot.slane %v2694_v48, 2  ;;  %v666_v25 = vrot.slane %v2692_v35, 3 }
  0xba   : > { %v680_v29 = vrot.slane %v2694_v48, 3  ;;  %v809_v11 = vrot.slane %v2692_v35, 4  ;;  %v823_v45 = vrot.slane %v2694_v48, 4  ;;  %v2713_v28 = vunpack.c.l.b16 %v1772_v47 }
  0xbb   : > { %v2715_v53 = vunpack.c.l.b16 %v1784_v43  ;;  %v518_v16 = vsel %vm488_vm13, %v517_v19, %v516_v32  ;;  %v532_v20 = vsel %vm488_vm13, %v531_v31, %v530_v55  ;;  %v350_v44 = vpop.permute.xlu1 %349  ;;  %v667_v39 = vsel %vm488_vm13, %v666_v25, %v665_v34 }
  0xbc   : > { %v230_v59 = vpop.permute.xlu0 %229  ;;  %v681_v14 = vsel %vm488_vm13, %v680_v29, %v679_v6  ;;  %v810_v38 = vsel %vm488_vm13, %v809_v11, %v808_v8  ;;  %v824_v5 = vsel %vm488_vm13, %v823_v45, %v822_v30  ;;  %v1792_v0 = vcombine.low %v350_v44, %v350_v44 }
  0xbd   : > { %v1765_v54 = vcombine.low %v230_v59, %v230_v59  ;;  %v519_v47 = vrot.slane %v2715_v53, 1  ;;  %v668_v43 = vrot.slane %v2715_v53, 2  ;;  %v497_v32 = vrot.slane %v2713_v28, 5 }
  0xbe   : > { %v646_v55 = vrot.slane %v2713_v28, 6  ;;  %v811_v19 = vrot.slane %v2715_v53, 3  ;;  %v946_v34 = vsel %vm476_vm7, %v945_v63, %v944_v21  ;;  %v2729_v31 = vunpack.c.l.b16 %v1792_v0 }
  0xbf   : > { %v2731_v6 = vunpack.c.l.b16 %v1765_v54  ;;  %v520_v8 = vsel %vm491_vm14, %v519_v47, %v518_v16  ;;  %v669_v30 = vsel %vm491_vm14, %v668_v43, %v667_v39  ;;  %v232_v25 = vpop.permute.xlu1 %231  ;;  %v498_v11 = vsel %vm479_vm8, %v497_v32, %v496_v26 }
  0xc0   : > { %v234_v29 = vpop.permute.xlu0 %233  ;;  %v647_v45 = vsel %vm479_vm8, %v646_v55, %v645_v7  ;;  %v2738_v44 = vsel %vm491_vm14, %v811_v19, %v810_v38  ;;  %v947_v63 = vsel %vm479_vm8, %v2637_v10, %v946_v34  ;;  %v1766_v0 = vcombine.low %v232_v25, %v232_v25 }
  0xc1   : > { %v1767_v21 = vcombine.low %v234_v29, %v234_v29  ;;  %v533_v54 = vrot.slane %v2729_v31, 1  ;;  %v682_v16 = vrot.slane %v2729_v31, 2  ;;  %v481_v59 = vrot.slane %v2731_v6, 4 }
  0xc2   : > { %v3343_v39 = vrot.slane %v2503_v42, 4  ;;  %v634_v7 = vrot.slane %v2731_v6, 5  ;;  %v3344_v38 = vrot.slane %v2503_v42, 5  ;;  %v2752_v43 = vunpack.c.l.b16 %v1766_v0 }
  0xc3   : > { %v2754_v32 = vunpack.c.l.b16 %v1767_v21  ;;  %v534_v55 = vsel %vm491_vm14, %v533_v54, %v532_v20  ;;  %v683_v19 = vsel %vm491_vm14, %v682_v16, %v681_v14  ;;  %v236_v34 = vpop.permute.xlu1 %235  ;;  %v3346_v21 = vrot.slane %v2507_v40, 2 }
  0xc4   : > { %v500_v26 = vsel %vm482_vm10, %v3343_v39, %v498_v11  ;;  %v649_v47 = vsel %vm482_vm10, %v3344_v38, %v647_v45  ;;  %v542_v25 = vpack.c.b16 %v534_v55, %v520_v8  ;;  %v691_v29 = vpack.c.b16 %v683_v19, %v669_v30 }
  0xc5   : > { %v483_v11 = vsel %vm482_vm10, %v481_v59, %v2382_v33  ;;  %v3345_v39 = vrot.slane %v2505_v18, 3  ;;  %v1768_v61 = vcombine.low %v236_v34, %v236_v34  ;;  %v484_v45 = vrot.slane %v2752_v43, 3 }
  0xc6   : > { %v487_v0 = vrot.slane %v2754_v32, 2  ;;  %1845 = vmatpush3.bf16.msra.mxu0 %v542_v25  ;;  %1855 = vmatpush3.bf16.msra.mxu1 %v691_v29  ;;  %v3347_v14 = vrot.slane %v2509_v52, 1  ;;  %v635_v33 = vsel %vm482_vm10, %v634_v7, %v2389_v56  ;;  %v636_v30 = vrot.slane %v2752_v43, 4 }
  0xc7   : > { %v502_v37 = vsel %vm485_vm12, %v3345_v39, %v500_v26  ;;  %v638_v54 = vrot.slane %v2754_v32, 3  ;;  %v2775_v16 = vunpack.c.l.b16 %v1768_v61  ;;  %v3348_v59 = vmov 0.0  }
  0xc8   : > { %v504_v20 = vsel %vm488_vm13, %v3346_v21, %v502_v37  ;;  %1846 = vmatprep.subr.bf16.mxu0 %v3348_v59  ;;  %1856 = vmatprep.subr.bf16.mxu1 %v3348_v59  ;;  %v486_v37 = vsel %vm485_vm12, %v484_v45, %v483_v11  ;;  %v3349_v26 = vrot.slane %v2505_v18, 4  ;;  %v825_v55 = vrot.slane %v2729_v31, 3 }
  0xc9   : > { %v506_v8 = vsel %vm491_vm14, %v3347_v14, %v504_v20  ;;  %v489_v56 = vsel %vm488_vm13, %v487_v0, %v486_v37  ;;  %v637_v7 = vsel %vm485_vm12, %v636_v30, %v635_v33  ;;  %v3350_v19 = vrot.slane %v2507_v40, 3 }
  0xca   : > { %v651_v38 = vsel %vm485_vm12, %v3349_v26, %v649_v47  ;;  %v948_v34 = vrot.slane %v2624_v15, 7  ;;  %v490_v25 = vrot.slane %v2775_v16, 1  ;;  %v639_v29 = vsel %vm488_vm13, %v638_v54, %v637_v7 }
  0xcb   : > { %v653_v61 = vsel %vm488_vm13, %v3350_v19, %v651_v38  ;;  %v640_v11 = vrot.slane %v2775_v16, 2  ;;  %v3351_v47 = vrot.slane %v2509_v52, 2  ;;  %v826_v45 = vsel %vm491_vm14, %v825_v55, %v824_v5 }
  0xcc   : > { %v949_v0 = vsel %vm482_vm10, %v948_v34, %v947_v63  ;;  %v950_v21 = vrot.slane %v2659_v17, 6  ;;  %v952_v20 = vrot.slane %v2692_v35, 5  ;;  %v492_v14 = vsel %vm491_vm14, %v490_v25, %v489_v56 }
  0xcd   : > { %v655_v39 = vsel %vm491_vm14, %v3351_v47, %v653_v61  ;;  %v641_v33 = vsel %vm491_vm14, %v640_v11, %v639_v29  ;;  %v834_v30 = vpack.c.b16 %v826_v45, %v2738_v44  ;;  %v954_v54 = vrot.slane %v2715_v53, 4  ;;  %v2813_v44 = vld [vmem:[%s3322_s1] sm:$0x3] }
  0xce   : > { %v541_v37 = vpack.c.b16 %v506_v8, %v492_v14  ;;  %v690_v26 = vpack.c.b16 %v655_v39, %v641_v33  ;;  %v951_v38 = vsel %vm485_vm12, %v950_v21, %v949_v0  ;;  %v964_v5 = vrot.slane %v2675_v49, 6 }
  0xcf   : > { %v953_v63 = vsel %vm488_vm13, %v952_v20, %v951_v38  ;;  %v966_v55 = vrot.slane %v2694_v48, 5  ;;  %v968_v7 = vrot.slane %v2729_v31, 4  ;;  %v777_v56 = vrot.slane %v2731_v6, 6 }
  0xd0   : > { %1847 = vmatpush3.bf16.msra.mxu0 %v541_v37  ;;  %1857 = vmatpush3.bf16.msra.mxu1 %v690_v26  ;;  %v955_v8 = vsel %vm491_vm14, %v954_v54, %v953_v63  ;;  %v965_v19 = vsel %vm485_vm12, %v964_v5, %v2567_v51  ;;  %v779_v61 = vrot.slane %v2752_v43, 5  ;;  %v781_v34 = vrot.slane %v2754_v32, 4 }
  0xd1   : > { %1862 = vmatprep.subr.bf16.mxu0 %v3348_v59  ;;  %1872 = vmatprep.subr.bf16.mxu1 %v3348_v59  ;;  %v967_v25 = vsel %vm488_vm13, %v966_v55, %v965_v19  ;;  %v778_v29 = vsel %vm482_vm10, %v777_v56, %v2425_v9  ;;  %v783_v11 = vrot.slane %v2775_v16, 3  ;;  %v785_v47 = vrot.slane %v2639_v1, 2 }
  0xd2   : > { %v969_v39 = vsel %vm491_vm14, %v968_v7, %v967_v25  ;;  %v780_v51 = vsel %vm485_vm12, %v779_v61, %v778_v29  ;;  %v786_v45 = vrot.slane %v2657_v50, 1  ;;  %v789_v0 = vrot.slane %v2713_v28, 7 }
  0xd3   : > { %1849 = vmatmul.mubr.msk.bf16.vlgmr.msra.gmra.mxu0 %vm546_vm15, %v2813_v44  ;;  %1859 = vmatmul.mubr.msk.bf16.vlgmr.msra.gmra.mxu1 %vm546_vm15, %v2813_v44  ;;  %v977_v21 = vpack.c.b16 %v969_v39, %v955_v8  ;;  %v782_v9 = vsel %vm488_vm13, %v781_v34, %v780_v51  ;;  %v920_v20 = vrot.slane %v2731_v6, 7  ;;  %v922_v14 = vrot.slane %v2752_v43, 6 }
  0xd4   : > { %1863 = vmatpush3.bf16.msra.mxu0 %v2651_v57  ;;  %1873 = vmatpush3.bf16.msra.mxu1 %v2654_v2  ;;  %v784_v33 = vsel %vm491_vm14, %v783_v11, %v782_v9  ;;  %v787_v54 = vsel %vm473_vm6, %v786_v45, %v785_v47  ;;  %v924_v37 = vrot.slane %v2754_v32, 5  ;;  %v926_v26 = vrot.slane %v2775_v16, 4 }
  0xd5   : > { %1864 = vmatprep.subr.bf16.mxu0 %v3348_v59  ;;  %1874 = vmatprep.subr.bf16.mxu1 %v3348_v59  ;;  %v788_v38 = vsel %vm476_vm7, %v2677_v41, %v787_v54  ;;  %v921_v57 = vsel %vm482_vm10, %v920_v20, %v2436_v23  ;;  %v928_v2 = vrot.slane %v2639_v1, 3  ;;  %v929_v5 = vrot.slane %v2657_v50, 2 }
  0xd6   : > { %v790_v63 = vsel %vm479_vm8, %v789_v0, %v788_v38  ;;  %v923_v55 = vsel %vm485_vm12, %v922_v14, %v921_v57  ;;  %v931_v7 = vrot.slane %v2677_v41, 1  ;;  %1868 = vmatprep.mubr.msk.bf16.mxu0 %vm2105_vm9, %v3348_v59  ;;  %1878 = vmatprep.mubr.msk.bf16.mxu1 %vm2105_vm9, %v3348_v59  ;;  %v3352_v56 = vrot.slane %v2584_v58, 2 }
  0xd7   : > { %v3353_v8 = vrot.slane %v2503_v42, 6  ;;  %v925_v61 = vsel %vm488_vm13, %v924_v37, %v923_v55  ;;  %v930_v34 = vsel %vm473_vm6, %v929_v5, %v928_v2  ;;  %v1118_v25 = vrot.slane %v2606_v22, 1 }
  0xd8   : > { %v1117_v23 = vsel %vm476_vm7, %v3352_v56, %v2592_v46  ;;  %1865 = vmatpush3.bf16.msra.mxu0 %v834_v30  ;;  %1875 = vmatpush3.bf16.msra.mxu1 %v977_v21  ;;  %v3354_v29 = vrot.slane %v2505_v18, 5  ;;  %v927_v47 = vsel %vm491_vm14, %v926_v26, %v925_v61  ;;  %v932_v46 = vsel %vm476_vm7, %v931_v7, %v930_v34 }
  0xd9   : > { %v792_v19 = vsel %vm482_vm10, %v3353_v8, %v790_v63  ;;  %v1262_v39 = vrot.slane %v2606_v22, 2  ;;  %1866 = vmatprep.subr.bf16.mxu0 %v3348_v59  ;;  %1876 = vmatprep.subr.bf16.mxu1 %v3348_v59  ;;  %v3355_v51 = vrot.slane %v2507_v40, 4  ;;  %v933_v30 = vsel %vm479_vm8, %v2713_v28, %v932_v46 }
  0xda   : > { %v794_v11 = vsel %vm485_vm12, %v3354_v29, %v792_v19  ;;  %v1119_v0 = vsel %vm479_vm8, %v1118_v25, %v1117_v23  ;;  %v1085_v21 = vrot.slane %v2582_v4, 4  ;;  %v3356_v9 = vrot.slane %v2509_v52, 3 }
  0xdb   : > { %v796_v45 = vsel %vm488_vm13, %v3355_v51, %v794_v11  ;;  %v3357_v14 = vrot.slane %v2503_v42, 7  ;;  %v1122_v37 = vpack.c.b16 %v1119_v0, %v1119_v0  ;;  %v3358_v26 = vrot.slane %v2584_v58, 3 }
  0xdc   : > { %v798_v20 = vsel %vm491_vm14, %v3356_v9, %v796_v45  ;;  %v3359_v2 = vrot.slane %v2505_v18, 6  ;;  %v1086_v55 = vrot.slane %v2604_v27, 3  ;;  %v3360_v7 = vrot.slane %v2507_v40, 5 }
  0xdd   : > { %v935_v54 = vsel %vm482_vm10, %v3357_v14, %v933_v30  ;;  %v1261_v38 = vsel %vm476_vm7, %v3358_v26, %v2595_v3  ;;  %v833_v57 = vpack.c.b16 %v798_v20, %v784_v33  ;;  %v1126_v23 = vsel %vm550_vm11, %v1122_v37, 0 }
  0xde   : > { %v937_v5 = vsel %vm485_vm12, %v3359_v2, %v935_v54  ;;  %v1263_v63 = vsel %vm479_vm8, %v1262_v39, %v1261_v38  ;;  %v1088_v19 = vrot.slane %v2622_v12, 2  ;;  %v3361_v3 = vrot.slane %v2509_v52, 4 }
  0xdf   : > { %v939_v56 = vsel %vm488_vm13, %v3360_v7, %v937_v5  ;;  %v1266_v8 = vpack.c.b16 %v1263_v63, %v1263_v63  ;;  %1867 = vmatpush3.bf16.msra.mxu0 %v833_v57  ;;  %v1087_v61 = vsel %vm473_vm6, %v1086_v55, %v1085_v21  ;;  %v1090_v34 = vrot.slane %v2637_v10, 1 }
  0xe0   : > { %v941_v33 = vsel %vm491_vm14, %v3361_v3, %v939_v56  ;;  %v1093_v25 = vrot.slane %v2659_v17, 7  ;;  %1882 = vmatprep.subr.bf16.mxu0 %v3348_v59  ;;  %v1089_v46 = vsel %vm476_vm7, %v1088_v19, %v1087_v61  ;;  %v1095_v39 = vrot.slane %v2692_v35, 6 }
  0xe1   : > { %v976_v29 = vpack.c.b16 %v941_v33, %v927_v47  ;;  %v1270_v11 = vsel %vm550_vm11, %v1266_v8, 0  ;;  %v1091_v51 = vsel %vm479_vm8, %v1090_v34, %v1089_v46  ;;  %v1097_v45 = vrot.slane %v2715_v53, 5 }
  0xe2   : > { %v1107_v30 = vrot.slane %v2675_v49, 7  ;;  %v1109_v0 = vrot.slane %v2694_v48, 6  ;;  %1869 = vmatmul.mubr.msk.bf16.vlgmr.msra.gmra.mxu0 %vm546_vm15, %v2813_v44  ;;  %v1092_v47 = vsel %vm482_vm10, %v2624_v15, %v1091_v51  ;;  %v1111_v21 = vrot.slane %v2729_v31, 5 }
  0xe3   : > { %1877 = vmatpush3.bf16.msra.mxu1 %v976_v29  ;;  %v1229_v9 = vrot.slane %v2582_v4, 5  ;;  %v1230_v20 = vrot.slane %v2604_v27, 4  ;;  %1883 = vmatpush3.bf16.msra.mxu0 %v1126_v23  ;;  %v1094_v14 = vsel %vm485_vm12, %v1093_v25, %v1092_v47  ;;  %v1232_v37 = vrot.slane %v2622_v12, 3 }
  0xe4   : > { %1892 = vmatprep.subr.bf16.mxu1 %v3348_v59  ;;  %v1108_v54 = vsel %vm485_vm12, %v1107_v30, %v2573_v13  ;;  %v1234_v26 = vrot.slane %v2637_v10, 2  ;;  %1884 = vmatprep.subr.bf16.mxu0 %v3348_v59  ;;  %v1096_v38 = vsel %vm488_vm13, %v1095_v39, %v1094_v14  ;;  %v1236_v5 = vrot.slane %v2624_v15, 1 }
  0xe5   : > { %v1110_v57 = vsel %vm488_vm13, %v1109_v0, %v1108_v54  ;;  %v1231_v2 = vsel %vm473_vm6, %v1230_v20, %v1229_v9  ;;  %1888 = vmatprep.mubr.msk.bf16.mxu0 %vm2105_vm9, %v3348_v59  ;;  %v1098_v13 = vsel %vm491_vm14, %v1097_v45, %v1096_v38  ;;  %v1239_v7 = vrot.slane %v2692_v35, 7 }
  0xe6   : > { %1879 = vmatmul.mubr.msk.bf16.vlgmr.msra.gmra.mxu1 %vm546_vm15, %v2813_v44  ;;  %v1112_v63 = vsel %vm491_vm14, %v1111_v21, %v1110_v57  ;;  %v1233_v55 = vsel %vm476_vm7, %v1232_v37, %v1231_v2  ;;  %v1241_v8 = vrot.slane %v2715_v53, 6  ;;  %v3362_v19 = vrot.slane %v2535_v62, 1 }
  0xe7   : > { %1893 = vmatpush3.bf16.msra.mxu1 %v1270_v11  ;;  %v1121_v56 = vpack.c.b16 %v1112_v63, %v1098_v13  ;;  %v1235_v23 = vsel %vm479_vm8, %v1234_v26, %v1233_v55  ;;  %1898 = vmatprep.mubr.msk.bf16.mxu1 %vm2105_vm9, %v3348_v59  ;;  %v1253_v34 = vrot.slane %v2694_v48, 7  ;;  %v1255_v25 = vrot.slane %v2729_v31, 6 }
  0xe8   : > { %v1251_v3 = vsel %vm482_vm10, %v3362_v19, %v2439_v24  ;;  %1894 = vmatprep.subr.bf16.mxu1 %v3348_v59  ;;  %v1237_v33 = vsel %vm482_vm10, %v1236_v5, %v1235_v23  ;;  %v1064_v24 = vsel %vm482_vm10, %v2731_v6, %v2450_v36  ;;  %v1065_v11 = vrot.slane %v2752_v43, 7 }
  0xe9   : > { %v1252_v61 = vsel %vm485_vm12, %v2675_v49, %v1251_v3  ;;  %1885 = vmatpush3.bf16.msra.mxu0 %v1121_v56  ;;  %v1238_v29 = vsel %vm485_vm12, %v2659_v17, %v1237_v33  ;;  %v1067_v46 = vrot.slane %v2754_v32, 6  ;;  %v1069_v45 = vrot.slane %v2775_v16, 5  ;;  %v3363_v33 = vld [vmem:[#allocation9_spill] sm:$0xff] }
  0xea   : > { %v1240_v39 = vsel %vm488_vm13, %v1239_v7, %v1238_v29  ;;  %v1254_v51 = vsel %vm488_vm13, %v1253_v34, %v1252_v61  ;;  %1886 = vmatprep.subr.bf16.mxu0 %v3348_v59  ;;  %v1071_v30 = vrot.slane %v2639_v1, 4  ;;  %v1066_v36 = vsel %vm485_vm12, %v1065_v11, %v1064_v24  ;;  %v3365_v24 = vld [vmem:[#allocation10_spill] sm:$0xff] }
  0xeb   : > { %v1242_v0 = vsel %vm491_vm14, %v1241_v8, %v1240_v39  ;;  %v1256_v47 = vsel %vm491_vm14, %v1255_v25, %v1254_v51  ;;  %v1072_v21 = vrot.slane %v2657_v50, 3  ;;  %v1068_v20 = vsel %vm488_vm13, %v1067_v46, %v1066_v36 }
  0xec   : > { %v1265_v9 = vpack.c.b16 %v1256_v47, %v1242_v0  ;;  %v1074_v14 = vrot.slane %v2677_v41, 2  ;;  %v1076_v54 = vrot.slane %v2713_v28, 1  ;;  %v1070_v37 = vsel %vm491_vm14, %v1069_v45, %v1068_v20 }
  0xed   : > { %v1073_v26 = vsel %vm473_vm6, %v1072_v21, %v1071_v30  ;;  %v1208_v38 = vrot.slane %v2731_v6, 1  ;;  %v1211_v57 = vrot.slane %v2754_v32, 7  ;;  %v1213_v5 = vrot.slane %v2775_v16, 6 }
  0xee   : > { %1895 = vmatpush3.bf16.msra.mxu1 %v1265_v9  ;;  %v1075_v2 = vsel %vm476_vm7, %v1074_v14, %v1073_v26  ;;  %v1215_v13 = vrot.slane %v2639_v1, 5  ;;  %v1216_v63 = vrot.slane %v2657_v50, 4  ;;  %v1218_v56 = vrot.slane %v2677_v41, 3 }
  0xef   : > { %1896 = vmatprep.subr.bf16.mxu1 %v3348_v59  ;;  %v1077_v55 = vsel %vm479_vm8, %v1076_v54, %v1075_v2  ;;  %v1209_v7 = vsel %vm482_vm10, %v1208_v38, %v2470_v60  ;;  %v1220_v23 = vrot.slane %v2713_v28, 2  ;;  %v1401_v61 = vrot.slane %v3363_v33, 6 }
  0xf0   : > { %v1078_v8 = vsel %vm482_vm10, %v2503_v42, %v1077_v55  ;;  %v1210_v19 = vsel %vm485_vm12, %v2752_v43, %v1209_v7  ;;  %v1217_v3 = vsel %vm473_vm6, %v1216_v63, %v1215_v13  ;;  %v3364_v34 = vrot.slane %v2505_v18, 7 }
  0xf1   : > { %v1212_v60 = vsel %vm488_vm13, %v1211_v57, %v1210_v19  ;;  %v1219_v29 = vsel %vm476_vm7, %v1218_v56, %v1217_v3  ;;  %v1402_v11 = vrot.slane %v3365_v24, 5  ;;  %v3366_v46 = vrot.slane %v2507_v40, 6 }
  0xf2   : > { %v1080_v25 = vsel %vm485_vm12, %v3364_v34, %v1078_v8  ;;  %v1214_v51 = vsel %vm491_vm14, %v1213_v5, %v1212_v60  ;;  %v1221_v45 = vsel %vm479_vm8, %v1220_v23, %v1219_v29  ;;  %v1404_v30 = vrot.slane %v2584_v58, 4 }
  0xf3   : > { %v1082_v39 = vsel %vm488_vm13, %v3366_v46, %v1080_v25  ;;  %v3367_v0 = vrot.slane %v2509_v52, 5  ;;  %v3368_v36 = vrot.slane %v2503_v42, 1  ;;  %v1403_v9 = vsel %vm473_vm6, %v1402_v11, %v1401_v61 }
  0xf4   : > { %v1406_v20 = vrot.slane %v2606_v22, 3  ;;  %v1405_v26 = vsel %vm476_vm7, %v1404_v30, %v1403_v9  ;;  %v1545_v38 = vrot.slane %v3363_v33, 7  ;;  %v3369_v57 = vrot.slane %v2507_v40, 7  ;;  %v3371_v9 = vld [vmem:[#allocation5_spill] sm:$0xff] }
  0xf5   : > { %v1084_v47 = vsel %vm491_vm14, %v3367_v0, %v1082_v39  ;;  %v1223_v21 = vsel %vm482_vm10, %v3368_v36, %v1221_v45  ;;  %v1546_v13 = vrot.slane %v3365_v24, 6  ;;  %v1548_v63 = vrot.slane %v2584_v58, 5 }
  0xf6   : > { %v1120_v14 = vpack.c.b16 %v1084_v47, %v1070_v37  ;;  %v1224_v54 = vsel %vm485_vm12, %v2505_v18, %v1223_v21  ;;  %v1407_v5 = vsel %vm479_vm8, %v1406_v20, %v1405_v26  ;;  %v3370_v37 = vrot.slane %v2509_v52, 6 }
  0xf7   : > { %v1226_v2 = vsel %vm488_vm13, %v3369_v57, %v1224_v54  ;;  %v1410_v7 = vpack.c.b16 %v1407_v5, %v1407_v5  ;;  %v1550_v56 = vrot.slane %v2606_v22, 4  ;;  %v1373_v23 = vrot.slane %v2582_v4, 6 }
  0xf8   : > { %1887 = vmatpush3.bf16.msra.mxu0 %v1120_v14  ;;  %v1228_v55 = vsel %vm491_vm14, %v3370_v37, %v1226_v2  ;;  %v1547_v19 = vsel %vm473_vm6, %v1546_v13, %v1545_v38  ;;  %v1374_v3 = vrot.slane %v2604_v27, 5  ;;  %v1376_v33 = vrot.slane %v2622_v12, 4 }
  0xf9   : > { %v1264_v8 = vpack.c.b16 %v1228_v55, %v1214_v51  ;;  %1902 = vmatprep.subr.bf16.mxu0 %v3348_v59  ;;  %v1414_v58 = vsel %vm550_vm11, %v1410_v7, 0  ;;  %v1549_v61 = vsel %vm476_vm7, %v1548_v63, %v1547_v19  ;;  %v1378_v34 = vrot.slane %v2637_v10, 3 }
  0xfa   : > { %v1380_v25 = vrot.slane %v2624_v15, 2  ;;  %v1551_v22 = vsel %vm479_vm8, %v1550_v56, %v1549_v61  ;;  %v1375_v60 = vsel %vm473_vm6, %v1374_v3, %v1373_v23  ;;  %v1382_v29 = vrot.slane %v2659_v17, 1 }
  0xfb   : > { %1897 = vmatpush3.bf16.msra.mxu1 %v1264_v8  ;;  %1889 = vmatmul.mubr.msk.bf16.vlgmr.msra.gmra.mxu0 %vm546_vm15, %v2813_v44  ;;  %v1385_v24 = vrot.slane %v2715_v53, 7  ;;  %v1554_v11 = vpack.c.b16 %v1551_v22, %v1551_v22  ;;  %v1377_v46 = vsel %vm476_vm7, %v1376_v33, %v1375_v60  ;;  %v1394_v39 = vrot.slane %v2535_v62, 2  ;;  %v3372_v33 = vld [vmem:[#allocation6_spill] sm:$0xff] }
  0xfc   : > { %1912 = vmatprep.subr.bf16.mxu1 %v3348_v59  ;;  %1903 = vmatpush3.bf16.msra.mxu0 %v1414_v58  ;;  %v1396_v51 = vrot.slane %v2675_v49, 1  ;;  %v1379_v45 = vsel %vm479_vm8, %v1378_v34, %v1377_v46  ;;  %v1399_v30 = vrot.slane %v2729_v31, 7  ;;  %v1517_v0 = vrot.slane %v2582_v4, 7 }
  0xfd   : > { %1904 = vmatprep.subr.bf16.mxu0 %v3348_v59  ;;  %v1518_v47 = vrot.slane %v2604_v27, 6  ;;  %1908 = vmatprep.mubr.msk.bf16.mxu0 %vm2105_vm9, %v3348_v59  ;;  %v1558_v36 = vsel %vm550_vm11, %v1554_v11, 0  ;;  %v1381_v21 = vsel %vm482_vm10, %v1380_v25, %v1379_v45  ;;  %v1395_v20 = vsel %vm482_vm10, %v1394_v39, %v3371_v9 }
  0xfe   : > { %1899 = vmatmul.mubr.msk.bf16.vlgmr.msra.gmra.mxu1 %vm546_vm15, %v2813_v44  ;;  %v1520_v14 = vrot.slane %v2622_v12, 5  ;;  %v1383_v4 = vsel %vm485_vm12, %v1382_v29, %v1381_v21  ;;  %v1397_v27 = vsel %vm485_vm12, %v1396_v51, %v1395_v20  ;;  %v1522_v26 = vrot.slane %v2637_v10, 4 }
  0xff   : > { %1913 = vmatpush3.bf16.msra.mxu1 %v1558_v36  ;;  %v1519_v54 = vsel %vm473_vm6, %v1518_v47, %v1517_v0  ;;  %1918 = vmatprep.mubr.msk.bf16.mxu1 %vm2105_vm9, %v3348_v59  ;;  %v1384_v38 = vsel %vm488_vm13, %v2692_v35, %v1383_v4  ;;  %v1398_v12 = vsel %vm488_vm13, %v2694_v48, %v1397_v27  ;;  %v1524_v2 = vrot.slane %v2624_v15, 3  ;;  %v3374_v36 = vld [vmem:[#allocation8_spill] sm:$0xff] }
 0x100   : > { %1914 = vmatprep.subr.bf16.mxu1 %v3348_v59  ;;  %v1521_v57 = vsel %vm476_vm7, %v1520_v14, %v1519_v54  ;;  %v1386_v5 = vsel %vm491_vm14, %v1385_v24, %v1384_v38  ;;  %v1400_v13 = vsel %vm491_vm14, %v1399_v30, %v1398_v12  ;;  %v1526_v63 = vrot.slane %v2659_v17, 2 }
 0x101   : > { %v1523_v10 = vsel %vm479_vm8, %v1522_v26, %v1521_v57  ;;  %v1409_v37 = vpack.c.b16 %v1400_v13, %v1386_v5  ;;  %v1528_v55 = vrot.slane %v2692_v35, 1  ;;  %v1538_v7 = vrot.slane %v2535_v62, 3 }
 0x102   : > { %v1510_v56 = vrot.slane %v2503_v42, 3  ;;  %v1525_v23 = vsel %vm482_vm10, %v1524_v2, %v1523_v10  ;;  %v1540_v8 = vrot.slane %v2675_v49, 2  ;;  %v1542_v15 = vrot.slane %v2694_v48, 1  ;;  %v3373_v49 = vld [vmem:[#allocation7_spill] sm:$0xff] }
 0x103   : > { %v1352_v19 = vrot.slane %v2731_v6, 2  ;;  %1905 = vmatpush3.bf16.msra.mxu0 %v1409_v37  ;;  %v1527_v3 = vsel %vm485_vm12, %v1526_v63, %v1525_v23  ;;  %v1539_v17 = vsel %vm482_vm10, %v1538_v7, %v3372_v33  ;;  %v1354_v35 = vrot.slane %v2752_v43, 1  ;;  %v3153_v23 = vpop.permute.xlu0 %361 }
 0x104   : > { %v1512_v62 = vrot.slane %v2505_v18, 2  ;;  %v1529_v58 = vsel %vm488_vm13, %v1528_v55, %v1527_v3  ;;  %v1541_v61 = vsel %vm485_vm12, %v1540_v8, %v1539_v17  ;;  %1906 = vmatprep.subr.bf16.mxu0 %v3348_v59  ;;  %v1359_v34 = vrot.slane %v2639_v1, 6 }
 0x105   : > { %v1353_v48 = vsel %vm482_vm10, %v1352_v19, %v3373_v49  ;;  %v1543_v25 = vsel %vm488_vm13, %v1542_v15, %v1541_v61  ;;  %v1357_v22 = vrot.slane %v2775_v16, 7  ;;  %v1360_v60 = vrot.slane %v2657_v50, 5 }
 0x106   : > { %v1362_v29 = vrot.slane %v2677_v41, 4  ;;  %v1530_v24 = vsel %vm491_vm14, %v2715_v53, %v1529_v58  ;;  %v1544_v11 = vsel %vm491_vm14, %v2729_v31, %v1543_v25  ;;  %v1364_v46 = vrot.slane %v2713_v28, 3 }
 0x107   : > { %v1496_v39 = vrot.slane %v2731_v6, 3  ;;  %v1553_v51 = vpack.c.b16 %v1544_v11, %v1530_v24  ;;  %v1355_v45 = vsel %vm485_vm12, %v1354_v35, %v1353_v48  ;;  %v1361_v30 = vsel %vm473_vm6, %v1360_v60, %v1359_v34 }
 0x108   : > { %v1498_v0 = vrot.slane %v2752_v43, 2  ;;  %v1363_v47 = vsel %vm476_vm7, %v1362_v29, %v1361_v30  ;;  %v1500_v53 = vrot.slane %v2754_v32, 1  ;;  %v1503_v31 = vrot.slane %v2639_v1, 7 }
 0x109   : > { %v1497_v21 = vsel %vm482_vm10, %v1496_v39, %v3374_v36  ;;  %1915 = vmatpush3.bf16.msra.mxu1 %v1553_v51  ;;  %v1365_v9 = vsel %vm479_vm8, %v1364_v46, %v1363_v47  ;;  %v1504_v20 = vrot.slane %v2657_v50, 6  ;;  %v1506_v14 = vrot.slane %v2677_v41, 5 }
 0x10a   : > { %v1499_v6 = vsel %vm485_vm12, %v1498_v0, %v1497_v21  ;;  %1916 = vmatprep.subr.bf16.mxu1 %v3348_v59  ;;  %v1356_v43 = vsel %vm488_vm13, %v2754_v32, %v1355_v45  ;;  %v3375_v4 = vrot.slane %v2503_v42, 2  ;;  %v1508_v54 = vrot.slane %v2713_v28, 4 }
 0x10b   : > { %v1501_v1 = vsel %vm488_vm13, %v1500_v53, %v1499_v6  ;;  %v1358_v26 = vsel %vm491_vm14, %v1357_v22, %v1356_v43  ;;  %v3376_v38 = vrot.slane %v2505_v18, 1  ;;  %v1505_v59 = vsel %vm473_vm6, %v1504_v20, %v1503_v31 }
 0x10c   : > { %v1367_v27 = vsel %vm482_vm10, %v3375_v4, %v1365_v9  ;;  %v1502_v41 = vsel %vm491_vm14, %v2775_v16, %v1501_v1  ;;  %v1507_v32 = vsel %vm476_vm7, %v1506_v14, %v1505_v59  ;;  %v1514_v12 = vrot.slane %v2507_v40, 1 }
 0x10d   : > { %v1369_v50 = vsel %vm485_vm12, %v3376_v38, %v1367_v27  ;;  %v3377_v28 = vrot.slane %v2509_v52, 7  ;;  %v1509_v18 = vsel %vm479_vm8, %v1508_v54, %v1507_v32  ;;  %v2107_v63 = vmov 1966171168  }
 0x10e   : > { %v1370_v42 = vsel %vm488_vm13, %v2507_v40, %v1369_v50  ;;  %v1511_v5 = vsel %vm482_vm10, %v1510_v56, %v1509_v18  ;;  %v596_v37 = vunpack.c.l.s4 %v2107_v63  ;;  %v598_v55 = vlaneseq }
 0x10f   : > { %v1372_v57 = vsel %vm491_vm14, %v3377_v28, %v1370_v42  ;;  %v1513_v16 = vsel %vm485_vm12, %v1512_v62, %v1511_v5 }
 0x110   : > { %v1408_v2 = vpack.c.b16 %v1372_v57, %v1358_v26  ;;  %v1515_v13 = vsel %vm488_vm13, %v1514_v12, %v1513_v16  ;;  %v597_v7 = vunpack.c.0.s8 %v596_v37  ;;  %v599_v56 = vshrl.u32 %v598_v55, 7 }
 0x111   : > { %v1516_v10 = vsel %vm491_vm14, %v2509_v52, %v1515_v13 }
 0x112   : > { %1907 = vmatpush3.bf16.msra.mxu0 %v1408_v2  ;;  %v1552_v40 = vpack.c.b16 %v1516_v10, %v1502_v41  ;;  %v3156_v8 = vsub.s32 %v597_v7, %v599_v56 }
 0x114   : > { %1917 = vmatpush3.bf16.msra.mxu1 %v1552_v40 }
 0x115   : > { %1909 = vmatmul.mubr.msk.bf16.vlgmr.msra.gmra.mxu0 %vm546_vm15, %v2813_v44 }
 0x117   : > { %1919 = vmatmul.mubr.msk.bf16.vlgmr.msra.gmra.mxu1 %vm546_vm15, %v2813_v44 }
 0x193   : > { %v588_v15 = vpop.f32.mrf.mxu0  ;;  %v732_v52 = vpop.f32.mrf.mxu1 }
 0x194   : > { %v589_v19 = vadd.f32 %v588_v15, %v3153_v23  ;;  %v733_v3 = vadd.f32 %v732_v52, %v3153_v23 }
 0x195   : > { %v1850_v33 = vpop.f32.mrf.mxu0  ;;  %v1860_v44 = vpop.f32.mrf.mxu1 }
 0x196   : > { %v601_v17 = vrot.slane %v589_v19, %v3156_v8  ;;  %v745_v35 = vrot.slane %v733_v3, %v3156_v8 }
 0x197   : > { %v591_v62 = vpop.f32.mrf.mxu0  ;;  %v735_v58 = vpop.f32.mrf.mxu1 }
 0x198   : > { %v602_v61 = vcombine.high %v601_v17, %v601_v17  ;;  %v609_v49 = vrot.slane %v601_v17, %v3156_v8  ;;  %v746_v48 = vcombine.high %v745_v35, %v745_v35  ;;  %v753_v34 = vrot.slane %v745_v35, %v3156_v8 }
 0x199   : > { %v1851_v25 = vpop.f32.mrf.mxu0  ;;  %v1861_v22 = vpop.f32.mrf.mxu1 }
 0x19a   : > { %v616_v60 = vrot.slane %v602_v61, %v3156_v8  ;;  %v617_v29 = vcombine.high %v609_v49, %v609_v49  ;;  %624 = vst.msk [vmem:[%s3167_s7] sm:$0x1] %vm623_vm0, %v609_v49  ;;  %v760_v24 = vrot.slane %v746_v48, %v3156_v8  ;;  %v761_v11 = vcombine.high %v753_v34, %v753_v34 }
 0x19b   : > { %767 = vst.msk [vmem:[%s3167_s7 + $0x1] sm:$0x1] %vm623_vm0, %v753_v34 }
 0x19c   : > { %v618_v46 = vcombine.high %v616_v60, %v616_v60  ;;  %625 = vst.msk [vmem:[%s3167_s7 + $0x8] sm:$0x1] %vm623_vm0, %v616_v60  ;;  %626 = vst.msk [vmem:[%s3167_s7 + $0x10] sm:$0x1] %vm623_vm0, %v617_v29  ;;  %v762_v39 = vcombine.high %v760_v24, %v760_v24 }
 0x19d   : > { %768 = vst.msk [vmem:[%s3167_s7 + $0x9] sm:$0x1] %vm623_vm0, %v760_v24  ;;  %769 = vst.msk [vmem:[%s3167_s7 + $0x11] sm:$0x1] %vm623_vm0, %v761_v11 }
 0x19e   : > { %627 = vst.msk [vmem:[%s3167_s7 + $0x18] sm:$0x1] %vm623_vm0, %v618_v46  ;;  %770 = vst.msk [vmem:[%s3167_s7 + $0x19] sm:$0x1] %vm623_vm0, %v762_v39 }
 0x1a2   : > { %v875_v51 = vpop.f32.mrf.mxu0 }
 0x1a3   : > { %v876_v45 = vadd.f32 %v875_v51, %v3153_v23 }
 0x1a4   : > { %v1870_v30 = vpop.f32.mrf.mxu0 }
 0x1a5   : > { %v888_v0 = vrot.slane %v876_v45, %v3156_v8 }
 0x1a6   : > { %v1018_v47 = vpop.f32.mrf.mxu1  ;;  %v878_v21 = vpop.f32.mrf.mxu0 }
 0x1a7   : > { %v1019_v36 = vadd.f32 %v1018_v47, %v3153_v23  ;;  %v889_v53 = vcombine.high %v888_v0, %v888_v0  ;;  %v896_v31 = vrot.slane %v888_v0, %v3156_v8 }
 0x1a8   : > { %v1880_v9 = vpop.f32.mrf.mxu1  ;;  %v1871_v20 = vpop.f32.mrf.mxu0 }
 0x1a9   : > { %v1031_v6 = vrot.slane %v1019_v36, %v3156_v8  ;;  %v903_v14 = vrot.slane %v889_v53, %v3156_v8  ;;  %v904_v43 = vcombine.high %v896_v31, %v896_v31  ;;  %910 = vst.msk [vmem:[%s3167_s7 + $0x2] sm:$0x1] %vm623_vm0, %v896_v31 }
 0x1aa   : > { %v1021_v4 = vpop.f32.mrf.mxu1 }
 0x1ab   : > { %v1032_v27 = vcombine.high %v1031_v6, %v1031_v6  ;;  %v1039_v1 = vrot.slane %v1031_v6, %v3156_v8  ;;  %v905_v54 = vcombine.high %v903_v14, %v903_v14  ;;  %911 = vst.msk [vmem:[%s3167_s7 + $0xa] sm:$0x1] %vm623_vm0, %v903_v14  ;;  %912 = vst.msk [vmem:[%s3167_s7 + $0x12] sm:$0x1] %vm623_vm0, %v904_v43 }
 0x1ac   : > { %v1881_v26 = vpop.f32.mrf.mxu1 }
 0x1ad   : > { %v1046_v38 = vrot.slane %v1032_v27, %v3156_v8  ;;  %v1047_v50 = vcombine.high %v1039_v1, %v1039_v1  ;;  %1053 = vst.msk [vmem:[%s3167_s7 + $0x3] sm:$0x1] %vm623_vm0, %v1039_v1  ;;  %913 = vst.msk [vmem:[%s3167_s7 + $0x1a] sm:$0x1] %vm623_vm0, %v905_v54 }
 0x1af   : > { %v1048_v41 = vcombine.high %v1046_v38, %v1046_v38  ;;  %1054 = vst.msk [vmem:[%s3167_s7 + $0xb] sm:$0x1] %vm623_vm0, %v1046_v38  ;;  %1055 = vst.msk [vmem:[%s3167_s7 + $0x13] sm:$0x1] %vm623_vm0, %v1047_v50 }
 0x1b1   : > { %1056 = vst.msk [vmem:[%s3167_s7 + $0x1b] sm:$0x1] %vm623_vm0, %v1048_v41 }
 0x1bb   : > { %v1162_v59 = vpop.f32.mrf.mxu0 }
 0x1bc   : > { %v1163_v42 = vadd.f32 %v1162_v59, %v3153_v23 }
 0x1bd   : > { %v1890_v32 = vpop.f32.mrf.mxu0 }
 0x1be   : > { %v1175_v12 = vrot.slane %v1163_v42, %v3156_v8  ;;  %v1306_v28 = vpop.f32.mrf.mxu1 }
 0x1bf   : > { %v1307_v57 = vadd.f32 %v1306_v28, %v3153_v23  ;;  %v1165_v18 = vpop.f32.mrf.mxu0 }
 0x1c0   : > { %v1176_v2 = vcombine.high %v1175_v12, %v1175_v12  ;;  %v1183_v5 = vrot.slane %v1175_v12, %v3156_v8  ;;  %v1900_v16 = vpop.f32.mrf.mxu1 }
 0x1c1   : > { %v1319_v13 = vrot.slane %v1307_v57, %v3156_v8  ;;  %v1891_v10 = vpop.f32.mrf.mxu0 }
 0x1c2   : > { %v1190_v40 = vrot.slane %v1176_v2, %v3156_v8  ;;  %v1191_v63 = vcombine.high %v1183_v5, %v1183_v5  ;;  %1197 = vst.msk [vmem:[%s3167_s7 + $0x4] sm:$0x1] %vm623_vm0, %v1183_v5  ;;  %v1309_v37 = vpop.f32.mrf.mxu1 }
 0x1c3   : > { %v1320_v55 = vcombine.high %v1319_v13, %v1319_v13  ;;  %v1327_v7 = vrot.slane %v1319_v13, %v3156_v8 }
 0x1c4   : > { %v1192_v56 = vcombine.high %v1190_v40, %v1190_v40  ;;  %1198 = vst.msk [vmem:[%s3167_s7 + $0xc] sm:$0x1] %vm623_vm0, %v1190_v40  ;;  %1199 = vst.msk [vmem:[%s3167_s7 + $0x14] sm:$0x1] %vm623_vm0, %v1191_v63  ;;  %v1901_v15 = vpop.f32.mrf.mxu1 }
 0x1c5   : > { %v1334_v52 = vrot.slane %v1320_v55, %v3156_v8  ;;  %v1335_v19 = vcombine.high %v1327_v7, %v1327_v7  ;;  %1341 = vst.msk [vmem:[%s3167_s7 + $0x5] sm:$0x1] %vm623_vm0, %v1327_v7 }
 0x1c6   : > { %1200 = vst.msk [vmem:[%s3167_s7 + $0x1c] sm:$0x1] %vm623_vm0, %v1192_v56 }
 0x1c7   : > { %v1336_v3 = vcombine.high %v1334_v52, %v1334_v52  ;;  %1342 = vst.msk [vmem:[%s3167_s7 + $0xd] sm:$0x1] %vm623_vm0, %v1334_v52  ;;  %1343 = vst.msk [vmem:[%s3167_s7 + $0x15] sm:$0x1] %vm623_vm0, %v1335_v19 }
 0x1c9   : > { %1344 = vst.msk [vmem:[%s3167_s7 + $0x1d] sm:$0x1] %vm623_vm0, %v1336_v3 }
 0x1d5   : > { %v1450_v33 = vpop.f32.mrf.mxu0 }
 0x1d6   : > { %v1451_v44 = vadd.f32 %v1450_v33, %v3153_v23 }
 0x1d7   : > { %v1910_v17 = vpop.f32.mrf.mxu0  ;;  %v1594_v62 = vpop.f32.mrf.mxu1 }
 0x1d8   : > { %v1463_v35 = vrot.slane %v1451_v44, %v3156_v8  ;;  %v1595_v48 = vadd.f32 %v1594_v62, %v3153_v23 }
 0x1d9   : > { %v1453_v58 = vpop.f32.mrf.mxu0  ;;  %v1920_v34 = vpop.f32.mrf.mxu1 }
 0x1da   : > { %v1464_v61 = vcombine.high %v1463_v35, %v1463_v35  ;;  %v1471_v49 = vrot.slane %v1463_v35, %v3156_v8  ;;  %v1607_v29 = vrot.slane %v1595_v48, %v3156_v8 }
 0x1db   : > { %v1911_v25 = vpop.f32.mrf.mxu0  ;;  %v1597_v24 = vpop.f32.mrf.mxu1 }
 0x1dc   : > { %v1478_v22 = vrot.slane %v1464_v61, %v3156_v8  ;;  %v1479_v60 = vcombine.high %v1471_v49, %v1471_v49  ;;  %1485 = vst.msk [vmem:[%s3167_s7 + $0x6] sm:$0x1] %vm623_vm0, %v1471_v49  ;;  %v1608_v23 = vcombine.high %v1607_v29, %v1607_v29  ;;  %v1615_v46 = vrot.slane %v1607_v29, %v3156_v8 }
 0x1dd   : > { %v1921_v39 = vpop.f32.mrf.mxu1 }
 0x1de   : > { %v1480_v11 = vcombine.high %v1478_v22, %v1478_v22  ;;  %1486 = vst.msk [vmem:[%s3167_s7 + $0xe] sm:$0x1] %vm623_vm0, %v1478_v22  ;;  %1487 = vst.msk [vmem:[%s3167_s7 + $0x16] sm:$0x1] %vm623_vm0, %v1479_v60  ;;  %v1622_v51 = vrot.slane %v1608_v23, %v3156_v8  ;;  %v1623_v45 = vcombine.high %v1615_v46, %v1615_v46 }
 0x1df   : > { %1629 = vst.msk [vmem:[%s3167_s7 + $0x7] sm:$0x1] %vm623_vm0, %v1615_v46 }
 0x1e0   : > { %1488 = vst.msk [vmem:[%s3167_s7 + $0x1e] sm:$0x1] %vm623_vm0, %v1480_v11  ;;  %v1624_v30 = vcombine.high %v1622_v51, %v1622_v51  ;;  %1630 = vst.msk [vmem:[%s3167_s7 + $0xf] sm:$0x1] %vm623_vm0, %v1622_v51 }
 0x1e1   : > { %1631 = vst.msk [vmem:[%s3167_s7 + $0x17] sm:$0x1] %vm623_vm0, %v1623_v45 }
 0x1e2   : > { %1632 = vst.msk [vmem:[%s3167_s7 + $0x1f] sm:$0x1] %vm623_vm0, %v1624_v30 }
 0x1e3   : > { %2021 = shalt.err (!%p2018_p6)
}
 0x1e4   : > { %s2022_s4 = scalar_lea.hbm %s3260_s20, 512  ;;  %s2026_s7 = scalar_lea.hbm %s3324_s3, 8192 }
 0x1e5   : > { %p2023_p7 = scmp.ne.s32.totalorder %s3260_s20, %s2022_s4  ;;  %p2027_p11 = scmp.lt.s32.totalorder %s3260_s20, %s3324_s3 }
 0x1e6   : > { %p2028_p12 = scmp.lt.s32.totalorder %s2026_s7, %s2022_s4 }
 0x1e7   : > { %p2024_p9 = pnand %p2023_p7, %p2183_p3 }
 0x1e8   : > { %p2029_p13 = por %p2028_p12, %p2027_p11 }
 0x1e9   : > { %p2025_p10 = pneg %p2024_p9 }
 0x1eb   : > { %p2030_p0 = pnand %p2029_p13, %p2025_p10 }
 0x1ed   : > { %2033 = shalt.err (!%p2030_p0)
}
 0x1ee   : > { %s2109_s15 = smov 128   ;;  %s2110_s10 = smov 1024  }
 0x1ef   : > { %s2111_s11 = smov 8  }
 0x1f0   : > { %1923 = dma.vmem_to_hbm [thread:$0]  (%p2183_p3), %s3255_s16, 512, %s3260_s20, %s3270_s21, %s2109_s15, %s2110_s10, %s2111_s11  }
 0x1f1 PF: > { %p1929_p1 = scmp.ge.s32.totalorder %s2100_s19, 2  ;;  %s1665_s24 = sand.u32 1, %s2072_s12  }
 0x1f2   : > { %s1666_s27 = scalar_lea.sflag [#allocation3], %s1665_s24 }
 0x1f3   : > { %p1926_p2 = pnand %p1929_p1, %p2192_p8 }
 0x1f5   : > { %p1927_p4 = pneg %p1926_p2 }
 0x1f7   : > { %2067 = dma.done.wait (%p1927_p4), %s1666_s27, 512  }
 0x1f8   : > { %2069 = vsyncadd (%p1927_p4), %s1666_s27, 4294966784  ;;  %s16_s19 = sadd.s32 1, %s2100_s19   ;;  %s3378_s12 = smov %s2076_s13 }
 0x1f9   : > { %p13_p5 = scmp.ge.s32.totalorder %s16_s19, 18   ;;  %s3379_s13 = smov %s2080_s14 }
 0x1fa   : > { %s3380_s14 = smov %s2201_s30  ;;  %s3381_s15 = smov %s2092_s17 }
 0x1fb   : > { %s3382_s16 = smov %s2096_s18  ;;  %s3383_s17 = smov %s3386_s22 }
 0x1fc   : > { %s3384_s18 = smov %s3390_s23  ;;  %15 = sbr.rel (!%p13_p5) target bundleno = 5 (0x5), region = 71 }
 0x201   :  { %1671 = vsyncpa [#allocation3], 1 }
 0x202   :  { %1673 = vsyncpa [#allocation3 + $0x1], 1 }

</bundles_post_ra>
